<compile_context>
chip_gen: v7x
topology: tpu7x:2x2x1
jax: 0.10.0
libtpu: 0.0.40
codegen_flags: <defaults>
</compile_context>

<pallas_src>
import functools

import jax
import jax.numpy as jnp
import numpy as np
from jax.experimental import pallas as pl
from jax.experimental.pallas import tpu as pltpu


# ----------------------------------------------------------------------------
# Fused kernel: conv1 -> conv2 -> global_add_pool -> readout MLP, per node tile
# ----------------------------------------------------------------------------
def _gin_fused_kernel(nodes_per_graph,
                      a_ref, x_ref,
                      w1a_ref, b1a_ref, w2a_ref, b2a_ref,
                      w1b_ref, b1b_ref, w2b_ref, b2b_ref,
                      w3_ref, b3_ref, w4_ref, b4_ref,
                      o_ref):
    """Process one (tm)-node row tile containing whole graphs only.

    a_ref : (tm, tm)  f32 diagonal block of (A + I)      -- streamed per grid step
    x_ref : (tm, F)   f32 node-feature tile              -- streamed per grid step
    w*/b* : BN-folded / lane-padded weights (128-wide)   -- constant index_map, resident
    o_ref : (graphs_per_tile, F) f32 graph-level outputs
    """
    a = a_ref[...]
    h = x_ref[...]

    def conv(h, w1, b1, w2, b2):
        # Aggregation (self term folded into A+I); graphs are tile-local so the
        # diagonal block is the full neighborhood.
        agg = jnp.dot(a, h, preferred_element_type=jnp.float32)
        # MLP([*, hidden, hidden]) with BN(eval) pre-folded into w1/b1.
        z = jnp.dot(agg, w1[...], preferred_element_type=jnp.float32) + b1[...]
        z = jnp.maximum(z, 0.0)
        z = jnp.dot(z, w2[...], preferred_element_type=jnp.float32) + b2[...]
        # outer .relu() in GIN.forward
        return jnp.maximum(z, 0.0)

    h = conv(h, w1a_ref, b1a_ref, w2a_ref, b2a_ref)
    h = conv(h, w1b_ref, b1b_ref, w2b_ref, b2b_ref)

    # global_add_pool: per-graph reduction (graphs are contiguous inside the tile).
    tm, f = h.shape
    g = h.reshape(tm // nodes_per_graph, nodes_per_graph, f).sum(axis=1)

    # Final MLP([hidden, hidden, out], norm=None). Dropout(0.5) is identity in eval.
    # TODO(synk): dropout is only active in training mode; eval semantics implemented here.
    z = jnp.dot(g, w3_ref[...], preferred_element_type=jnp.float32) + b3_ref[...]
    z = jnp.maximum(z, 0.0)
    o_ref[...] = jnp.dot(z, w4_ref[...], preferred_element_type=jnp.float32) + b4_ref[...]


# ----------------------------------------------------------------------------
# Wrapper
# ----------------------------------------------------------------------------
@functools.partial(jax.jit, static_argnames=("nodes_per_graph", "out_channels", "tm"))
def gin_forward(x_pad, a_hat, padded_params, *, nodes_per_graph, out_channels, tm=256):
    N, F = x_pad.shape
    assert N % tm == 0, "node count must be a multiple of the row tile"
    assert tm % nodes_per_graph == 0, "graphs must not straddle a row tile"
    num_tiles = N // tm
    graphs_per_tile = tm // nodes_per_graph
    G = N // nodes_per_graph
    # Lane-dense / sublane-aligned output block (graphs_per_tile, 128).
    assert graphs_per_tile % 8 == 0 or graphs_per_tile == G

    w_spec = pl.BlockSpec((F, F), lambda i: (0, 0))   # resident across the grid
    b_spec = pl.BlockSpec((1, F), lambda i: (0, 0))

    out_pad = pl.pallas_call(
        functools.partial(_gin_fused_kernel, nodes_per_graph),
        out_shape=jax.ShapeDtypeStruct((G, F), jnp.float32),
        grid=(num_tiles,),
        in_specs=[
            # Diagonal (tm, tm) block of A+I only — block-diagonal adjacency.
            pl.BlockSpec((tm, tm), lambda i: (i, i)),
            # Matching node-feature row tile.
            pl.BlockSpec((tm, F), lambda i: (i, 0)),
            w_spec, b_spec, w_spec, b_spec,   # conv1 MLP (BN folded into w1/b1)
            w_spec, b_spec, w_spec, b_spec,   # conv2 MLP
            w_spec, b_spec, w_spec, b_spec,   # readout MLP
        ],
        out_specs=pl.BlockSpec((graphs_per_tile, F), lambda i: (i, 0)),
        compiler_params=pltpu.CompilerParams(
            dimension_semantics=("parallel",)),
    )(a_hat, x_pad, *padded_params)

    return out_pad[:, :out_channels]


# ----------------------------------------------------------------------------
# Pure-JAX reference (mirrors the PyTorch module, unfolded / unpadded params)
# ----------------------------------------------------------------------------
def gin_reference(x, adj, pool, params):
    (w1a, b1a, s1a, t1a, w2a, b2a,
     w1b, b1b, s1b, t1b, w2b, b2b,
     w3, b3, w4, b4) = params

    def conv(h, w1, b1, s1, t1, w2, b2):
        agg = adj @ h + h
        z = jnp.maximum((agg @ w1 + b1) * s1 + t1, 0.0)
        return jnp.maximum(z @ w2 + b2, 0.0)

    h = conv(x, w1a, b1a, s1a, t1a, w2a, b2a)
    h = conv(h, w1b, b1b, s1b, t1b, w2b, b2b)
    g = pool @ h
    return jnp.maximum(g @ w3 + b3, 0.0) @ w4 + b4


# ----------------------------------------------------------------------------
# Host-side padding / folding helpers
# ----------------------------------------------------------------------------
def pad2(a, rows, cols):
    return jnp.zeros((rows, cols), jnp.float32).at[:a.shape[0], :a.shape[1]].set(a)


if __name__ == "__main__":
    NODES_PER_GRAPH = 32
    G = 32                    # graphs per call (grid of 4 parallel row tiles; scales freely)
    N = G * NODES_PER_GRAPH   # 1024 nodes
    in_channels = 16
    hidden_channels = 32
    out_channels = 8
    F_PAD = 128               # lane-dense feature width
    TM = 256                  # 256 fills v6e/v7x MXU rows; use 128 on v5e

    key = jax.random.PRNGKey(0)
    keys = jax.random.split(key, 8)

    # Node features.
    x = jax.random.normal(keys[0], (N, in_channels), dtype=jnp.float32)

    # Deterministic edge_index: within each graph, a ring plus a skip-2 ring.
    src, dst = [], []
    for g in range(G):
        base = g * NODES_PER_GRAPH
        for i in range(NODES_PER_GRAPH):
            src.append(base + i); dst.append(base + (i + 1) % NODES_PER_GRAPH)
            src.append(base + i); dst.append(base + (i + 2) % NODES_PER_GRAPH)
    src = jnp.array(src, dtype=jnp.int32)
    dst = jnp.array(dst, dtype=jnp.int32)

    # Dense adjacency: A[i, j] = #edges j -> i  (message x_j aggregated into node i).
    adj = jnp.zeros((N, N), dtype=jnp.float32).at[dst, src].add(1.0)

    # batch assignment -> pooling matrix P (G, N)  (reference only; kernel pools in-tile).
    batch = jnp.repeat(jnp.arange(G, dtype=jnp.int32), NODES_PER_GRAPH)
    pool = (batch[None, :] == jnp.arange(G, dtype=jnp.int32)[:, None]).astype(jnp.float32)

    # Verify the block-diagonal assumption the kernel's index_map relies on.
    adj_np = np.asarray(adj)
    offdiag_mask = 1.0 - np.kron(np.eye(N // TM), np.ones((TM, TM)))
    assert np.all(adj_np * offdiag_mask == 0.0), "graphs straddle a row tile"

    def lin(k, fan_in, fan_out):
        scale = 1.0 / np.sqrt(fan_in)
        kw, kb = jax.random.split(k)
        w = jax.random.uniform(kw, (fan_in, fan_out), jnp.float32, -scale, scale)
        b = jax.random.uniform(kb, (1, fan_out), jnp.float32, -scale, scale)
        return w, b

    # GINConv layer 1 MLP: Linear(in->h), BN(h), Linear(h->h)
    w1a, b1a = lin(keys[1], in_channels, hidden_channels)
    w2a, b2a = lin(keys[2], hidden_channels, hidden_channels)
    # GINConv layer 2 MLP: Linear(h->h), BN(h), Linear(h->h)
    w1b, b1b = lin(keys[3], hidden_channels, hidden_channels)
    w2b, b2b = lin(keys[4], hidden_channels, hidden_channels)
    # Final MLP: Linear(h->h), Linear(h->out)
    w3, b3 = lin(keys[5], hidden_channels, hidden_channels)
    w4, b4 = lin(keys[6], hidden_channels, out_channels)

    # BatchNorm1d (eval): gamma=1, beta=0, running_mean=0, running_var=1, eps=1e-5.
    bn_eps = 1e-5
    gamma = jnp.ones((1, hidden_channels), jnp.float32)
    beta = jnp.zeros((1, hidden_channels), jnp.float32)
    rmean = jnp.zeros((1, hidden_channels), jnp.float32)
    rvar = jnp.ones((1, hidden_channels), jnp.float32)
    bn_scale = gamma / jnp.sqrt(rvar + bn_eps)
    bn_shift = beta - rmean * bn_scale
    s1a, t1a = bn_scale, bn_shift
    s1b, t1b = bn_scale, bn_shift

    ref_params = (w1a, b1a, s1a, t1a, w2a, b2a,
                  w1b, b1b, s1b, t1b, w2b, b2b,
                  w3, b3, w4, b4)

    # ---- Host-side folding + padding for the kernel -------------------------
    # Fold BN(eval) affine into the first Linear of each conv.
    w1a_f, b1a_f = w1a * s1a, b1a * s1a + t1a
    w1b_f, b1b_f = w1b * s1b, b1b * s1b + t1b

    # Fold the self term into the adjacency; keep f32 for bit-parity with the
    # reference (block-diagonal streaming makes its DMA bytes trivial).
    a_hat = adj + jnp.eye(N, dtype=jnp.float32)

    # Zero-pad all feature dims to 128 lanes (padded lanes stay exactly zero
    # through every Linear/ReLU because padded weight rows/cols and biases are zero).
    x_pad = pad2(x, N, F_PAD)
    padded_params = (
        pad2(w1a_f, F_PAD, F_PAD), pad2(b1a_f, 1, F_PAD),
        pad2(w2a, F_PAD, F_PAD), pad2(b2a, 1, F_PAD),
        pad2(w1b_f, F_PAD, F_PAD), pad2(b1b_f, 1, F_PAD),
        pad2(w2b, F_PAD, F_PAD), pad2(b2b, 1, F_PAD),
        pad2(w3, F_PAD, F_PAD), pad2(b3, 1, F_PAD),
        pad2(w4, F_PAD, F_PAD), pad2(b4, 1, F_PAD),
    )

    out = gin_forward(x_pad, a_hat, padded_params,
                      nodes_per_graph=NODES_PER_GRAPH,
                      out_channels=out_channels, tm=TM)
    out = jax.block_until_ready(out)

    ref = gin_reference(x, adj, pool, ref_params)
    assert out.shape == (G, out_channels)
    np.testing.assert_allclose(np.asarray(out), np.asarray(ref), rtol=1e-4, atol=1e-4)

    print("KERNEL_OK")
</pallas_src>

<mosaic_0001>
module attributes {stable_mosaic.version = 11 : i64} {
  func.func @_gin_fused_kernel(%arg0: i32, %arg1: memref<256x256xf32, #tpu.memory_space<vmem>>, %arg2: memref<256x128xf32, #tpu.memory_space<vmem>>, %arg3: memref<128x128xf32, #tpu.memory_space<vmem>>, %arg4: memref<1x128xf32, #tpu.memory_space<vmem>>, %arg5: memref<128x128xf32, #tpu.memory_space<vmem>>, %arg6: memref<1x128xf32, #tpu.memory_space<vmem>>, %arg7: memref<128x128xf32, #tpu.memory_space<vmem>>, %arg8: memref<1x128xf32, #tpu.memory_space<vmem>>, %arg9: memref<128x128xf32, #tpu.memory_space<vmem>>, %arg10: memref<1x128xf32, #tpu.memory_space<vmem>>, %arg11: memref<128x128xf32, #tpu.memory_space<vmem>>, %arg12: memref<1x128xf32, #tpu.memory_space<vmem>>, %arg13: memref<128x128xf32, #tpu.memory_space<vmem>>, %arg14: memref<1x128xf32, #tpu.memory_space<vmem>>, %arg15: memref<8x128xf32, #tpu.memory_space<vmem>>) attributes {dimension_semantics = [#tpu.dimension_semantics<parallel>], iteration_bounds = array<i64: 4>, scalar_prefetch = 0 : i64, scratch_operands = 0 : i64, tpu.core_type = #tpu.core_type<tc>, window_params = [{transform_indices = @transform_0, window_bounds = array<i64: 256, 256>}, {transform_indices = @transform_1, window_bounds = array<i64: 256, 128>}, {pipeline_mode = #tpu.pipeline_mode<synchronous>, transform_indices = @transform_2, window_bounds = array<i64: 128, 128>}, {pipeline_mode = #tpu.pipeline_mode<synchronous>, transform_indices = @transform_3, window_bounds = array<i64: 1, 128>}, {pipeline_mode = #tpu.pipeline_mode<synchronous>, transform_indices = @transform_4, window_bounds = array<i64: 128, 128>}, {pipeline_mode = #tpu.pipeline_mode<synchronous>, transform_indices = @transform_5, window_bounds = array<i64: 1, 128>}, {pipeline_mode = #tpu.pipeline_mode<synchronous>, transform_indices = @transform_6, window_bounds = array<i64: 128, 128>}, {pipeline_mode = #tpu.pipeline_mode<synchronous>, transform_indices = @transform_7, window_bounds = array<i64: 1, 128>}, {pipeline_mode = #tpu.pipeline_mode<synchronous>, transform_indices = @transform_8, window_bounds = array<i64: 128, 128>}, {pipeline_mode = #tpu.pipeline_mode<synchronous>, transform_indices = @transform_9, window_bounds = array<i64: 1, 128>}, {pipeline_mode = #tpu.pipeline_mode<synchronous>, transform_indices = @transform_10, window_bounds = array<i64: 128, 128>}, {pipeline_mode = #tpu.pipeline_mode<synchronous>, transform_indices = @transform_11, window_bounds = array<i64: 1, 128>}, {pipeline_mode = #tpu.pipeline_mode<synchronous>, transform_indices = @transform_12, window_bounds = array<i64: 128, 128>}, {pipeline_mode = #tpu.pipeline_mode<synchronous>, transform_indices = @transform_13, window_bounds = array<i64: 1, 128>}, {transform_indices = @transform_14, window_bounds = array<i64: 8, 128>}]} {
    %c0 = arith.constant 0 : index
    %c0_0 = arith.constant 0 : index
    %0 = vector.load %arg1[%c0, %c0_0] : memref<256x256xf32, #tpu.memory_space<vmem>>, vector<256x256xf32>
    %c0_1 = arith.constant 0 : index
    %c0_2 = arith.constant 0 : index
    %1 = vector.load %arg2[%c0_1, %c0_2] : memref<256x128xf32, #tpu.memory_space<vmem>>, vector<256x128xf32>
    %cst = arith.constant dense<0.000000e+00> : vector<256x128xf32>
    %2 = tpu.matmul %0, %1, %cst {dimension_numbers = #tpu.dot_dimension_numbers<[1], [0], [0], [1], [0, 0, 1, 1], [], []>} : vector<256x256xf32>, vector<256x128xf32>, vector<256x128xf32> -> vector<256x128xf32>
    %c0_3 = arith.constant 0 : index
    %c0_4 = arith.constant 0 : index
    %3 = vector.load %arg3[%c0_3, %c0_4] : memref<128x128xf32, #tpu.memory_space<vmem>>, vector<128x128xf32>
    %cst_5 = arith.constant dense<0.000000e+00> : vector<256x128xf32>
    %4 = tpu.matmul %2, %3, %cst_5 {dimension_numbers = #tpu.dot_dimension_numbers<[1], [0], [0], [1], [0, 0, 1, 1], [], []>} : vector<256x128xf32>, vector<128x128xf32>, vector<256x128xf32> -> vector<256x128xf32>
    %c0_6 = arith.constant 0 : index
    %c0_7 = arith.constant 0 : index
    %5 = vector.load %arg4[%c0_6, %c0_7] : memref<1x128xf32, #tpu.memory_space<vmem>>, vector<1x128xf32>
    %6 = vector.broadcast %5 : vector<1x128xf32> to vector<256x128xf32>
    %7 = arith.addf %4, %6 : vector<256x128xf32>
    %cst_8 = arith.constant 0.000000e+00 : f32
    %8 = vector.broadcast %cst_8 : f32 to vector<256x128xf32>
    %9 = arith.maximumf %7, %8 : vector<256x128xf32>
    %c0_9 = arith.constant 0 : index
    %c0_10 = arith.constant 0 : index
    %10 = vector.load %arg5[%c0_9, %c0_10] : memref<128x128xf32, #tpu.memory_space<vmem>>, vector<128x128xf32>
    %cst_11 = arith.constant dense<0.000000e+00> : vector<256x128xf32>
    %11 = tpu.matmul %9, %10, %cst_11 {dimension_numbers = #tpu.dot_dimension_numbers<[1], [0], [0], [1], [0, 0, 1, 1], [], []>} : vector<256x128xf32>, vector<128x128xf32>, vector<256x128xf32> -> vector<256x128xf32>
    %c0_12 = arith.constant 0 : index
    %c0_13 = arith.constant 0 : index
    %12 = vector.load %arg6[%c0_12, %c0_13] : memref<1x128xf32, #tpu.memory_space<vmem>>, vector<1x128xf32>
    %13 = vector.broadcast %12 : vector<1x128xf32> to vector<256x128xf32>
    %14 = arith.addf %11, %13 : vector<256x128xf32>
    %cst_14 = arith.constant 0.000000e+00 : f32
    %15 = vector.broadcast %cst_14 : f32 to vector<256x128xf32>
    %16 = arith.maximumf %14, %15 : vector<256x128xf32>
    %cst_15 = arith.constant dense<0.000000e+00> : vector<256x128xf32>
    %17 = tpu.matmul %0, %16, %cst_15 {dimension_numbers = #tpu.dot_dimension_numbers<[1], [0], [0], [1], [0, 0, 1, 1], [], []>} : vector<256x256xf32>, vector<256x128xf32>, vector<256x128xf32> -> vector<256x128xf32>
    %c0_16 = arith.constant 0 : index
    %c0_17 = arith.constant 0 : index
    %18 = vector.load %arg7[%c0_16, %c0_17] : memref<128x128xf32, #tpu.memory_space<vmem>>, vector<128x128xf32>
    %cst_18 = arith.constant dense<0.000000e+00> : vector<256x128xf32>
    %19 = tpu.matmul %17, %18, %cst_18 {dimension_numbers = #tpu.dot_dimension_numbers<[1], [0], [0], [1], [0, 0, 1, 1], [], []>} : vector<256x128xf32>, vector<128x128xf32>, vector<256x128xf32> -> vector<256x128xf32>
    %c0_19 = arith.constant 0 : index
    %c0_20 = arith.constant 0 : index
    %20 = vector.load %arg8[%c0_19, %c0_20] : memref<1x128xf32, #tpu.memory_space<vmem>>, vector<1x128xf32>
    %21 = vector.broadcast %20 : vector<1x128xf32> to vector<256x128xf32>
    %22 = arith.addf %19, %21 : vector<256x128xf32>
    %cst_21 = arith.constant 0.000000e+00 : f32
    %23 = vector.broadcast %cst_21 : f32 to vector<256x128xf32>
    %24 = arith.maximumf %22, %23 : vector<256x128xf32>
    %c0_22 = arith.constant 0 : index
    %c0_23 = arith.constant 0 : index
    %25 = vector.load %arg9[%c0_22, %c0_23] : memref<128x128xf32, #tpu.memory_space<vmem>>, vector<128x128xf32>
    %cst_24 = arith.constant dense<0.000000e+00> : vector<256x128xf32>
    %26 = tpu.matmul %24, %25, %cst_24 {dimension_numbers = #tpu.dot_dimension_numbers<[1], [0], [0], [1], [0, 0, 1, 1], [], []>} : vector<256x128xf32>, vector<128x128xf32>, vector<256x128xf32> -> vector<256x128xf32>
    %c0_25 = arith.constant 0 : index
    %c0_26 = arith.constant 0 : index
    %27 = vector.load %arg10[%c0_25, %c0_26] : memref<1x128xf32, #tpu.memory_space<vmem>>, vector<1x128xf32>
    %28 = vector.broadcast %27 : vector<1x128xf32> to vector<256x128xf32>
    %29 = arith.addf %26, %28 : vector<256x128xf32>
    %cst_27 = arith.constant 0.000000e+00 : f32
    %30 = vector.broadcast %cst_27 : f32 to vector<256x128xf32>
    %31 = arith.maximumf %29, %30 : vector<256x128xf32>
    %32 = vector.shape_cast %31 : vector<256x128xf32> to vector<8x32x128xf32>
    %cst_28 = arith.constant dense<0.000000e+00> : vector<8x128xf32>
    %33 = vector.multi_reduction <add>, %32, %cst_28 [1] : vector<8x32x128xf32> to vector<8x128xf32>
    %c0_29 = arith.constant 0 : index
    %c0_30 = arith.constant 0 : index
    %34 = vector.load %arg11[%c0_29, %c0_30] : memref<128x128xf32, #tpu.memory_space<vmem>>, vector<128x128xf32>
    %cst_31 = arith.constant dense<0.000000e+00> : vector<8x128xf32>
    %35 = tpu.matmul %33, %34, %cst_31 {dimension_numbers = #tpu.dot_dimension_numbers<[1], [0], [0], [1], [0, 0, 1, 1], [], []>} : vector<8x128xf32>, vector<128x128xf32>, vector<8x128xf32> -> vector<8x128xf32>
    %c0_32 = arith.constant 0 : index
    %c0_33 = arith.constant 0 : index
    %36 = vector.load %arg12[%c0_32, %c0_33] : memref<1x128xf32, #tpu.memory_space<vmem>>, vector<1x128xf32>
    %37 = vector.broadcast %36 : vector<1x128xf32> to vector<8x128xf32>
    %38 = arith.addf %35, %37 : vector<8x128xf32>
    %cst_34 = arith.constant 0.000000e+00 : f32
    %39 = vector.broadcast %cst_34 : f32 to vector<8x128xf32>
    %40 = arith.maximumf %38, %39 : vector<8x128xf32>
    %c0_35 = arith.constant 0 : index
    %c0_36 = arith.constant 0 : index
    %41 = vector.load %arg13[%c0_35, %c0_36] : memref<128x128xf32, #tpu.memory_space<vmem>>, vector<128x128xf32>
    %cst_37 = arith.constant dense<0.000000e+00> : vector<8x128xf32>
    %42 = tpu.matmul %40, %41, %cst_37 {dimension_numbers = #tpu.dot_dimension_numbers<[1], [0], [0], [1], [0, 0, 1, 1], [], []>} : vector<8x128xf32>, vector<128x128xf32>, vector<8x128xf32> -> vector<8x128xf32>
    %c0_38 = arith.constant 0 : index
    %c0_39 = arith.constant 0 : index
    %43 = vector.load %arg14[%c0_38, %c0_39] : memref<1x128xf32, #tpu.memory_space<vmem>>, vector<1x128xf32>
    %44 = vector.broadcast %43 : vector<1x128xf32> to vector<8x128xf32>
    %45 = arith.addf %42, %44 : vector<8x128xf32>
    %c0_40 = arith.constant 0 : index
    %c0_41 = arith.constant 0 : index
    %46 = vector.load %arg15[%c0_40, %c0_41] : memref<8x128xf32, #tpu.memory_space<vmem>>, vector<8x128xf32>
    tpu.vector_store %arg15[%c0_40, %c0_41], %45 {strides = array<i32>} : memref<8x128xf32, #tpu.memory_space<vmem>>, vector<8x128xf32>,
    return
  }
  func.func @transform_0(%arg0: i32) -> (i32, i32) {
    %c0_i32 = arith.constant 0 : i32
    return %arg0, %arg0 : i32, i32
  }
  func.func @transform_1(%arg0: i32) -> (i32, i32) {
    %c0_i32 = arith.constant 0 : i32
    %c0_i32_0 = arith.constant 0 : i32
    return %arg0, %c0_i32 : i32, i32
  }
  func.func @transform_2(%arg0: i32) -> (i32, i32) {
    %c0_i32 = arith.constant 0 : i32
    %c0_i32_0 = arith.constant 0 : i32
    %c0_i32_1 = arith.constant 0 : i32
    return %c0_i32, %c0_i32_0 : i32, i32
  }
  func.func @transform_3(%arg0: i32) -> (i32, i32) {
    %c0_i32 = arith.constant 0 : i32
    %c0_i32_0 = arith.constant 0 : i32
    %c0_i32_1 = arith.constant 0 : i32
    return %c0_i32, %c0_i32_0 : i32, i32
  }
  func.func @transform_4(%arg0: i32) -> (i32, i32) {
    %c0_i32 = arith.constant 0 : i32
    %c0_i32_0 = arith.constant 0 : i32
    %c0_i32_1 = arith.constant 0 : i32
    return %c0_i32, %c0_i32_0 : i32, i32
  }
  func.func @transform_5(%arg0: i32) -> (i32, i32) {
    %c0_i32 = arith.constant 0 : i32
    %c0_i32_0 = arith.constant 0 : i32
    %c0_i32_1 = arith.constant 0 : i32
    return %c0_i32, %c0_i32_0 : i32, i32
  }
  func.func @transform_6(%arg0: i32) -> (i32, i32) {
    %c0_i32 = arith.constant 0 : i32
    %c0_i32_0 = arith.constant 0 : i32
    %c0_i32_1 = arith.constant 0 : i32
    return %c0_i32, %c0_i32_0 : i32, i32
  }
  func.func @transform_7(%arg0: i32) -> (i32, i32) {
    %c0_i32 = arith.constant 0 : i32
    %c0_i32_0 = arith.constant 0 : i32
    %c0_i32_1 = arith.constant 0 : i32
    return %c0_i32, %c0_i32_0 : i32, i32
  }
  func.func @transform_8(%arg0: i32) -> (i32, i32) {
    %c0_i32 = arith.constant 0 : i32
    %c0_i32_0 = arith.constant 0 : i32
    %c0_i32_1 = arith.constant 0 : i32
    return %c0_i32, %c0_i32_0 : i32, i32
  }
  func.func @transform_9(%arg0: i32) -> (i32, i32) {
    %c0_i32 = arith.constant 0 : i32
    %c0_i32_0 = arith.constant 0 : i32
    %c0_i32_1 = arith.constant 0 : i32
    return %c0_i32, %c0_i32_0 : i32, i32
  }
  func.func @transform_10(%arg0: i32) -> (i32, i32) {
    %c0_i32 = arith.constant 0 : i32
    %c0_i32_0 = arith.constant 0 : i32
    %c0_i32_1 = arith.constant 0 : i32
    return %c0_i32, %c0_i32_0 : i32, i32
  }
  func.func @transform_11(%arg0: i32) -> (i32, i32) {
    %c0_i32 = arith.constant 0 : i32
    %c0_i32_0 = arith.constant 0 : i32
    %c0_i32_1 = arith.constant 0 : i32
    return %c0_i32, %c0_i32_0 : i32, i32
  }
  func.func @transform_12(%arg0: i32) -> (i32, i32) {
    %c0_i32 = arith.constant 0 : i32
    %c0_i32_0 = arith.constant 0 : i32
    %c0_i32_1 = arith.constant 0 : i32
    return %c0_i32, %c0_i32_0 : i32, i32
  }
  func.func @transform_13(%arg0: i32) -> (i32, i32) {
    %c0_i32 = arith.constant 0 : i32
    %c0_i32_0 = arith.constant 0 : i32
    %c0_i32_1 = arith.constant 0 : i32
    return %c0_i32, %c0_i32_0 : i32, i32
  }
  func.func @transform_14(%arg0: i32) -> (i32, i32) {
    %c0_i32 = arith.constant 0 : i32
    %c0_i32_0 = arith.constant 0 : i32
    return %arg0, %c0_i32 : i32, i32
  }
}

</mosaic_0001>

<bundles_post_ra>
// kernel: gin_forward.1
= control target key start
LH: loop header
LB: loop body
LE: loop exit
PB: predicated region body
PF: predicated region fallthrough
CT: control target
= control target key end

     0   :  { %s5508_s0 = inlined_call_operand.hbm [shape: f32[1024,1024], index: 0, kind: input, shape index: {}]   ;;  %s5509_s1 = inlined_call_operand.hbm [shape: f32[1024,128], index: 1, kind: input, shape index: {}]   ;;  %s5510_s2 = inlined_call_operand.hbm [shape: f32[128,128], index: 2, kind: input, shape index: {}]   ;;  %s5511_s3 = inlined_call_operand.hbm [shape: f32[1,128], index: 3, kind: input, shape index: {}]   ;;  %s5512_s4 = inlined_call_operand.hbm [shape: f32[128,128], index: 4, kind: input, shape index: {}]   ;;  %s5513_s5 = inlined_call_operand.hbm [shape: f32[1,128], index: 5, kind: input, shape index: {}]   ;;  %s5514_s6 = inlined_call_operand.hbm [shape: f32[128,128], index: 6, kind: input, shape index: {}]   ;;  %s5515_s7 = inlined_call_operand.hbm [shape: f32[1,128], index: 7, kind: input, shape index: {}]   ;;  %s5516_s8 = inlined_call_operand.hbm [shape: f32[128,128], index: 8, kind: input, shape index: {}]   ;;  %s5517_s9 = inlined_call_operand.hbm [shape: f32[1,128], index: 9, kind: input, shape index: {}]   ;;  %s5518_s10 = inlined_call_operand.hbm [shape: f32[128,128], index: 10, kind: input, shape index: {}]   ;;  %s5519_s11 = inlined_call_operand.hbm [shape: f32[1,128], index: 11, kind: input, shape index: {}]   ;;  %s5520_s12 = inlined_call_operand.hbm [shape: f32[128,128], index: 12, kind: input, shape index: {}]   ;;  %s5521_s13 = inlined_call_operand.hbm [shape: f32[1,128], index: 13, kind: input, shape index: {}]   ;;  %s5522_s14 = inlined_call_operand.vmem [shape: f32[32,128], index: 14, kind: output, shape index: {}]  }
   0x1   :  { %5540 = sst [smem:[#allocation39_spill]] %s5508_s0 }
   0x2   :  { %5541 = sst [smem:[#allocation40_spill]] %s5509_s1 }
   0x3   :  { %5542 = sst [smem:[#allocation41_spill]] %s5510_s2 }
   0x4   :  { %5543 = sst [smem:[#allocation42_spill]] %s5511_s3 }
   0x5   :  { %5544 = sst [smem:[#allocation43_spill]] %s5512_s4 }
   0x6   :  { %5545 = sst [smem:[#allocation44_spill]] %s5513_s5 }
   0x7   :  { %5546 = sst [smem:[#allocation45_spill]] %s5514_s6 }
   0x8   :  { %5547 = sst [smem:[#allocation46_spill]] %s5515_s7 }
   0x9   :  { %5548 = sst [smem:[#allocation47_spill]] %s5516_s8 }
   0xa   :  { %5549 = sst [smem:[#allocation48_spill]] %s5517_s9 }
   0xb   :  { %5550 = sst [smem:[#allocation49_spill]] %s5522_s14 }
   0xc   :  { %19 = vsyncpa [#allocation3], 0 }
   0xd   :  { %21 = vsyncpa [#allocation3 + $0x1], 0 }
   0xe   :  { %22 = vsyncpa [#allocation5], 0 }
   0xf   :  { %24 = vsyncpa [#allocation5 + $0x1], 0 }
  0x10   :  { %25 = vsyncpa [#allocation8], 0 }
  0x11   :  { %26 = vsyncpa [#allocation11], 0 }
  0x12   :  { %27 = vsyncpa [#allocation14], 0 }
  0x13   :  { %28 = vsyncpa [#allocation17], 0 }
  0x14   :  { %29 = vsyncpa [#allocation20], 0 }
  0x15   :  { %30 = vsyncpa [#allocation23], 0  ;;  %s4632_s29 = smov 0   ;;  %s4634_s30 = smov 0  }
  0x16   :  { %s4636_s15 = smov 0   ;;  %s4638_s16 = smov 0  }
  0x17   :  { %s4640_s17 = smov 0   ;;  %s4642_s18 = smov 0  }
  0x18   :  { %s4644_s19 = smov 0  }
  0x19 LB: > { %5551 = sst [smem:[#allocation33_spill]] %s4509_s29  ;;  %s4535_s20 = smov [#allocation6]   ;;  %s4533_s19 = sphi %s4644_s19, %s5612_s19   ;;  %s4529_s18 = sphi %s4642_s18, %s5611_s18   ;;  %s4525_s17 = sphi %s4640_s17, %s5610_s17   ;;  %s4521_s16 = sphi %s4638_s16, %s5609_s16   ;;  %s4517_s15 = sphi %s4636_s15, %s5608_s15   ;;  %s4513_s30 = sphi %s4634_s30, %s5607_s30   ;;  %s4509_s29 = sphi %s4632_s29, %s5606_s29  }
  0x1a   : > { %5552 = sst [smem:[#allocation34_spill]] %s4513_s30  ;;  %s385_s21 = sshll.u32 %s4535_s20, 4  ;;  %s4673_s21 = int_to_ptr.vmem [resolvable:$true] %s385_s21 }
  0x1b   : > { %5553 = sst [smem:[#allocation35_spill]] %s4517_s15  ;;  %s4668_s22 = sadd.s32 4294967295, %s4533_s19  }
  0x1c   : > { %5554 = sst [smem:[#allocation36_spill]] %s4521_s16  ;;  %p2851_p0 = scmp.ge.s32.totalorder %s4533_s19, 1 }
  0x1d   : > { %5555 = sst [smem:[#allocation37_spill]] %s4668_s22  ;;  %p5533_p1 = scmp.eq.s32.totalorder %s4668_s22, 0 }
  0x1e   : > { %p373_p2 = scmp.lt.s32.totalorder %s4533_s19, 5  ;;  %s4536_s24 = smov [#allocation7]  }
  0x1f   : > { %s399_s25 = sshll.u32 %s4536_s24, 4  ;;  %s4537_s27 = smov [#allocation10]   ;;  %s4687_s25 = int_to_ptr.vmem [resolvable:$true] %s399_s25 }
  0x20   : > { %p4675_p3 = pnand %p2851_p0, %p373_p2  ;;  %s423_s28 = sshll.u32 %s4537_s27, 4  ;;  %s4689_s28 = int_to_ptr.vmem [resolvable:$true] %s423_s28 }
  0x21   : > { %s5559_s2 = sld [smem:[#allocation41_spill]] }
  0x22   : > { %s5556_s23 = scalar_select %p4675_p3, 1, 0 }
  0x23   : > { %p3839_p4 = pneg %p4675_p3 }
  0x24   : > { %5557 = sst [smem:[#allocation38_spill]] %s5556_s23 }
  0x25   : > { %p4683_p5 = pnand %p3839_p4, %p5533_p1 }
  0x27   : > { %s4047_s1 = scalar_lea.hbm %s5559_s2, 2048  ;;  %p4699_p7 = pneg %p4683_p5 }
  0x28   : > { %p4048_p6 = scmp.ne.s32.totalorder %s5559_s2, %s4047_s1  ;;  %p4054_p10 = scmp.lt.u32.totalorder %s4047_s1, %s5559_s2 }
  0x2a   : > { %p4050_p8 = pnand %p4699_p7, %p4048_p6 }
  0x2c   : > { %p4051_p9 = pneg %p4050_p8 }
  0x2e   : > { %p4056_p11 = pnand %p4054_p10, %p4051_p9 }
  0x30   : > { %4059 = shalt.err (!%p4056_p11)
}
  0x31   : > { %s4060_s14 = scalar_lea.vmem %s4673_s21, 2048  ;;  %p4068_p2 = scmp.lt.s32.totalorder %s4673_s21, %s4673_s21 }
  0x32   : > { %p4061_p12 = scmp.ne.s32.totalorder %s4673_s21, %s4060_s14  ;;  %p4069_p4 = scmp.lt.s32.totalorder %s4060_s14, %s4060_s14 }
  0x34   : > { %p4063_p13 = pnand %p4061_p12, %p4699_p7  ;;  %p4070_p6 = por %p4069_p4, %p4068_p2 }
  0x36   : > { %p4064_p0 = pneg %p4063_p13 }
  0x38   : > { %p4071_p8 = pnand %p4070_p6, %p4064_p0 }
  0x3a   : > { %4074 = shalt.err (!%p4071_p8)
}
  0x3b   : > { %s5531_s29 = smov 128   ;;  %s5535_s1 = smov 8  }
  0x3c   : > { %3842 = dma.hbm_to_vmem [thread:$0]  (!%p4683_p5), %s5559_s2, 2048, %s4673_s21, [#allocation5], %s5531_s29, %s5531_s29, %s5535_s1  }
  0x3d   : > { %s5561_s3 = sld [smem:[#allocation42_spill]] }
  0x43   : > { %s4075_s14 = scalar_lea.hbm %s5561_s3, 16 }
  0x44   : > { %p4076_p9 = scmp.ne.s32.totalorder %s5561_s3, %s4075_s14  ;;  %p4082_p12 = scmp.lt.u32.totalorder %s4075_s14, %s5561_s3 }
  0x46   : > { %p4078_p10 = pnand %p4076_p9, %p4699_p7 }
  0x48   : > { %p4079_p11 = pneg %p4078_p10 }
  0x4a   : > { %p4084_p13 = pnand %p4082_p12, %p4079_p11 }
  0x4c   : > { %4087 = shalt.err (!%p4084_p13)
}
  0x4d   : > { %s4088_s21 = scalar_lea.vmem %s4687_s25, 16  ;;  %s4095_s0 = scalar_lea.vmem %s4687_s25, 32 }
  0x4e   : > { %p4089_p0 = scmp.ne.s32.totalorder %s4687_s25, %s4088_s21  ;;  %p4096_p6 = scmp.lt.s32.totalorder %s4687_s25, %s4687_s25 }
  0x4f   : > { %p4097_p8 = scmp.lt.s32.totalorder %s4095_s0, %s4088_s21 }
  0x50   : > { %p4091_p2 = pnand %p4089_p0, %p4699_p7 }
  0x51   : > { %p4098_p9 = por %p4097_p8, %p4096_p6 }
  0x52   : > { %p4092_p4 = pneg %p4091_p2 }
  0x54   : > { %p4099_p10 = pnand %p4098_p9, %p4092_p4 }
  0x56   : > { %4102 = shalt.err (!%p4099_p10)
}
  0x57   : > { %3845 = dma.hbm_to_vmem [thread:$0]  (!%p4683_p5), %s5561_s3, 16, %s4687_s25, [#allocation8]  }
  0x58   : > { %s5562_s5 = sld [smem:[#allocation44_spill]] }
  0x5e   : > { %s4103_s23 = scalar_lea.hbm %s5562_s5, 16 }
  0x5f   : > { %p4104_p11 = scmp.ne.s32.totalorder %s5562_s5, %s4103_s23  ;;  %p4110_p0 = scmp.lt.u32.totalorder %s4103_s23, %s5562_s5 }
  0x61   : > { %p4106_p12 = pnand %p4104_p11, %p4699_p7 }
  0x63   : > { %p4107_p13 = pneg %p4106_p12 }
  0x65   : > { %p4112_p2 = pnand %p4110_p0, %p4107_p13 }
  0x67   : > { %4115 = shalt.err (!%p4112_p2)
}
  0x68   : > { %s4116_s25 = scalar_lea.vmem %s4689_s28, 16  ;;  %s4123_s0 = scalar_lea.vmem %s4689_s28, 32 }
  0x69   : > { %p4117_p4 = scmp.ne.s32.totalorder %s4689_s28, %s4116_s25  ;;  %p4124_p9 = scmp.lt.s32.totalorder %s4689_s28, %s4689_s28 }
  0x6a   : > { %p4125_p10 = scmp.lt.s32.totalorder %s4123_s0, %s4116_s25 }
  0x6b   : > { %p4119_p6 = pnand %p4117_p4, %p4699_p7 }
  0x6c   : > { %p4126_p11 = por %p4125_p10, %p4124_p9 }
  0x6d   : > { %p4120_p8 = pneg %p4119_p6 }
  0x6f   : > { %p4127_p12 = pnand %p4126_p11, %p4120_p8 }
  0x71   : > { %4130 = shalt.err (!%p4127_p12)
}
  0x72   : > { %3851 = dma.hbm_to_vmem [thread:$0]  (!%p4683_p5), %s5562_s5, 16, %s4689_s28, [#allocation11]  }
  0x73   : > { %s4540_s22 = smov [#allocation13]   ;;  %s4541_s23 = smov [#allocation16]  }
  0x74   : > { %s447_s30 = sshll.u32 %s4540_s22, 4  ;;  %s471_s20 = sshll.u32 %s4541_s23, 4  ;;  %s448_s30 = int_to_ptr.vmem [resolvable:$true] %s447_s30  ;;  %s472_s20 = int_to_ptr.vmem [resolvable:$true] %s471_s20 }
  0x75   : > { %s5563_s7 = sld [smem:[#allocation46_spill]] }
  0x7b   : > { %s4131_s21 = scalar_lea.hbm %s5563_s7, 16 }
  0x7c   : > { %p4132_p13 = scmp.ne.s32.totalorder %s5563_s7, %s4131_s21  ;;  %p4138_p4 = scmp.lt.u32.totalorder %s4131_s21, %s5563_s7 }
  0x7e   : > { %p4134_p0 = pnand %p4132_p13, %p4699_p7 }
  0x80   : > { %p4135_p2 = pneg %p4134_p0 }
  0x82   : > { %p4140_p6 = pnand %p4138_p4, %p4135_p2 }
  0x84   : > { %4143 = shalt.err (!%p4140_p6)
}
  0x85   : > { %s4144_s28 = scalar_lea.vmem %s448_s30, 16  ;;  %s4151_s16 = scalar_lea.vmem %s448_s30, 32 }
  0x86   : > { %p4145_p8 = scmp.ne.s32.totalorder %s448_s30, %s4144_s28  ;;  %p4152_p11 = scmp.lt.s32.totalorder %s448_s30, %s448_s30 }
  0x87   : > { %p4153_p12 = scmp.lt.s32.totalorder %s4151_s16, %s4144_s28 }
  0x88   : > { %p4147_p9 = pnand %p4145_p8, %p4699_p7 }
  0x89   : > { %p4154_p1 = por %p4153_p12, %p4152_p11 }
  0x8a   : > { %p4148_p10 = pneg %p4147_p9 }
  0x8c   : > { %p4155_p3 = pnand %p4154_p1, %p4148_p10 }
  0x8e   : > { %4158 = shalt.err (!%p4155_p3)
}
  0x8f   : > { %3857 = dma.hbm_to_vmem [thread:$0]  (!%p4683_p5), %s5563_s7, 16, %s448_s30, [#allocation14]  }
  0x90   : > { %s5564_s9 = sld [smem:[#allocation48_spill]] }
  0x96   : > { %s4159_s14 = scalar_lea.hbm %s5564_s9, 16 }
  0x97   : > { %p4160_p13 = scmp.ne.s32.totalorder %s5564_s9, %s4159_s14  ;;  %p4166_p3 = scmp.lt.u32.totalorder %s4159_s14, %s5564_s9 }
  0x99   : > { %p4162_p0 = pnand %p4160_p13, %p4699_p7 }
  0x9b   : > { %p4163_p1 = pneg %p4162_p0 }
  0x9d   : > { %p4168_p2 = pnand %p4166_p3, %p4163_p1 }
  0x9f   : > { %4171 = shalt.err (!%p4168_p2)
}
  0xa0   : > { %s4172_s28 = scalar_lea.vmem %s472_s20, 16  ;;  %s4179_s30 = scalar_lea.vmem %s472_s20, 32 }
  0xa1   : > { %p4173_p4 = scmp.ne.s32.totalorder %s472_s20, %s4172_s28  ;;  %p4180_p9 = scmp.lt.s32.totalorder %s472_s20, %s472_s20 }
  0xa2   : > { %p4181_p10 = scmp.lt.s32.totalorder %s4179_s30, %s4172_s28 }
  0xa3   : > { %p4175_p6 = pnand %p4173_p4, %p4699_p7 }
  0xa4   : > { %p4182_p11 = por %p4181_p10, %p4180_p9 }
  0xa5   : > { %p4176_p8 = pneg %p4175_p6 }
  0xa7   : > { %p4183_p12 = pnand %p4182_p11, %p4176_p8 }
  0xa9   : > { %4186 = shalt.err (!%p4183_p12)
}
  0xaa   : > { %3863 = dma.hbm_to_vmem [thread:$0]  (!%p4683_p5), %s5564_s9, 16, %s472_s20, [#allocation17]  }
  0xab   : > { %s4542_s23 = smov [#allocation19]   ;;  %s4543_s27 = smov [#allocation9]  }
  0xac   : > { %s495_s29 = sshll.u32 %s4542_s23, 4  ;;  %s409_s14 = sshll.u32 %s4543_s27, 4  ;;  %s496_s29 = int_to_ptr.vmem [resolvable:$true] %s495_s29  ;;  %s410_s14 = int_to_ptr.vmem [resolvable:$true] %s409_s14 }
  0xad   : > { %s4187_s0 = scalar_lea.hbm %s5519_s11, 16 }
  0xae   : > { %p4188_p13 = scmp.ne.s32.totalorder %s5519_s11, %s4187_s0  ;;  %p4194_p3 = scmp.lt.u32.totalorder %s4187_s0, %s5519_s11 }
  0xb0   : > { %p4190_p0 = pnand %p4188_p13, %p4699_p7 }
  0xb2   : > { %p4191_p1 = pneg %p4190_p0 }
  0xb4   : > { %p4196_p2 = pnand %p4194_p3, %p4191_p1 }
  0xb6   : > { %4199 = shalt.err (!%p4196_p2)
}
  0xb7   : > { %s4200_s20 = scalar_lea.vmem %s496_s29, 16  ;;  %s4207_s22 = scalar_lea.vmem %s496_s29, 32 }
  0xb8   : > { %p4201_p4 = scmp.ne.s32.totalorder %s496_s29, %s4200_s20  ;;  %p4208_p9 = scmp.lt.s32.totalorder %s496_s29, %s496_s29 }
  0xb9   : > { %p4209_p10 = scmp.lt.s32.totalorder %s4207_s22, %s4200_s20 }
  0xba   : > { %p4203_p6 = pnand %p4201_p4, %p4699_p7 }
  0xbb   : > { %p4210_p11 = por %p4209_p10, %p4208_p9 }
  0xbc   : > { %p4204_p8 = pneg %p4203_p6 }
  0xbe   : > { %p4211_p12 = pnand %p4210_p11, %p4204_p8 }
  0xc0   : > { %4214 = shalt.err (!%p4211_p12)
}
  0xc1   : > { %3869 = dma.hbm_to_vmem [thread:$0]  (!%p4683_p5), %s5519_s11, 16, %s496_s29, [#allocation20]  }
  0xc2   : > { %s5565_s4 = sld [smem:[#allocation43_spill]] }
  0xc8   : > { %s4215_s0 = scalar_lea.hbm %s5565_s4, 2048 }
  0xc9   : > { %p4216_p13 = scmp.ne.s32.totalorder %s5565_s4, %s4215_s0  ;;  %p4222_p3 = scmp.lt.u32.totalorder %s4215_s0, %s5565_s4 }
  0xcb   : > { %p4218_p0 = pnand %p4216_p13, %p4699_p7 }
  0xcd   : > { %p4219_p1 = pneg %p4218_p0 }
  0xcf   : > { %p4224_p2 = pnand %p4222_p3, %p4219_p1 }
  0xd1   : > { %4227 = shalt.err (!%p4224_p2)
}
  0xd2   : > { %s4228_s20 = scalar_lea.vmem %s410_s14, 2048  ;;  %p4236_p9 = scmp.lt.s32.totalorder %s410_s14, %s410_s14 }
  0xd3   : > { %p4229_p4 = scmp.ne.s32.totalorder %s410_s14, %s4228_s20  ;;  %p4237_p10 = scmp.lt.s32.totalorder %s4228_s20, %s4228_s20 }
  0xd5   : > { %p4231_p6 = pnand %p4229_p4, %p4699_p7  ;;  %p4238_p11 = por %p4237_p10, %p4236_p9 }
  0xd7   : > { %p4232_p8 = pneg %p4231_p6 }
  0xd9   : > { %p4239_p12 = pnand %p4238_p11, %p4232_p8 }
  0xdb   : > { %4242 = shalt.err (!%p4239_p12)
}
  0xdc   : > { %s5566_s29 = smov 128   ;;  %s4544_s27 = smov [#allocation12]  }
  0xdd   : > { %3848 = dma.hbm_to_vmem [thread:$0]  (!%p4683_p5), %s5565_s4, 2048, %s410_s14, [#allocation8], %s5566_s29, %s5566_s29, %s5535_s1  }
  0xde   : > { %s433_s21 = sshll.u32 %s4544_s27, 4  ;;  %s4545_s25 = smov [#allocation15]   ;;  %s434_s21 = int_to_ptr.vmem [resolvable:$true] %s433_s21 }
  0xdf   : > { %s457_s0 = sshll.u32 %s4545_s25, 4  ;;  %s5567_s6 = sld [smem:[#allocation45_spill]]  ;;  %s458_s0 = int_to_ptr.vmem [resolvable:$true] %s457_s0 }
  0xe5   : > { %s4243_s30 = scalar_lea.hbm %s5567_s6, 2048 }
  0xe6   : > { %p4244_p13 = scmp.ne.s32.totalorder %s5567_s6, %s4243_s30  ;;  %p4250_p3 = scmp.lt.u32.totalorder %s4243_s30, %s5567_s6 }
  0xe8   : > { %p4246_p0 = pnand %p4244_p13, %p4699_p7 }
  0xea   : > { %p4247_p1 = pneg %p4246_p0 }
  0xec   : > { %p4252_p2 = pnand %p4250_p3, %p4247_p1 }
  0xee   : > { %4255 = shalt.err (!%p4252_p2)
}
  0xef   : > { %s4256_s14 = scalar_lea.vmem %s434_s21, 2048  ;;  %p4264_p9 = scmp.lt.s32.totalorder %s434_s21, %s434_s21 }
  0xf0   : > { %p4257_p4 = scmp.ne.s32.totalorder %s434_s21, %s4256_s14  ;;  %p4265_p10 = scmp.lt.s32.totalorder %s4256_s14, %s4256_s14 }
  0xf2   : > { %p4259_p6 = pnand %p4257_p4, %p4699_p7  ;;  %p4266_p11 = por %p4265_p10, %p4264_p9 }
  0xf4   : > { %p4260_p8 = pneg %p4259_p6 }
  0xf6   : > { %p4267_p12 = pnand %p4266_p11, %p4260_p8 }
  0xf8   : > { %4270 = shalt.err (!%p4267_p12)
}
  0xf9   : > { %3854 = dma.hbm_to_vmem [thread:$0]  (!%p4683_p5), %s5567_s6, 2048, %s434_s21, [#allocation11], %s5566_s29, %s5566_s29, %s5535_s1  }
  0xfa   : > { %s5568_s8 = sld [smem:[#allocation47_spill]] }
 0x100   : > { %s4271_s15 = scalar_lea.hbm %s5568_s8, 2048 }
 0x101   : > { %p4272_p13 = scmp.ne.s32.totalorder %s5568_s8, %s4271_s15  ;;  %p4278_p3 = scmp.lt.u32.totalorder %s4271_s15, %s5568_s8 }
 0x103   : > { %p4274_p0 = pnand %p4272_p13, %p4699_p7 }
 0x105   : > { %p4275_p1 = pneg %p4274_p0 }
 0x107   : > { %p4280_p2 = pnand %p4278_p3, %p4275_p1 }
 0x109   : > { %4283 = shalt.err (!%p4280_p2)
}
 0x10a   : > { %s4284_s22 = scalar_lea.vmem %s458_s0, 2048  ;;  %p4292_p9 = scmp.lt.s32.totalorder %s458_s0, %s458_s0 }
 0x10b   : > { %p4285_p4 = scmp.ne.s32.totalorder %s458_s0, %s4284_s22  ;;  %p4293_p10 = scmp.lt.s32.totalorder %s4284_s22, %s4284_s22 }
 0x10d   : > { %p4287_p6 = pnand %p4285_p4, %p4699_p7  ;;  %p4294_p11 = por %p4293_p10, %p4292_p9 }
 0x10f   : > { %p4288_p8 = pneg %p4287_p6 }
 0x111   : > { %p4295_p12 = pnand %p4294_p11, %p4288_p8 }
 0x113   : > { %4298 = shalt.err (!%p4295_p12)
}
 0x114   : > { %3860 = dma.hbm_to_vmem [thread:$0]  (!%p4683_p5), %s5568_s8, 2048, %s458_s0, [#allocation14], %s5566_s29, %s5566_s29, %s5535_s1  }
 0x115   : > { %s4546_s2 = smov [#allocation18]   ;;  %s4547_s27 = smov [#allocation21]  }
 0x116   : > { %s481_s23 = sshll.u32 %s4546_s2, 4  ;;  %s505_s25 = sshll.u32 %s4547_s27, 4  ;;  %s482_s23 = int_to_ptr.vmem [resolvable:$true] %s481_s23  ;;  %s506_s25 = int_to_ptr.vmem [resolvable:$true] %s505_s25 }
 0x117   : > { %s4299_s30 = scalar_lea.hbm %s5518_s10, 2048 }
 0x118   : > { %p4300_p13 = scmp.ne.s32.totalorder %s5518_s10, %s4299_s30  ;;  %p4306_p3 = scmp.lt.u32.totalorder %s4299_s30, %s5518_s10 }
 0x11a   : > { %p4302_p0 = pnand %p4300_p13, %p4699_p7 }
 0x11c   : > { %p4303_p1 = pneg %p4302_p0 }
 0x11e   : > { %p4308_p2 = pnand %p4306_p3, %p4303_p1 }
 0x120   : > { %4311 = shalt.err (!%p4308_p2)
}
 0x121   : > { %s4312_s0 = scalar_lea.vmem %s482_s23, 2048  ;;  %p4320_p9 = scmp.lt.s32.totalorder %s482_s23, %s482_s23 }
 0x122   : > { %p4313_p4 = scmp.ne.s32.totalorder %s482_s23, %s4312_s0  ;;  %p4321_p10 = scmp.lt.s32.totalorder %s4312_s0, %s4312_s0 }
 0x124   : > { %p4315_p6 = pnand %p4313_p4, %p4699_p7  ;;  %p4322_p11 = por %p4321_p10, %p4320_p9 }
 0x126   : > { %p4316_p8 = pneg %p4315_p6 }
 0x128   : > { %p4323_p12 = pnand %p4322_p11, %p4316_p8 }
 0x12a   : > { %4326 = shalt.err (!%p4323_p12)
}
 0x12b   : > { %3866 = dma.hbm_to_vmem [thread:$0]  (!%p4683_p5), %s5518_s10, 2048, %s482_s23, [#allocation17], %s5566_s29, %s5566_s29, %s5535_s1  }
 0x12c   : > { %s4327_s28 = scalar_lea.hbm %s5520_s12, 2048 }
 0x12d   : > { %p4328_p13 = scmp.ne.s32.totalorder %s5520_s12, %s4327_s28  ;;  %p4334_p3 = scmp.lt.u32.totalorder %s4327_s28, %s5520_s12 }
 0x12f   : > { %p4330_p0 = pnand %p4328_p13, %p4699_p7 }
 0x131   : > { %p4331_p1 = pneg %p4330_p0 }
 0x133   : > { %p4336_p2 = pnand %p4334_p3, %p4331_p1 }
 0x135   : > { %4339 = shalt.err (!%p4336_p2)
}
 0x136   : > { %s4340_s21 = scalar_lea.vmem %s506_s25, 2048  ;;  %p4348_p9 = scmp.lt.s32.totalorder %s506_s25, %s506_s25 }
 0x137   : > { %p4341_p4 = scmp.ne.s32.totalorder %s506_s25, %s4340_s21  ;;  %p4349_p10 = scmp.lt.s32.totalorder %s4340_s21, %s4340_s21 }
 0x139   : > { %p4343_p6 = pnand %p4341_p4, %p4699_p7  ;;  %p4350_p11 = por %p4349_p10, %p4348_p9 }
 0x13b   : > { %p4344_p8 = pneg %p4343_p6 }
 0x13d   : > { %p4351_p12 = pnand %p4350_p11, %p4344_p8 }
 0x13f   : > { %4354 = shalt.err (!%p4351_p12)
}
 0x140   : > { %3872 = dma.hbm_to_vmem [thread:$0]  (!%p4683_p5), %s5520_s12, 2048, %s506_s25, [#allocation20], %s5566_s29, %s5566_s29, %s5535_s1  }
 0x141   : > { %s4548_s14 = smov [#allocation22]   ;;  %s4355_s28 = scalar_lea.hbm %s5521_s13, 16 }
 0x142   : > { %s519_s2 = sshll.u32 %s4548_s14, 4  ;;  %p4356_p13 = scmp.ne.s32.totalorder %s5521_s13, %s4355_s28  ;;  %s520_s2 = int_to_ptr.vmem [resolvable:$true] %s519_s2 }
 0x143   : > { %p4362_p3 = scmp.lt.u32.totalorder %s4355_s28, %s5521_s13 }
 0x144   : > { %p4358_p0 = pnand %p4356_p13, %p4699_p7 }
 0x146   : > { %p4359_p1 = pneg %p4358_p0 }
 0x148   : > { %p4364_p2 = pnand %p4362_p3, %p4359_p1 }
 0x14a   : > { %4367 = shalt.err (!%p4364_p2)
}
 0x14b   : > { %s4368_s25 = scalar_lea.vmem %s520_s2, 16  ;;  %s4375_s21 = scalar_lea.vmem %s520_s2, 32 }
 0x14c   : > { %p4369_p4 = scmp.ne.s32.totalorder %s520_s2, %s4368_s25  ;;  %p4376_p9 = scmp.lt.s32.totalorder %s520_s2, %s520_s2 }
 0x14d   : > { %p4377_p10 = scmp.lt.s32.totalorder %s4375_s21, %s4368_s25 }
 0x14e   : > { %p4371_p6 = pnand %p4369_p4, %p4699_p7 }
 0x14f   : > { %p4378_p11 = por %p4377_p10, %p4376_p9 }
 0x150   : > { %p4372_p8 = pneg %p4371_p6 }
 0x152   : > { %p4379_p12 = pnand %p4378_p11, %p4372_p8 }
 0x154   : > { %4382 = shalt.err (!%p4379_p12)
}
 0x155   : > { %s5569_s24 = sld [smem:[#allocation36_spill]]  ;;  %s5570_s14 = sld [smem:[#allocation37_spill]] }
 0x156   : > { %3875 = dma.hbm_to_vmem [thread:$0]  (!%p4683_p5), %s5521_s13, 16, %s520_s2, [#allocation23]  }
 0x157   : > { %s4949_s26 = sadd.s32 1, %s4533_s19   ;;  %s45_s27 = sadd.s32 1, %s4529_s18 }
 0x158   : > { %s4954_s15 = ssub.s32 %s4533_s19, %s4949_s26  ;;  %p52_p7 = scmp.ne.s32.totalorder %s4529_s18, %s4525_s17 }
 0x159   : > { %s42_s28 = sor.u32 %s4954_s15, %s4954_s15  ;;  %p5537_p13 = scmp.eq.s32.totalorder %s4533_s19, 0 }
 0x15a   : > { %p43_p0 = scmp.eq.s32.totalorder %s42_s28, 0  ;;  %p5536_p5 = scmp.lt.s32.totalorder %s4533_s19, 4 }
 0x15b   : > { %p58_p1 = scmp.ne.s32.totalorder %s4525_s17, %s5569_s24  ;;  %p4965_p3 = por %p5537_p13, %p52_p7 }
 0x15c   : > { %s4971_s2 = scalar_select %p43_p0, %s4529_s18, %s45_s27  }
 0x15d   : > { %p5572_p2 = scmp.eq.s32.totalorder %s5570_s14, 0  ;;  %s530_s20 = sand.u32 1, %s4529_s18  }
 0x15e   : > { %s2865_s22 = sshll.u32 %s530_s20, 9  ;;  %s2867_s25 = sshll.u32 %s4533_s19, 1 }
 0x15f   : > { %p4975_p4 = por %p5572_p2, %p58_p1  ;;  %s2897_s21 = sshll.u32 %s4533_s19, 8 }
 0x160   : > { %s534_s23 = scalar_lea.vmem [#allocation2], %s2865_s22  ;;  %s541_s24 = sadd.s32 %s2897_s21, %s2867_s25 }
 0x161   : > { %s544_s0 = sshll.u32 %s534_s23, 4  ;;  %s2869_s28 = sshll.u32 %s541_s24, 7  ;;  %s4982_s0 = int_to_ptr.vmem [resolvable:$true] %s544_s0 }
 0x162   : > { %p4988_p6 = pnand %p5536_p5, %p4965_p3  ;;  %s5575_s4 = sld [smem:[#allocation39_spill]] }
 0x163   : > { %s4997_s22 = scalar_lea.sflag [#allocation3], %s530_s20 }
 0x164   : > { %p4385_p9 = pneg %p4988_p6 }
 0x168   : > { %s4995_s5 = scalar_lea.hbm %s5575_s4, %s2869_s28  ;;  %s4388_s1 = scalar_lea.hbm %s5575_s4, 131072 }
 0x169   : > { %s4383_s25 = scalar_lea.hbm %s4995_s5, 8192  ;;  %p4389_p12 = scmp.lt.u32.totalorder %s4995_s5, %s5575_s4 }
 0x16a   : > { %p4384_p8 = scmp.ne.s32.totalorder %s4995_s5, %s4383_s25  ;;  %p4390_p7 = scmp.lt.u32.totalorder %s4388_s1, %s4383_s25 }
 0x16b   : > { %p4392_p1 = scmp.lt.u32.totalorder %s4383_s25, %s4995_s5 }
 0x16c   : > { %p4386_p10 = pnand %p4385_p9, %p4384_p8  ;;  %p4391_p0 = por %p4390_p7, %p4389_p12 }
 0x16e   : > { %p4387_p11 = pneg %p4386_p10  ;;  %p4393_p3 = por %p4392_p1, %p4391_p0 }
 0x170   : > { %p4394_p2 = pnand %p4393_p3, %p4387_p11 }
 0x172   : > { %4397 = shalt.err (!%p4394_p2)
}
 0x173   : > { %s4398_s20 = scalar_lea.vmem %s4982_s0, 8192  ;;  %s4549_s24 = smov [#allocation2]  }
 0x174   : > { %p4399_p8 = scmp.ne.s32.totalorder %s4982_s0, %s4398_s20  ;;  %s4403_s28 = sshll.u32 %s4549_s24, 4  ;;  %s4404_s28 = int_to_ptr.vmem [resolvable:$false] %s4403_s28 }
 0x175   : > { %s4405_s30 = scalar_lea.vmem %s4404_s28, 16384  ;;  %p4406_p13 = scmp.lt.s32.totalorder %s4982_s0, %s4404_s28 }
 0x176   : > { %p4401_p10 = pnand %p4399_p8, %p4385_p9  ;;  %p4407_p12 = scmp.lt.s32.totalorder %s4405_s30, %s4398_s20 }
 0x178   : > { %p4402_p5 = pneg %p4401_p10  ;;  %p4408_p7 = por %p4407_p12, %p4406_p13 }
 0x17a   : > { %p4409_p0 = pnand %p4408_p7, %p4402_p5 }
 0x17c   : > { %4412 = shalt.err (!%p4409_p0)
}
 0x17d   : > { %s4550_s25 = smov 1024   ;;  %s5576_s3 = sld [smem:[#allocation35_spill]] }
 0x17e   : > { %s5577_s1 = sld [smem:[#allocation34_spill]]  ;;  %s5578_s21 = sld [smem:[#allocation33_spill]] }
 0x17f   : > { %s4551_s23 = smov 256   ;;  %s4552_s20 = smov 16  }
 0x180   : > { %3879 = dma.hbm_to_vmem [thread:$0]  (!%p4988_p6), %s4995_s5, 8192, %s4982_s0, %s4997_s22, %s4550_s25, %s4551_s23, %s4552_s20  }
 0x181   : > { %p69_p13 = scmp.eq.s32.totalorder %s4954_s15, 0  ;;  %p5579_p9 = scmp.eq.s32.totalorder %s4533_s19, 0 }
 0x182   : > { %s554_s30 = sand.u32 1, %s4533_s19   ;;  %p5580_p3 = scmp.eq.s32.totalorder %s5570_s14, 0 }
 0x183   : > { %s71_s24 = sadd.s32 1, %s5576_s3  ;;  %s556_s4 = sand.u32 1, %s5576_s3  }
 0x184   : > { %p78_p5 = scmp.ne.s32.totalorder %s5576_s3, %s5577_s1  ;;  %p84_p1 = scmp.ne.s32.totalorder %s5577_s1, %s5578_s21 }
 0x185   : > { %s5030_s28 = scalar_select %p69_p13, %s5576_s3, %s71_s24  }
 0x186   : > { %p80_p11 = por %p78_p5, %p5579_p9  ;;  %p5040_p2 = por %p84_p1, %p5580_p3 }
 0x187   : > { %s2870_s7 = sshll.u32 %s556_s4, 8  ;;  %s2898_s8 = sshll.u32 %s4533_s19, 12 }
 0x188   : > { %s5581_s6 = scalar_select %p5040_p2, 1, 0 }
 0x189   : > { %s5582_s5 = sld [smem:[#allocation40_spill]]  ;;  %s558_s0 = scalar_lea.vmem [#allocation4], %s2870_s7 }
 0x18a   : > { %s565_s22 = sshll.u32 %s558_s0, 4  ;;  %p5583_p6 = scmp.lt.s32.totalorder %s4533_s19, 4  ;;  %s5056_s22 = int_to_ptr.vmem [resolvable:$true] %s565_s22 }
 0x18b   : > { %s5058_s4 = scalar_lea.sflag [#allocation5], %s554_s30 }
 0x18c   : > { %p5052_p8 = pnand %p5583_p6, %p80_p11 }
 0x18e   : > { %p4415_p12 = pneg %p5052_p8 }
 0x18f   : > { %s5048_s15 = scalar_lea.hbm %s5582_s5, %s2898_s8  ;;  %s4418_s19 = scalar_lea.hbm %s5582_s5, 16384 }
 0x190   : > { %s4413_s9 = scalar_lea.hbm %s5048_s15, 4096  ;;  %p4419_p13 = scmp.lt.u32.totalorder %s5048_s15, %s5582_s5 }
 0x191   : > { %p4414_p10 = scmp.ne.s32.totalorder %s5048_s15, %s4413_s9  ;;  %p4420_p5 = scmp.lt.u32.totalorder %s4418_s19, %s4413_s9 }
 0x192   : > { %p4422_p11 = scmp.lt.u32.totalorder %s4413_s9, %s5048_s15 }
 0x193   : > { %p4416_p7 = pnand %p4415_p12, %p4414_p10  ;;  %p4421_p9 = por %p4420_p5, %p4419_p13 }
 0x195   : > { %p4417_p0 = pneg %p4416_p7  ;;  %p4423_p1 = por %p4422_p11, %p4421_p9 }
 0x197   : > { %p4424_p3 = pnand %p4423_p1, %p4417_p0 }
 0x199   : > { %4427 = shalt.err (!%p4424_p3)
}
 0x19a   : > { %s4428_s1 = scalar_lea.vmem %s5056_s22, 4096  ;;  %s4553_s21 = smov [#allocation4]  }
 0x19b   : > { %p4429_p6 = scmp.ne.s32.totalorder %s5056_s22, %s4428_s1  ;;  %s4433_s23 = sshll.u32 %s4553_s21, 4  ;;  %s4434_s23 = int_to_ptr.vmem [resolvable:$false] %s4433_s23 }
 0x19c   : > { %s4435_s20 = scalar_lea.vmem %s4434_s23, 8192  ;;  %p4436_p2 = scmp.lt.s32.totalorder %s5056_s22, %s4434_s23 }
 0x19d   : > { %p4431_p10 = pnand %p4429_p6, %p4415_p12  ;;  %p4437_p13 = scmp.lt.s32.totalorder %s4435_s20, %s4428_s1 }
 0x19f   : > { %p4432_p7 = pneg %p4431_p10  ;;  %p4438_p5 = por %p4437_p13, %p4436_p2 }
 0x1a1   : > { %p4439_p9 = pnand %p4438_p5, %p4432_p7 }
 0x1a3   : > { %4442 = shalt.err (!%p4439_p9)
}
 0x1a4   : > { %s5585_s24 = smov 8   ;;  %s5586_s30 = sld [smem:[#allocation38_spill]] }
 0x1a5   : > { %3882 = dma.hbm_to_vmem [thread:$0]  (!%p5052_p8), %s5048_s15, 4096, %s5056_s22, %s5058_s4, %s5566_s29, %s5566_s29, %s5585_s24  }
 0x1aa   : > { %p5587_p12 = scmp.ne.s32.totalorder %s5586_s30, 0 }
 0x1ab   : > { %s579_s27 = sand.u32 (!%p5587_p12), 1, %s4525_s17  }
 0x1ac   : > { %577 = sbr.rel (%p5587_p12) target bundleno = 2529 (0x9e1), region = 76  ;;  %s2874_s0 = sshll.u32 (!%p5587_p12), %s579_s27, 9 }
 0x1ad   : > { %s580_s9 = scalar_lea.sflag (!%p5587_p12), [#allocation3], %s579_s27  ;;  %s5092_s7 = scalar_lea.vmem (!%p5587_p12), [#allocation2], %s2874_s0 }
 0x1b3   : > { %4472 = dma.done.wait (%p4975_p4), %s580_s9, 8192  }
 0x1b4   : > { %4474 = vsyncadd (%p4975_p4), %s580_s9, 4294959104  ;;  %s5588_s14 = sld [smem:[#allocation37_spill]]  ;;  %s5589_s8 = sld [smem:[#allocation34_spill]] }
 0x1b5   : > { %p5590_p2 = scmp.ne.s32.totalorder %s5581_s6, 0 }
 0x1ba   : > { %s588_s19 = sand.u32 1, %s5588_s14   ;;  %s590_s29 = sand.u32 1, %s5589_s8  }
 0x1bb   : > { %s2875_s15 = sshll.u32 %s590_s29, 8  ;;  %s589_s22 = scalar_lea.sflag [#allocation5], %s588_s19 }
 0x1bc   : > { %s5100_s4 = scalar_lea.vmem [#allocation4], %s2875_s15 }
 0x1bd   : > { %4476 = dma.done.wait (%p5590_p2), %s589_s22, 4096  }
 0x1be   : > { %4478 = vsyncadd (%p5590_p2), %s589_s22, 4294963200  ;;  %p5591_p8 = scmp.eq.s32.totalorder %s5588_s14, 0 }
 0x1c0   : > { %4480 = dma.done.wait (%p5591_p8), [#allocation5], 2048   ;;  %p5592_p0 = pmov %p5591_p8 }
 0x1c2   : > { %4482 = vsyncadd (%p5592_p0), [#allocation5], 4294965248  ;;  %p5593_p4 = pmov %p5592_p0 }
 0x1c3   : > { %p5594_p11 = pmov %p5592_p0 }
 0x1c4   : > { %4484 = dma.done.wait (%p5593_p4), [#allocation8], 2064  }
 0x1c5   : > { %4486 = vsyncadd (%p5594_p11), [#allocation8], 4294965232  ;;  %p5595_p1 = pmov %p5592_p0 }
 0x1c6   : > { %p5596_p3 = pmov %p5592_p0 }
 0x1c7   : > { %4488 = dma.done.wait (%p5595_p1), [#allocation11], 2064  }
 0x1c8   : > { %4490 = vsyncadd (%p5596_p3), [#allocation11], 4294965232  ;;  %p5597_p6 = pmov %p5592_p0 }
 0x1c9   : > { %p5598_p10 = pmov %p5592_p0 }
 0x1ca   : > { %4492 = dma.done.wait (%p5597_p6), [#allocation14], 2064  }
 0x1cb   : > { %4494 = vsyncadd (%p5598_p10), [#allocation14], 4294965232  ;;  %p5599_p7 = pmov %p5592_p0 }
 0x1cc   : > { %p5600_p13 = pmov %p5592_p0 }
 0x1cd   : > { %4496 = dma.done.wait (%p5599_p7), [#allocation17], 2064  }
 0x1ce   : > { %4498 = vsyncadd (%p5600_p13), [#allocation17], 4294965232  ;;  %p5601_p5 = pmov %p5592_p0 }
 0x1cf   : > { %p5602_p9 = pmov %p5592_p0 }
 0x1d0   : > { %4500 = dma.done.wait (%p5601_p5), [#allocation20], 2064  }
 0x1d1   : > { %4502 = vsyncadd (%p5602_p9), [#allocation20], 4294965232  ;;  %p5603_p12 = pmov %p5592_p0 }
 0x1d2   : > { %p5604_p2 = pmov %p5592_p0 }
 0x1d3   : > { %4504 = dma.done.wait (%p5603_p12), [#allocation23], 16  }
 0x1d4   : > { %4506 = vsyncadd (%p5604_p2), [#allocation23], 4294967280  ;;  %v4554_v0 = vmov 0.0|0.0   ;;  %v760_v1 = vld [vmem:[%s5100_s4] sm:$0xff]  ;;  %v761_v2 = vld [vmem:[%s5100_s4 + $0x8] sm:$0xff]  ;;  %vm4555_vm0 = vmmov 0  }
 0x1d5   : > { %3515 = vmatprep.subr.bf16.mxu0 %v4554_v0  ;;  %v762_v3 = vld [vmem:[%s5100_s4 + $0x10] sm:$0xff]  ;;  %v3516_v4 = vpack.c.bf16 %v761_v2, %v760_v1  ;;  %v763_v5 = vld [vmem:[%s5100_s4 + $0x18] sm:$0xff]  ;;  %v764_v7 = vld [vmem:[%s5100_s4 + $0x20] sm:$0xff]  ;;  %vm2465_vm1 = vcmask 1041409   ;;  %vm2467_vm2 = vcmask 1042434   ;;  %vm2469_vm3 = vcmask 1043459  }
 0x1d6   : > { %v3519_v6 = vpack.c.bf16 %v763_v5, %v762_v3  ;;  %v765_v8 = vld [vmem:[%s5100_s4 + $0x28] sm:$0xff]  ;;  %v766_v10 = vld [vmem:[%s5100_s4 + $0x30] sm:$0xff]  ;;  %v767_v11 = vld [vmem:[%s5100_s4 + $0x38] sm:$0xff]  ;;  %vm2471_vm4 = vcmask 1044484   ;;  %vm2473_vm5 = vcmask 1045509   ;;  %vm2475_vm6 = vcmask 1046534  }
 0x1d7   : > { %3517 = vmatpush1.bf16.msra.mxu0 %v3516_v4  ;;  %v3522_v9 = vpack.c.bf16 %v765_v8, %v764_v7  ;;  %v5146_v12 = vld [vmem:[%s5092_s7 + $0x8] sm:$0xff]  ;;  %v3525_v13 = vpack.c.bf16 %v767_v11, %v766_v10  ;;  %v768_v14 = vld [vmem:[%s5100_s4 + $0x40] sm:$0xff]  ;;  %v770_v17 = vld [vmem:[%s5100_s4 + $0x50] sm:$0xff]  ;;  %vm2477_vm7 = vcmask 1047559   ;;  %p692_p8 = scmp.lt.s32.totalorder %s5588_s14, 3  ;;  %s5605_s3 = sld [smem:[#allocation49_spill]] }
 0x1d8   : > { %3518 = vmatprep.subr.bf16.mxu0 %v4554_v0  ;;  %856 = vmatprep.mubr.f32.mxu0 %v5146_v12  ;;  %v769_v15 = vld [vmem:[%s5100_s4 + $0x48] sm:$0xff]  ;;  %v771_v18 = vld [vmem:[%s5100_s4 + $0x58] sm:$0xff]  ;;  %v772_v20 = vld [vmem:[%s5100_s4 + $0x60] sm:$0xff] }
 0x1d9   : > { %v3528_v16 = vpack.c.bf16 %v769_v15, %v768_v14  ;;  %v3531_v19 = vpack.c.bf16 %v771_v18, %v770_v17  ;;  %v773_v21 = vld [vmem:[%s5100_s4 + $0x68] sm:$0xff]  ;;  %v774_v23 = vld [vmem:[%s5100_s4 + $0x70] sm:$0xff]  ;;  %v775_v24 = vld [vmem:[%s5100_s4 + $0x78] sm:$0xff]  ;;  %s5614_s14 = smov (!%p692_p8, %s5588_s14), 3 }
 0x1da   : > { %v3534_v22 = vpack.c.bf16 %v773_v21, %v772_v20  ;;  %v3537_v25 = vpack.c.bf16 %v775_v24, %v774_v23  ;;  %v776_v26 = vld [vmem:[%s5100_s4 + $0x80] sm:$0xff]  ;;  %v777_v27 = vld [vmem:[%s5100_s4 + $0x88] sm:$0xff]  ;;  %v778_v29 = vld [vmem:[%s5100_s4 + $0x90] sm:$0xff]  ;;  %s2888_s6 = sshll.u32 %s5614_s14, 3 }
 0x1db   : > { %3520 = vmatpush1.bf16.msra.mxu0 %v3519_v6  ;;  %v3540_v28 = vpack.c.bf16 %v777_v27, %v776_v26  ;;  %v779_v30 = vld [vmem:[%s5100_s4 + $0x98] sm:$0xff]  ;;  %v780_v32 = vld [vmem:[%s5100_s4 + $0xa0] sm:$0xff]  ;;  %v781_v33 = vld [vmem:[%s5100_s4 + $0xa8] sm:$0xff] }
 0x1dc   : > { %3521 = vmatprep.subr.bf16.mxu0 %v4554_v0  ;;  %v3543_v31 = vpack.c.bf16 %v779_v30, %v778_v29  ;;  %v3546_v34 = vpack.c.bf16 %v781_v33, %v780_v32  ;;  %v782_v35 = vld [vmem:[%s5100_s4 + $0xb0] sm:$0xff]  ;;  %v783_v36 = vld [vmem:[%s5100_s4 + $0xb8] sm:$0xff]  ;;  %v784_v38 = vld [vmem:[%s5100_s4 + $0xc0] sm:$0xff] }
 0x1dd   : > { %v3549_v37 = vpack.c.bf16 %v783_v36, %v782_v35  ;;  %v785_v39 = vld [vmem:[%s5100_s4 + $0xc8] sm:$0xff]  ;;  %v786_v41 = vld [vmem:[%s5100_s4 + $0xd0] sm:$0xff]  ;;  %v787_v42 = vld [vmem:[%s5100_s4 + $0xd8] sm:$0xff]  ;;  %s695_s1 = scalar_lea.vmem %s5605_s3, %s2888_s6 }
 0x1de   : > { %v3552_v40 = vpack.c.bf16 %v785_v39, %v784_v38  ;;  %v3555_v43 = vpack.c.bf16 %v787_v42, %v786_v41  ;;  %v788_v44 = vld [vmem:[%s5100_s4 + $0xe0] sm:$0xff]  ;;  %v789_v45 = vld [vmem:[%s5100_s4 + $0xe8] sm:$0xff]  ;;  %v790_v47 = vld [vmem:[%s5100_s4 + $0xf0] sm:$0xff] }
 0x1df   : > { %3523 = vmatpush1.bf16.msra.mxu0 %v3522_v9  ;;  %v3558_v46 = vpack.c.bf16 %v789_v45, %v788_v44  ;;  %v791_v48 = vld [vmem:[%s5100_s4 + $0xf8] sm:$0xff]  ;;  %v1017_v50 = vld [vmem:[#allocation6] sm:$0xff]  ;;  %v1018_v51 = vld [vmem:[#allocation6 + $0x8] sm:$0xff] }
 0x1e0   : > { %3524 = vmatprep.subr.bf16.mxu0 %v4554_v0  ;;  %v3561_v49 = vpack.c.bf16 %v791_v48, %v790_v47  ;;  %v1019_v52 = vld [vmem:[#allocation6 + $0x10] sm:$0xff]  ;;  %v696_v53 = vld [vmem:[%s5092_s7] sm:$0xff]  ;;  %v3563_v54 = vpack.c.bf16 %v1018_v51, %v1017_v50  ;;  %v1020_v55 = vld [vmem:[#allocation6 + $0x18] sm:$0xff] }
 0x1e1   : > { %v699_v56 = vld [vmem:[%s5092_s7 + $0x18] sm:$0xff]  ;;  %v3567_v57 = vpack.c.bf16 %v1020_v55, %v1019_v52  ;;  %v1021_v58 = vld [vmem:[#allocation6 + $0x20] sm:$0xff]  ;;  %v1022_v59 = vld [vmem:[#allocation6 + $0x28] sm:$0xff] }
 0x1e2   : > { %3564 = vmatprep.subr.bf16.mxu1 %v3563_v54  ;;  %v698_v60 = vld [vmem:[%s5092_s7 + $0x10] sm:$0xff]  ;;  %v3571_v61 = vpack.c.bf16 %v1022_v59, %v1021_v58  ;;  %v701_v62 = vld [vmem:[%s5092_s7 + $0x28] sm:$0xff]  ;;  %v1024_v1 = vld [vmem:[#allocation6 + $0x38] sm:$0xff] }
 0x1e3   : > { %3526 = vmatpush1.bf16.msra.mxu0 %v3525_v13  ;;  %3566 = vmatpush3.bf16.msra.mxu1 %v3563_v54  ;;  %v1023_v63 = vld [vmem:[#allocation6 + $0x30] sm:$0xff]  ;;  %v700_v2 = vld [vmem:[%s5092_s7 + $0x20] sm:$0xff]  ;;  %v703_v4 = vld [vmem:[%s5092_s7 + $0x38] sm:$0xff] }
 0x1e4   : > { %3527 = vmatprep.subr.bf16.mxu0 %v4554_v0  ;;  %3568 = vmatprep.subr.bf16.mxu1 %v3567_v57  ;;  %v3575_v3 = vpack.c.bf16 %v1024_v1, %v1023_v63  ;;  %v1025_v5 = vld [vmem:[#allocation6 + $0x40] sm:$0xff]  ;;  %v1026_v6 = vld [vmem:[#allocation6 + $0x48] sm:$0xff]  ;;  %v702_v7 = vld [vmem:[%s5092_s7 + $0x30] sm:$0xff] }
 0x1e5   : > { %v3579_v8 = vpack.c.bf16 %v1026_v6, %v1025_v5  ;;  %v705_v9 = vld [vmem:[%s5092_s7 + $0x48] sm:$0xff]  ;;  %v1027_v10 = vld [vmem:[#allocation6 + $0x50] sm:$0xff]  ;;  %v1028_v11 = vld [vmem:[#allocation6 + $0x58] sm:$0xff] }
 0x1e6   : > { %v704_v13 = vld [vmem:[%s5092_s7 + $0x40] sm:$0xff]  ;;  %v3583_v14 = vpack.c.bf16 %v1028_v11, %v1027_v10  ;;  %v707_v15 = vld [vmem:[%s5092_s7 + $0x58] sm:$0xff]  ;;  %v1030_v17 = vld [vmem:[#allocation6 + $0x68] sm:$0xff] }
 0x1e7   : > { %3529 = vmatpush1.bf16.msra.mxu0 %v3528_v16  ;;  %3570 = vmatpush3.bf16.msra.mxu1 %v3567_v57  ;;  %v1029_v16 = vld [vmem:[#allocation6 + $0x60] sm:$0xff]  ;;  %v706_v18 = vld [vmem:[%s5092_s7 + $0x50] sm:$0xff]  ;;  %v709_v20 = vld [vmem:[%s5092_s7 + $0x68] sm:$0xff] }
 0x1e8   : > { %3530 = vmatprep.subr.bf16.mxu0 %v4554_v0  ;;  %3572 = vmatprep.subr.bf16.mxu1 %v3571_v61  ;;  %v708_v21 = vld [vmem:[%s5092_s7 + $0x60] sm:$0xff]  ;;  %v710_v23 = vld [vmem:[%s5092_s7 + $0x70] sm:$0xff]  ;;  %v713_v24 = vld [vmem:[%s5092_s7 + $0x88] sm:$0xff] }
 0x1e9   : > { %v715_v26 = vld [vmem:[%s5092_s7 + $0x98] sm:$0xff]  ;;  %v714_v27 = vld [vmem:[%s5092_s7 + $0x90] sm:$0xff]  ;;  %v716_v29 = vld [vmem:[%s5092_s7 + $0xa0] sm:$0xff] }
 0x1ea   : > { %v719_v30 = vld [vmem:[%s5092_s7 + $0xb8] sm:$0xff]  ;;  %v721_v32 = vld [vmem:[%s5092_s7 + $0xc8] sm:$0xff]  ;;  %v720_v33 = vld [vmem:[%s5092_s7 + $0xc0] sm:$0xff] }
 0x1eb   : > { %3532 = vmatpush1.bf16.msra.mxu0 %v3531_v19  ;;  %3574 = vmatpush3.bf16.msra.mxu1 %v3571_v61  ;;  %v3587_v19 = vpack.c.bf16 %v1030_v17, %v1029_v16  ;;  %v722_v35 = vld [vmem:[%s5092_s7 + $0xd0] sm:$0xff]  ;;  %v725_v36 = vld [vmem:[%s5092_s7 + $0xe8] sm:$0xff]  ;;  %v727_v38 = vld [vmem:[%s5092_s7 + $0xf8] sm:$0xff] }
 0x1ec   : > { %3533 = vmatprep.subr.bf16.mxu0 %v4554_v0  ;;  %3576 = vmatprep.subr.bf16.mxu1 %v3575_v3  ;;  %v726_v39 = vld [vmem:[%s5092_s7 + $0xf0] sm:$0xff]  ;;  %v728_v41 = vld [vmem:[%s5092_s7 + $0x100] sm:$0xff]  ;;  %v731_v42 = vld [vmem:[%s5092_s7 + $0x118] sm:$0xff] }
 0x1ed   : > { %v733_v44 = vld [vmem:[%s5092_s7 + $0x128] sm:$0xff]  ;;  %v732_v45 = vld [vmem:[%s5092_s7 + $0x120] sm:$0xff]  ;;  %v734_v47 = vld [vmem:[%s5092_s7 + $0x130] sm:$0xff] }
 0x1ee   : > { %v737_v48 = vld [vmem:[%s5092_s7 + $0x148] sm:$0xff]  ;;  %v739_v50 = vld [vmem:[%s5092_s7 + $0x158] sm:$0xff]  ;;  %v738_v51 = vld [vmem:[%s5092_s7 + $0x150] sm:$0xff] }
 0x1ef   : > { %3535 = vmatpush1.bf16.msra.mxu0 %v3534_v22  ;;  %3578 = vmatpush3.bf16.msra.mxu1 %v3575_v3  ;;  %v711_v22 = vld [vmem:[%s5092_s7 + $0x78] sm:$0xff]  ;;  %v1031_v52 = vld [vmem:[#allocation6 + $0x70] sm:$0xff]  ;;  %v741_v54 = vld [vmem:[%s5092_s7 + $0x168] sm:$0xff] }
 0x1f0   : > { %3536 = vmatprep.subr.bf16.mxu0 %v4554_v0  ;;  %3580 = vmatprep.subr.bf16.mxu1 %v3579_v8  ;;  %v743_v57 = vld [vmem:[%s5092_s7 + $0x178] sm:$0xff]  ;;  %v742_v58 = vld [vmem:[%s5092_s7 + $0x170] sm:$0xff]  ;;  %v745_v59 = vld [vmem:[%s5092_s7 + $0x188] sm:$0xff] }
 0x1f1   : > { %v747_v61 = vld [vmem:[%s5092_s7 + $0x198] sm:$0xff]  ;;  %v749_v63 = vld [vmem:[%s5092_s7 + $0x1a8] sm:$0xff]  ;;  %v748_v1 = vld [vmem:[%s5092_s7 + $0x1a0] sm:$0xff] }
 0x1f2   : > { %v750_v3 = vld [vmem:[%s5092_s7 + $0x1b0] sm:$0xff]  ;;  %v752_v5 = vld [vmem:[%s5092_s7 + $0x1c0] sm:$0xff]  ;;  %v755_v6 = vld [vmem:[%s5092_s7 + $0x1d8] sm:$0xff] }
 0x1f3   : > { %3538 = vmatpush1.bf16.msra.mxu0 %v3537_v25  ;;  %3582 = vmatpush3.bf16.msra.mxu1 %v3579_v8  ;;  %v712_v25 = vld [vmem:[%s5092_s7 + $0x80] sm:$0xff]  ;;  %v757_v8 = vld [vmem:[%s5092_s7 + $0x1e8] sm:$0xff]  ;;  %v759_v10 = vld [vmem:[%s5092_s7 + $0x1f8] sm:$0xff] }
 0x1f4   : > { %3539 = vmatprep.subr.bf16.mxu0 %v4554_v0  ;;  %3584 = vmatprep.subr.bf16.mxu1 %v3583_v14  ;;  %v758_v11 = vld [vmem:[%s5092_s7 + $0x1f0] sm:$0xff] }
 0x1f5   : > { %v1299_v17 = vld [vmem:[#allocation9 + $0x10] sm:$0xff] }
 0x1f7   : > { %3541 = vmatpush1.bf16.msra.mxu0 %v3540_v28  ;;  %3586 = vmatpush3.bf16.msra.mxu1 %v3583_v14  ;;  %v717_v28 = vld [vmem:[%s5092_s7 + $0xa8] sm:$0xff] }
 0x1f8   : > { %3542 = vmatprep.subr.bf16.mxu0 %v4554_v0  ;;  %3588 = vmatprep.subr.bf16.mxu1 %v3587_v19  ;;  %v1298_v14 = vld [vmem:[#allocation9 + $0x8] sm:$0xff] }
 0x1fb   : > { %3544 = vmatpush1.bf16.msra.mxu0 %v3543_v31  ;;  %3590 = vmatpush3.bf16.msra.mxu1 %v3587_v19  ;;  %v718_v31 = vld [vmem:[%s5092_s7 + $0xb0] sm:$0xff] }
 0x1fc   : > { %3545 = vmatprep.subr.bf16.mxu0 %v4554_v0 }
 0x1ff   : > { %3547 = vmatpush1.bf16.msra.mxu0 %v3546_v34  ;;  %v723_v34 = vld [vmem:[%s5092_s7 + $0xd8] sm:$0xff] }
 0x200   : > { %3548 = vmatprep.subr.bf16.mxu0 %v4554_v0 }
 0x203   : > { %3550 = vmatpush1.bf16.msra.mxu0 %v3549_v37  ;;  %v724_v37 = vld [vmem:[%s5092_s7 + $0xe0] sm:$0xff] }
 0x204   : > { %3551 = vmatprep.subr.bf16.mxu0 %v4554_v0 }
 0x207   : > { %3553 = vmatpush1.bf16.msra.mxu0 %v3552_v40  ;;  %v729_v40 = vld [vmem:[%s5092_s7 + $0x108] sm:$0xff] }
 0x208   : > { %3554 = vmatprep.subr.bf16.mxu0 %v4554_v0 }
 0x20b   : > { %3556 = vmatpush1.bf16.msra.mxu0 %v3555_v43  ;;  %v730_v43 = vld [vmem:[%s5092_s7 + $0x110] sm:$0xff] }
 0x20c   : > { %3557 = vmatprep.subr.bf16.mxu0 %v4554_v0 }
 0x20f   : > { %3559 = vmatpush1.bf16.msra.mxu0 %v3558_v46  ;;  %v735_v46 = vld [vmem:[%s5092_s7 + $0x138] sm:$0xff] }
 0x210   : > { %3560 = vmatprep.subr.bf16.mxu0 %v4554_v0 }
 0x213   : > { %3562 = vmatpush1.bf16.msra.mxu0 %v3561_v49  ;;  %v736_v49 = vld [vmem:[%s5092_s7 + $0x140] sm:$0xff] }
 0x216   : > { %857 = vmatmul.mubr.f32.vlgmr.msra.gmra.mrb[0].mxu0 %v696_v53  ;;  %v1032_v53 = vld [vmem:[#allocation6 + $0x78] sm:$0xff] }
 0x217   : > { %861 = vmatprep.mubr.f32.mxu0 %v699_v56  ;;  %v3591_v55 = vpack.c.bf16 %v1032_v53, %v1031_v52  ;;  %v740_v56 = vld [vmem:[%s5092_s7 + $0x160] sm:$0xff] }
 0x219   : > { %3592 = vmatprep.subr.bf16.mxu1 %v3591_v55 }
 0x21a   : > { %862 = vmatmul.mubr.f32.gmra.mrb[2].mxu0 %v698_v60  ;;  %3594 = vmatpush3.bf16.msra.mxu1 %v3591_v55  ;;  %v744_v60 = vld [vmem:[%s5092_s7 + $0x180] sm:$0xff] }
 0x21b   : > { %866 = vmatprep.mubr.f32.mxu0 %v701_v62  ;;  %v746_v62 = vld [vmem:[%s5092_s7 + $0x190] sm:$0xff] }
 0x21e   : > { %867 = vmatmul.mubr.f32.gmra.mrb[4].mxu0 %v700_v2  ;;  %v751_v2 = vld [vmem:[%s5092_s7 + $0x1b8] sm:$0xff] }
 0x21f   : > { %871 = vmatprep.mubr.f32.mxu0 %v703_v4  ;;  %v753_v4 = vld [vmem:[%s5092_s7 + $0x1c8] sm:$0xff] }
 0x222   : > { %872 = vmatmul.mubr.f32.gmra.mrb[6].mxu0 %v702_v7  ;;  %v754_v7 = vld [vmem:[%s5092_s7 + $0x1d0] sm:$0xff] }
 0x223   : > { %876 = vmatprep.mubr.f32.mxu0 %v705_v9  ;;  %v756_v9 = vld [vmem:[%s5092_s7 + $0x1e0] sm:$0xff] }
 0x226   : > { %877 = vmatmul.mubr.f32.gmra.mrb[8].mxu0 %v704_v13  ;;  %v1297_v13 = vld [vmem:[#allocation9] sm:$0xff] }
 0x227   : > { %881 = vmatprep.mubr.f32.mxu0 %v707_v15  ;;  %v3595_v15 = vpack.c.bf16 %v1298_v14, %v1297_v13 }
 0x229   : > { %3596 = vmatprep.subr.bf16.mxu1 %v3595_v15 }
 0x22a   : > { %882 = vmatmul.mubr.f32.gmra.mrb[10].mxu0 %v706_v18  ;;  %v1300_v18 = vld [vmem:[#allocation9 + $0x18] sm:$0xff] }
 0x22b   : > { %886 = vmatprep.mubr.f32.mxu0 %v709_v20  ;;  %v3599_v20 = vpack.c.bf16 %v1300_v18, %v1299_v17  ;;  %v1311_v17 = vld [vmem:[#allocation9 + $0x70] sm:$0xff]  ;;  %v1312_v18 = vld [vmem:[#allocation9 + $0x78] sm:$0xff] }
 0x22e   : > { %887 = vmatmul.mubr.f32.gmra.mrb[12].mxu0 %v708_v21 }
 0x22f   : > { %891 = vmatprep.mubr.f32.mxu0 %v711_v22  ;;  %v1301_v22 = vld [vmem:[#allocation9 + $0x20] sm:$0xff] }
 0x232   : > { %892 = vmatmul.mubr.f32.gmra.mrb[14].mxu0 %v710_v23  ;;  %v1302_v23 = vld [vmem:[#allocation9 + $0x28] sm:$0xff] }
 0x233   : > { %896 = vmatprep.mubr.f32.mxu0 %v713_v24 }
 0x236   : > { %897 = vmatmul.mubr.f32.gmra.mrb[16].mxu0 %v712_v25  ;;  %v3603_v25 = vpack.c.bf16 %v1302_v23, %v1301_v22 }
 0x237   : > { %901 = vmatprep.mubr.f32.mxu0 %v715_v26 }
 0x23a   : > { %902 = vmatmul.mubr.f32.gmra.mrb[18].mxu0 %v714_v27  ;;  %v1303_v27 = vld [vmem:[#allocation9 + $0x30] sm:$0xff] }
 0x23b   : > { %906 = vmatprep.mubr.f32.mxu0 %v717_v28  ;;  %v1304_v28 = vld [vmem:[#allocation9 + $0x38] sm:$0xff] }
 0x23e   : > { %907 = vmatmul.mubr.f32.gmra.mrb[20].mxu0 %v716_v29 }
 0x23f   : > { %911 = vmatprep.mubr.f32.mxu0 %v719_v30  ;;  %v3607_v30 = vpack.c.bf16 %v1304_v28, %v1303_v27 }
 0x242   : > { %912 = vmatmul.mubr.f32.gmra.mrb[22].mxu0 %v718_v31 }
 0x243   : > { %916 = vmatprep.mubr.f32.mxu0 %v721_v32  ;;  %v1305_v32 = vld [vmem:[#allocation9 + $0x40] sm:$0xff] }
 0x246   : > { %917 = vmatmul.mubr.f32.gmra.mrb[24].mxu0 %v720_v33  ;;  %v1306_v33 = vld [vmem:[#allocation9 + $0x48] sm:$0xff] }
 0x247   : > { %921 = vmatprep.mubr.f32.mxu0 %v723_v34 }
 0x24a   : > { %922 = vmatmul.mubr.f32.gmra.mrb[26].mxu0 %v722_v35  ;;  %v3611_v35 = vpack.c.bf16 %v1306_v33, %v1305_v32 }
 0x24b   : > { %926 = vmatprep.mubr.f32.mxu0 %v725_v36 }
 0x24e   : > { %927 = vmatmul.mubr.f32.gmra.mrb[28].mxu0 %v724_v37  ;;  %v1307_v37 = vld [vmem:[#allocation9 + $0x50] sm:$0xff] }
 0x24f   : > { %931 = vmatprep.mubr.f32.mxu0 %v727_v38  ;;  %v1308_v38 = vld [vmem:[#allocation9 + $0x58] sm:$0xff] }
 0x252   : > { %932 = vmatmul.mubr.f32.gmra.mrb[30].mxu0 %v726_v39 }
 0x253   : > { %936 = vmatprep.mubr.f32.mxu0 %v729_v40  ;;  %v3615_v40 = vpack.c.bf16 %v1308_v38, %v1307_v37 }
 0x256   : > { %937 = vmatmul.mubr.f32.gmra.mrb[32].mxu0 %v728_v41 }
 0x257   : > { %941 = vmatprep.mubr.f32.mxu0 %v731_v42  ;;  %v1309_v42 = vld [vmem:[#allocation9 + $0x60] sm:$0xff] }
 0x25a   : > { %942 = vmatmul.mubr.f32.gmra.mrb[34].mxu0 %v730_v43  ;;  %v1310_v43 = vld [vmem:[#allocation9 + $0x68] sm:$0xff] }
 0x25b   : > { %946 = vmatprep.mubr.f32.mxu0 %v733_v44 }
 0x25e   : > { %947 = vmatmul.mubr.f32.gmra.mrb[36].mxu0 %v732_v45  ;;  %v3619_v45 = vpack.c.bf16 %v1310_v43, %v1309_v42 }
 0x25f   : > { %951 = vmatprep.mubr.f32.mxu0 %v735_v46 }
 0x262   : > { %952 = vmatmul.mubr.f32.gmra.mrb[38].mxu0 %v734_v47 }
 0x263   : > { %956 = vmatprep.mubr.f32.mxu0 %v737_v48 }
 0x266   : > { %957 = vmatmul.mubr.f32.gmra.mrb[40].mxu0 %v736_v49 }
 0x267   : > { %961 = vmatprep.mubr.f32.mxu0 %v739_v50 }
 0x26a   : > { %962 = vmatmul.mubr.f32.gmra.mrb[42].mxu0 %v738_v51 }
 0x26b   : > { %966 = vmatprep.mubr.f32.mxu0 %v741_v54 }
 0x26e   : > { %967 = vmatmul.mubr.f32.gmra.mrb[44].mxu0 %v740_v56 }
 0x26f   : > { %971 = vmatprep.mubr.f32.mxu0 %v743_v57 }
 0x272   : > { %972 = vmatmul.mubr.f32.gmra.mrb[46].mxu0 %v742_v58 }
 0x273   : > { %976 = vmatprep.mubr.f32.mxu0 %v745_v59 }
 0x276   : > { %977 = vmatmul.mubr.f32.gmra.mrb[48].mxu0 %v744_v60 }
 0x277   : > { %981 = vmatprep.mubr.f32.mxu0 %v747_v61 }
 0x27a   : > { %982 = vmatmul.mubr.f32.gmra.mrb[50].mxu0 %v746_v62 }
 0x27b   : > { %986 = vmatprep.mubr.f32.mxu0 %v749_v63 }
 0x27e   : > { %987 = vmatmul.mubr.f32.gmra.mrb[52].mxu0 %v748_v1 }
 0x27f   : > { %991 = vmatprep.mubr.f32.mxu0 %v751_v2 }
 0x282   : > { %992 = vmatmul.mubr.f32.gmra.mrb[54].mxu0 %v750_v3 }
 0x283   : > { %996 = vmatprep.mubr.f32.mxu0 %v753_v4 }
 0x286   : > { %997 = vmatmul.mubr.f32.gmra.mrb[56].mxu0 %v752_v5 }
 0x287   : > { %1001 = vmatprep.mubr.f32.mxu0 %v755_v6 }
 0x28a   : > { %1002 = vmatmul.mubr.f32.gmra.mrb[58].mxu0 %v754_v7 }
 0x28b   : > { %1006 = vmatprep.mubr.f32.mxu0 %v757_v8 }
 0x28e   : > { %1007 = vmatmul.mubr.f32.gmra.mrb[60].mxu0 %v756_v9 }
 0x28f   : > { %1011 = vmatprep.mubr.f32.mxu0 %v759_v10 }
 0x292   : > { %1012 = vmatmul.mubr.f32.gmra.mrb[62].mxu0 %v758_v11 }
 0x2e9   : > { %v858_v16 = vpop.f32.mrb[0].mxu0 }
 0x2ea   : > { %v860_v19 = vpop.f32.mrb[1].mxu0  ;;  %3157 = vmatprep.mubr.f32.mxu1 %v858_v16 }
 0x2ed   : > { %v863_v21 = vpop.f32.mrb[2].mxu0 }
 0x2ee   : > { %v865_v24 = vpop.f32.mrb[3].mxu0  ;;  %3158 = vmatmul.mubr.f32.vlgmr.msra.gmra.mrb[0].mxu1 %v863_v21 }
 0x2ef   : > { %3598 = vmatpush3.bf16.msra.mxu1 %v3595_v15 }
 0x2f0   : > { %3600 = vmatprep.subr.bf16.mxu1 %v3599_v20 }
 0x2f1   : > { %v868_v26 = vpop.f32.mrb[4].mxu0 }
 0x2f2   : > { %v870_v29 = vpop.f32.mrb[5].mxu0  ;;  %3160 = vmatprep.mubr.f32.mxu1 %v868_v26 }
 0x2f3   : > { %3602 = vmatpush3.bf16.msra.mxu1 %v3599_v20  ;;  %v3623_v20 = vpack.c.bf16 %v1312_v18, %v1311_v17 }
 0x2f4   : > { %3604 = vmatprep.subr.bf16.mxu1 %v3603_v25 }
 0x2f5   : > { %v873_v31 = vpop.f32.mrb[6].mxu0 }
 0x2f6   : > { %v875_v34 = vpop.f32.mrb[7].mxu0  ;;  %3161 = vmatmul.mubr.f32.gmra.mrb[2].mxu1 %v873_v31 }
 0x2f7   : > { %3606 = vmatpush3.bf16.msra.mxu1 %v3603_v25 }
 0x2f8   : > { %3608 = vmatprep.subr.bf16.mxu1 %v3607_v30 }
 0x2f9   : > { %v878_v36 = vpop.f32.mrb[8].mxu0 }
 0x2fa   : > { %v880_v39 = vpop.f32.mrb[9].mxu0  ;;  %3163 = vmatprep.mubr.f32.mxu1 %v878_v36 }
 0x2fb   : > { %3610 = vmatpush3.bf16.msra.mxu1 %v3607_v30  ;;  %v5250_v39 = vld [vmem:[#allocation7] ss:$0 sm:$0xff] }
 0x2fc   : > { %3612 = vmatprep.subr.bf16.mxu1 %v3611_v35 }
 0x2fd   : > { %v883_v41 = vpop.f32.mrb[10].mxu0 }
 0x2fe   : > { %v885_v44 = vpop.f32.mrb[11].mxu0  ;;  %3164 = vmatmul.mubr.f32.gmra.mrb[4].mxu1 %v883_v41 }
 0x2ff   : > { %3614 = vmatpush3.bf16.msra.mxu1 %v3611_v35 }
 0x300   : > { %3616 = vmatprep.subr.bf16.mxu1 %v3615_v40 }
 0x301   : > { %v888_v46 = vpop.f32.mrb[12].mxu0 }
 0x302   : > { %v890_v47 = vpop.f32.mrb[13].mxu0  ;;  %3166 = vmatprep.mubr.f32.mxu1 %v888_v46 }
 0x303   : > { %3618 = vmatpush3.bf16.msra.mxu1 %v3615_v40 }
 0x304   : > { %3620 = vmatprep.subr.bf16.mxu1 %v3619_v45 }
 0x305   : > { %v893_v48 = vpop.f32.mrb[14].mxu0 }
 0x306   : > { %v895_v49 = vpop.f32.mrb[15].mxu0  ;;  %3167 = vmatmul.mubr.f32.gmra.mrb[6].mxu1 %v893_v48 }
 0x307   : > { %3622 = vmatpush3.bf16.msra.mxu1 %v3619_v45 }
 0x308   : > { %3624 = vmatprep.subr.bf16.mxu1 %v3623_v20 }
 0x309   : > { %v898_v50 = vpop.f32.mrb[16].mxu0 }
 0x30a   : > { %v900_v51 = vpop.f32.mrb[17].mxu0  ;;  %3169 = vmatprep.mubr.f32.mxu1 %v898_v50 }
 0x30b   : > { %3626 = vmatpush3.bf16.msra.mxu1 %v3623_v20 }
 0x30c   : > { %3627 = vmatprep.subr.bf16.mxu1 %v4554_v0 }
 0x30d   : > { %v903_v52 = vpop.f32.mrb[18].mxu0 }
 0x30e   : > { %v905_v53 = vpop.f32.mrb[19].mxu0  ;;  %3170 = vmatmul.mubr.f32.gmra.mrb[8].mxu1 %v903_v52 }
 0x311   : > { %v908_v54 = vpop.f32.mrb[20].mxu0 }
 0x312   : > { %v910_v55 = vpop.f32.mrb[21].mxu0  ;;  %3172 = vmatprep.mubr.f32.mxu1 %v908_v54 }
 0x315   : > { %v913_v56 = vpop.f32.mrb[22].mxu0 }
 0x316   : > { %v915_v57 = vpop.f32.mrb[23].mxu0  ;;  %3173 = vmatmul.mubr.f32.gmra.mrb[10].mxu1 %v913_v56 }
 0x319   : > { %v918_v58 = vpop.f32.mrb[24].mxu0 }
 0x31a   : > { %v920_v59 = vpop.f32.mrb[25].mxu0  ;;  %3175 = vmatprep.mubr.f32.mxu1 %v918_v58 }
 0x31d   : > { %v923_v60 = vpop.f32.mrb[26].mxu0 }
 0x31e   : > { %v925_v61 = vpop.f32.mrb[27].mxu0  ;;  %3176 = vmatmul.mubr.f32.gmra.mrb[12].mxu1 %v923_v60 }
 0x321   : > { %v928_v62 = vpop.f32.mrb[28].mxu0 }
 0x322   : > { %v930_v63 = vpop.f32.mrb[29].mxu0  ;;  %3178 = vmatprep.mubr.f32.mxu1 %v928_v62 }
 0x325   : > { %v933_v1 = vpop.f32.mrb[30].mxu0 }
 0x326   : > { %v935_v2 = vpop.f32.mrb[31].mxu0  ;;  %3179 = vmatmul.mubr.f32.gmra.mrb[14].mxu1 %v933_v1 }
 0x329   : > { %v938_v3 = vpop.f32.mrb[32].mxu0 }
 0x32a   : > { %v940_v4 = vpop.f32.mrb[33].mxu0  ;;  %3181 = vmatprep.mubr.f32.mxu1 %v938_v3 }
 0x32d   : > { %v943_v5 = vpop.f32.mrb[34].mxu0 }
 0x32e   : > { %v945_v6 = vpop.f32.mrb[35].mxu0  ;;  %3182 = vmatmul.mubr.f32.gmra.mrb[16].mxu1 %v943_v5 }
 0x331   : > { %v948_v7 = vpop.f32.mrb[36].mxu0 }
 0x332   : > { %v950_v8 = vpop.f32.mrb[37].mxu0  ;;  %3184 = vmatprep.mubr.f32.mxu1 %v948_v7 }
 0x335   : > { %v953_v9 = vpop.f32.mrb[38].mxu0 }
 0x336   : > { %v955_v10 = vpop.f32.mrb[39].mxu0  ;;  %3185 = vmatmul.mubr.f32.gmra.mrb[18].mxu1 %v953_v9 }
 0x339   : > { %v958_v11 = vpop.f32.mrb[40].mxu0 }
 0x33a   : > { %v960_v13 = vpop.f32.mrb[41].mxu0  ;;  %3187 = vmatprep.mubr.f32.mxu1 %v958_v11 }
 0x33d   : > { %v963_v14 = vpop.f32.mrb[42].mxu0 }
 0x33e   : > { %v965_v15 = vpop.f32.mrb[43].mxu0  ;;  %3188 = vmatmul.mubr.f32.gmra.mrb[20].mxu1 %v963_v14 }
 0x341   : > { %v968_v16 = vpop.f32.mrb[44].mxu0 }
 0x342   : > { %v970_v19 = vpop.f32.mrb[45].mxu0  ;;  %3190 = vmatprep.mubr.f32.mxu1 %v968_v16 }
 0x345   : > { %v973_v21 = vpop.f32.mrb[46].mxu0 }
 0x346   : > { %v975_v22 = vpop.f32.mrb[47].mxu0  ;;  %3191 = vmatmul.mubr.f32.gmra.mrb[22].mxu1 %v973_v21 }
 0x349   : > { %v978_v23 = vpop.f32.mrb[48].mxu0 }
 0x34a   : > { %v980_v24 = vpop.f32.mrb[49].mxu0  ;;  %3193 = vmatprep.mubr.f32.mxu1 %v978_v23 }
 0x34d   : > { %v983_v25 = vpop.f32.mrb[50].mxu0 }
 0x34e   : > { %v985_v26 = vpop.f32.mrb[51].mxu0  ;;  %3194 = vmatmul.mubr.f32.gmra.mrb[24].mxu1 %v983_v25 }
 0x351   : > { %v988_v27 = vpop.f32.mrb[52].mxu0 }
 0x352   : > { %v990_v28 = vpop.f32.mrb[53].mxu0  ;;  %3196 = vmatprep.mubr.f32.mxu1 %v988_v27 }
 0x355   : > { %v993_v29 = vpop.f32.mrb[54].mxu0 }
 0x356   : > { %v995_v30 = vpop.f32.mrb[55].mxu0  ;;  %3197 = vmatmul.mubr.f32.gmra.mrb[26].mxu1 %v993_v29 }
 0x359   : > { %v998_v31 = vpop.f32.mrb[56].mxu0 }
 0x35a   : > { %v1000_v32 = vpop.f32.mrb[57].mxu0  ;;  %3199 = vmatprep.mubr.f32.mxu1 %v998_v31 }
 0x35d   : > { %v1003_v33 = vpop.f32.mrb[58].mxu0 }
 0x35e   : > { %v1005_v34 = vpop.f32.mrb[59].mxu0  ;;  %3200 = vmatmul.mubr.f32.gmra.mrb[28].mxu1 %v1003_v33 }
 0x361   : > { %v1008_v35 = vpop.f32.mrb[60].mxu0 }
 0x362   : > { %v1010_v36 = vpop.f32.mrb[61].mxu0  ;;  %3202 = vmatprep.mubr.f32.mxu1 %v1008_v35 }
 0x365   : > { %v1013_v37 = vpop.f32.mrb[62].mxu0 }
 0x366   : > { %v1015_v38 = vpop.f32.mrb[63].mxu0  ;;  %3203 = vmatmul.mubr.f32.gmra.mrb[30].mxu1 %v1013_v37 }
 0x3c1   : > { %v3159_v40 = vpop.f32.mrb[0].mxu1 }
 0x3c2   : > { %v1112_v41 = vadd.f32 %v3159_v40, %v5250_v39  ;;  %v1106_v42 = vpop.f32.mrb[1].mxu1 }
 0x3c3   : > { %v1107_v43 = vadd.f32 %v5250_v39, %v1106_v42 }
 0x3c4   : > { %v1266_v45 = vmax.f32 %v1112_v41, 0.0 }
 0x3c5   : > { %v1265_v44 = vmax.f32 %v1107_v43, 0.0 }
 0x3c7   : > { %3237 = vmatprep.mubr.f32.mxu1 %v1265_v44 }
 0x3c8   : > { %3238 = vmatmul.mubr.f32.vlgmr.msra.gmra.mrb[32].mxu1 %v1266_v45 }
 0x3c9   : > { %v3162_v46 = vpop.f32.mrb[2].mxu1 }
 0x3ca   : > { %v1122_v47 = vadd.f32 %v3162_v46, %v5250_v39  ;;  %v1116_v48 = vpop.f32.mrb[3].mxu1 }
 0x3cb   : > { %v1117_v49 = vadd.f32 %v5250_v39, %v1116_v48 }
 0x3cc   : > { %v1268_v51 = vmax.f32 %v1122_v47, 0.0 }
 0x3cd   : > { %v1267_v50 = vmax.f32 %v1117_v49, 0.0 }
 0x3cf   : > { %3240 = vmatprep.mubr.f32.mxu1 %v1267_v50 }
 0x3d0   : > { %3241 = vmatmul.mubr.f32.gmra.mrb[34].mxu1 %v1268_v51 }
 0x3d1   : > { %v3165_v52 = vpop.f32.mrb[4].mxu1 }
 0x3d2   : > { %v1132_v53 = vadd.f32 %v3165_v52, %v5250_v39  ;;  %v1126_v54 = vpop.f32.mrb[5].mxu1 }
 0x3d3   : > { %v1127_v55 = vadd.f32 %v5250_v39, %v1126_v54 }
 0x3d4   : > { %v1270_v57 = vmax.f32 %v1132_v53, 0.0 }
 0x3d5   : > { %v1269_v56 = vmax.f32 %v1127_v55, 0.0 }
 0x3d7   : > { %3243 = vmatprep.mubr.f32.mxu1 %v1269_v56 }
 0x3d8   : > { %3244 = vmatmul.mubr.f32.gmra.mrb[36].mxu1 %v1270_v57 }
 0x3d9   : > { %v3168_v58 = vpop.f32.mrb[6].mxu1 }
 0x3da   : > { %v1142_v59 = vadd.f32 %v3168_v58, %v5250_v39  ;;  %v1136_v60 = vpop.f32.mrb[7].mxu1 }
 0x3db   : > { %v1137_v61 = vadd.f32 %v5250_v39, %v1136_v60 }
 0x3dc   : > { %v1272_v63 = vmax.f32 %v1142_v59, 0.0 }
 0x3dd   : > { %v1271_v62 = vmax.f32 %v1137_v61, 0.0 }
 0x3df   : > { %3246 = vmatprep.mubr.f32.mxu1 %v1271_v62 }
 0x3e0   : > { %3247 = vmatmul.mubr.f32.gmra.mrb[38].mxu1 %v1272_v63 }
 0x3e1   : > { %v3171_v1 = vpop.f32.mrb[8].mxu1 }
 0x3e2   : > { %v1152_v2 = vadd.f32 %v3171_v1, %v5250_v39  ;;  %v1146_v3 = vpop.f32.mrb[9].mxu1 }
 0x3e3   : > { %v1147_v4 = vadd.f32 %v5250_v39, %v1146_v3 }
 0x3e4   : > { %v1274_v6 = vmax.f32 %v1152_v2, 0.0 }
 0x3e5   : > { %v1273_v5 = vmax.f32 %v1147_v4, 0.0 }
 0x3e7   : > { %3249 = vmatprep.mubr.f32.mxu1 %v1273_v5 }
 0x3e8   : > { %3250 = vmatmul.mubr.f32.gmra.mrb[40].mxu1 %v1274_v6 }
 0x3e9   : > { %v3174_v7 = vpop.f32.mrb[10].mxu1 }
 0x3ea   : > { %v1162_v8 = vadd.f32 %v3174_v7, %v5250_v39  ;;  %v1156_v9 = vpop.f32.mrb[11].mxu1 }
 0x3eb   : > { %v1157_v10 = vadd.f32 %v5250_v39, %v1156_v9 }
 0x3ec   : > { %v1276_v13 = vmax.f32 %v1162_v8, 0.0 }
 0x3ed   : > { %v1275_v11 = vmax.f32 %v1157_v10, 0.0 }
 0x3ef   : > { %3252 = vmatprep.mubr.f32.mxu1 %v1275_v11 }
 0x3f0   : > { %3253 = vmatmul.mubr.f32.gmra.mrb[42].mxu1 %v1276_v13  ;;  %v5285_v13 = vld [vmem:[#allocation10] ss:$0 sm:$0xff] }
 0x3f1   : > { %v3177_v14 = vpop.f32.mrb[12].mxu1 }
 0x3f2   : > { %v1172_v15 = vadd.f32 %v3177_v14, %v5250_v39  ;;  %v1166_v16 = vpop.f32.mrb[13].mxu1 }
 0x3f3   : > { %v1167_v17 = vadd.f32 %v5250_v39, %v1166_v16 }
 0x3f4   : > { %v1278_v19 = vmax.f32 %v1172_v15, 0.0 }
 0x3f5   : > { %v1277_v18 = vmax.f32 %v1167_v17, 0.0 }
 0x3f7   : > { %3255 = vmatprep.mubr.f32.mxu1 %v1277_v18 }
 0x3f8   : > { %3256 = vmatmul.mubr.f32.gmra.mrb[44].mxu1 %v1278_v19 }
 0x3f9   : > { %v3180_v20 = vpop.f32.mrb[14].mxu1 }
 0x3fa   : > { %v1182_v21 = vadd.f32 %v3180_v20, %v5250_v39  ;;  %v1176_v22 = vpop.f32.mrb[15].mxu1 }
 0x3fb   : > { %v1177_v23 = vadd.f32 %v5250_v39, %v1176_v22 }
 0x3fc   : > { %v1280_v25 = vmax.f32 %v1182_v21, 0.0 }
 0x3fd   : > { %v1279_v24 = vmax.f32 %v1177_v23, 0.0 }
 0x3ff   : > { %3258 = vmatprep.mubr.f32.mxu1 %v1279_v24 }
 0x400   : > { %3259 = vmatmul.mubr.f32.gmra.mrb[46].mxu1 %v1280_v25 }
 0x401   : > { %v3183_v26 = vpop.f32.mrb[16].mxu1 }
 0x402   : > { %v1192_v27 = vadd.f32 %v3183_v26, %v5250_v39  ;;  %v1186_v28 = vpop.f32.mrb[17].mxu1 }
 0x403   : > { %v1187_v29 = vadd.f32 %v5250_v39, %v1186_v28 }
 0x404   : > { %v1282_v31 = vmax.f32 %v1192_v27, 0.0 }
 0x405   : > { %v1281_v30 = vmax.f32 %v1187_v29, 0.0 }
 0x407   : > { %3261 = vmatprep.mubr.f32.mxu1 %v1281_v30 }
 0x408   : > { %3262 = vmatmul.mubr.f32.gmra.mrb[48].mxu1 %v1282_v31 }
 0x409   : > { %v3186_v32 = vpop.f32.mrb[18].mxu1 }
 0x40a   : > { %v1202_v33 = vadd.f32 %v3186_v32, %v5250_v39  ;;  %v1196_v34 = vpop.f32.mrb[19].mxu1 }
 0x40b   : > { %v1197_v35 = vadd.f32 %v5250_v39, %v1196_v34 }
 0x40c   : > { %v1284_v37 = vmax.f32 %v1202_v33, 0.0 }
 0x40d   : > { %v1283_v36 = vmax.f32 %v1197_v35, 0.0 }
 0x40f   : > { %3264 = vmatprep.mubr.f32.mxu1 %v1283_v36 }
 0x410   : > { %3265 = vmatmul.mubr.f32.gmra.mrb[50].mxu1 %v1284_v37 }
 0x411   : > { %v3189_v38 = vpop.f32.mrb[20].mxu1 }
 0x412   : > { %v1212_v40 = vadd.f32 %v3189_v38, %v5250_v39  ;;  %v1206_v41 = vpop.f32.mrb[21].mxu1 }
 0x413   : > { %v1207_v42 = vadd.f32 %v5250_v39, %v1206_v41 }
 0x414   : > { %v1286_v44 = vmax.f32 %v1212_v40, 0.0 }
 0x415   : > { %v1285_v43 = vmax.f32 %v1207_v42, 0.0 }
 0x417   : > { %3267 = vmatprep.mubr.f32.mxu1 %v1285_v43 }
 0x418   : > { %3268 = vmatmul.mubr.f32.gmra.mrb[52].mxu1 %v1286_v44 }
 0x419   : > { %v3192_v45 = vpop.f32.mrb[22].mxu1 }
 0x41a   : > { %v1222_v46 = vadd.f32 %v3192_v45, %v5250_v39  ;;  %v1216_v47 = vpop.f32.mrb[23].mxu1 }
 0x41b   : > { %v1217_v48 = vadd.f32 %v5250_v39, %v1216_v47 }
 0x41c   : > { %v1288_v50 = vmax.f32 %v1222_v46, 0.0 }
 0x41d   : > { %v1287_v49 = vmax.f32 %v1217_v48, 0.0 }
 0x41f   : > { %3270 = vmatprep.mubr.f32.mxu1 %v1287_v49 }
 0x420   : > { %3271 = vmatmul.mubr.f32.gmra.mrb[54].mxu1 %v1288_v50 }
 0x421   : > { %v3195_v51 = vpop.f32.mrb[24].mxu1 }
 0x422   : > { %v1232_v52 = vadd.f32 %v3195_v51, %v5250_v39  ;;  %v1226_v53 = vpop.f32.mrb[25].mxu1 }
 0x423   : > { %v1227_v54 = vadd.f32 %v5250_v39, %v1226_v53 }
 0x424   : > { %v1290_v56 = vmax.f32 %v1232_v52, 0.0 }
 0x425   : > { %v1289_v55 = vmax.f32 %v1227_v54, 0.0 }
 0x427   : > { %3273 = vmatprep.mubr.f32.mxu1 %v1289_v55 }
 0x428   : > { %3274 = vmatmul.mubr.f32.gmra.mrb[56].mxu1 %v1290_v56 }
 0x429   : > { %v3198_v57 = vpop.f32.mrb[26].mxu1 }
 0x42a   : > { %v1242_v58 = vadd.f32 %v3198_v57, %v5250_v39  ;;  %v1236_v59 = vpop.f32.mrb[27].mxu1 }
 0x42b   : > { %v1237_v60 = vadd.f32 %v5250_v39, %v1236_v59 }
 0x42c   : > { %v1292_v62 = vmax.f32 %v1242_v58, 0.0 }
 0x42d   : > { %v1291_v61 = vmax.f32 %v1237_v60, 0.0 }
 0x42f   : > { %3276 = vmatprep.mubr.f32.mxu1 %v1291_v61 }
 0x430   : > { %3277 = vmatmul.mubr.f32.gmra.mrb[58].mxu1 %v1292_v62 }
 0x431   : > { %v3201_v63 = vpop.f32.mrb[28].mxu1 }
 0x432   : > { %v1252_v1 = vadd.f32 %v3201_v63, %v5250_v39  ;;  %v1246_v2 = vpop.f32.mrb[29].mxu1 }
 0x433   : > { %v1247_v3 = vadd.f32 %v5250_v39, %v1246_v2 }
 0x434   : > { %v1294_v5 = vmax.f32 %v1252_v1, 0.0 }
 0x435   : > { %v1293_v4 = vmax.f32 %v1247_v3, 0.0 }
 0x437   : > { %3279 = vmatprep.mubr.f32.mxu1 %v1293_v4 }
 0x438   : > { %3280 = vmatmul.mubr.f32.gmra.mrb[60].mxu1 %v1294_v5 }
 0x439   : > { %v3204_v6 = vpop.f32.mrb[30].mxu1 }
 0x43a   : > { %v1262_v7 = vadd.f32 %v3204_v6, %v5250_v39  ;;  %v1256_v8 = vpop.f32.mrb[31].mxu1 }
 0x43b   : > { %v1257_v9 = vadd.f32 %v5250_v39, %v1256_v8 }
 0x43c   : > { %v1296_v11 = vmax.f32 %v1262_v7, 0.0 }
 0x43d   : > { %v1295_v10 = vmax.f32 %v1257_v9, 0.0 }
 0x43f   : > { %3282 = vmatprep.mubr.f32.mxu1 %v1295_v10 }
 0x440   : > { %3283 = vmatmul.mubr.f32.gmra.mrb[62].mxu1 %v1296_v11 }
 0x441   : > { %1641 = vmatprep.mubr.f32.mxu1 %v5146_v12 }
 0x49b   : > { %v3239_v14 = vpop.f32.mrb[32].mxu1 }
 0x49c   : > { %v1392_v15 = vadd.f32 %v3239_v14, %v5285_v13  ;;  %v1386_v16 = vpop.f32.mrb[33].mxu1 }
 0x49d   : > { %v1387_v17 = vadd.f32 %v5285_v13, %v1386_v16 }
 0x49e   : > { %v1546_v18 = vmax.f32 %v1392_v15, 0.0 }
 0x49f   : > { %v1545_v19 = vmax.f32 %v1387_v17, 0.0 }
 0x4a1   : > { %v3628_v20 = vpack.c.bf16 %v1546_v18, %v1545_v19 }
 0x4a3   : > { %v3242_v21 = vpop.f32.mrb[34].mxu1  ;;  %3629 = vmatpush1.bf16.msra.mxu1 %v3628_v20 }
 0x4a4   : > { %v1402_v39 = vadd.f32 %v3242_v21, %v5285_v13  ;;  %v1396_v22 = vpop.f32.mrb[35].mxu1  ;;  %3630 = vmatprep.subr.bf16.mxu1 %v4554_v0 }
 0x4a5   : > { %v1397_v12 = vadd.f32 %v5285_v13, %v1396_v22 }
 0x4a6   : > { %v1548_v23 = vmax.f32 %v1402_v39, 0.0 }
 0x4a7   : > { %v1547_v24 = vmax.f32 %v1397_v12, 0.0 }
 0x4a9   : > { %v3631_v25 = vpack.c.bf16 %v1548_v23, %v1547_v24 }
 0x4ab   : > { %v3245_v26 = vpop.f32.mrb[36].mxu1  ;;  %3632 = vmatpush1.bf16.msra.mxu1 %v3631_v25 }
 0x4ac   : > { %v1412_v27 = vadd.f32 %v3245_v26, %v5285_v13  ;;  %v1406_v28 = vpop.f32.mrb[37].mxu1  ;;  %3633 = vmatprep.subr.bf16.mxu1 %v4554_v0 }
 0x4ad   : > { %v1407_v29 = vadd.f32 %v5285_v13, %v1406_v28 }
 0x4ae   : > { %v1550_v30 = vmax.f32 %v1412_v27, 0.0 }
 0x4af   : > { %v1549_v31 = vmax.f32 %v1407_v29, 0.0 }
 0x4b1   : > { %v3634_v32 = vpack.c.bf16 %v1550_v30, %v1549_v31 }
 0x4b3   : > { %v3248_v33 = vpop.f32.mrb[38].mxu1  ;;  %3635 = vmatpush1.bf16.msra.mxu1 %v3634_v32 }
 0x4b4   : > { %v1422_v34 = vadd.f32 %v3248_v33, %v5285_v13  ;;  %v1416_v35 = vpop.f32.mrb[39].mxu1  ;;  %3636 = vmatprep.subr.bf16.mxu1 %v4554_v0 }
 0x4b5   : > { %v1417_v36 = vadd.f32 %v5285_v13, %v1416_v35 }
 0x4b6   : > { %v1552_v37 = vmax.f32 %v1422_v34, 0.0 }
 0x4b7   : > { %v1551_v38 = vmax.f32 %v1417_v36, 0.0 }
 0x4b9   : > { %v3637_v40 = vpack.c.bf16 %v1552_v37, %v1551_v38 }
 0x4bb   : > { %v3251_v41 = vpop.f32.mrb[40].mxu1  ;;  %3638 = vmatpush1.bf16.msra.mxu1 %v3637_v40 }
 0x4bc   : > { %v1432_v42 = vadd.f32 %v3251_v41, %v5285_v13  ;;  %v1426_v43 = vpop.f32.mrb[41].mxu1  ;;  %3639 = vmatprep.subr.bf16.mxu1 %v4554_v0 }
 0x4bd   : > { %v1427_v44 = vadd.f32 %v5285_v13, %v1426_v43 }
 0x4be   : > { %v1554_v45 = vmax.f32 %v1432_v42, 0.0 }
 0x4bf   : > { %v1553_v46 = vmax.f32 %v1427_v44, 0.0 }
 0x4c1   : > { %v3640_v47 = vpack.c.bf16 %v1554_v45, %v1553_v46 }
 0x4c3   : > { %v3254_v48 = vpop.f32.mrb[42].mxu1  ;;  %3641 = vmatpush1.bf16.msra.mxu1 %v3640_v47 }
 0x4c4   : > { %v1442_v49 = vadd.f32 %v3254_v48, %v5285_v13  ;;  %v1436_v50 = vpop.f32.mrb[43].mxu1  ;;  %3642 = vmatprep.subr.bf16.mxu1 %v4554_v0 }
 0x4c5   : > { %v1437_v51 = vadd.f32 %v5285_v13, %v1436_v50 }
 0x4c6   : > { %v1556_v52 = vmax.f32 %v1442_v49, 0.0 }
 0x4c7   : > { %v1555_v53 = vmax.f32 %v1437_v51, 0.0 }
 0x4c9   : > { %v3643_v54 = vpack.c.bf16 %v1556_v52, %v1555_v53 }
 0x4cb   : > { %v3257_v55 = vpop.f32.mrb[44].mxu1  ;;  %3644 = vmatpush1.bf16.msra.mxu1 %v3643_v54 }
 0x4cc   : > { %v1452_v56 = vadd.f32 %v3257_v55, %v5285_v13  ;;  %v1446_v57 = vpop.f32.mrb[45].mxu1  ;;  %3645 = vmatprep.subr.bf16.mxu1 %v4554_v0 }
 0x4cd   : > { %v1447_v58 = vadd.f32 %v5285_v13, %v1446_v57 }
 0x4ce   : > { %v1558_v59 = vmax.f32 %v1452_v56, 0.0 }
 0x4cf   : > { %v1557_v60 = vmax.f32 %v1447_v58, 0.0 }
 0x4d1   : > { %v3646_v61 = vpack.c.bf16 %v1558_v59, %v1557_v60 }
 0x4d3   : > { %v3260_v62 = vpop.f32.mrb[46].mxu1  ;;  %3647 = vmatpush1.bf16.msra.mxu1 %v3646_v61 }
 0x4d4   : > { %v1462_v63 = vadd.f32 %v3260_v62, %v5285_v13  ;;  %v1456_v1 = vpop.f32.mrb[47].mxu1  ;;  %3648 = vmatprep.subr.bf16.mxu1 %v4554_v0 }
 0x4d5   : > { %v1457_v2 = vadd.f32 %v5285_v13, %v1456_v1  ;;  %v1803_v1 = vld [vmem:[#allocation12 + $0x8] sm:$0xff] }
 0x4d6   : > { %v1560_v3 = vmax.f32 %v1462_v63, 0.0  ;;  %v1802_v63 = vld [vmem:[#allocation12] sm:$0xff] }
 0x4d7   : > { %v1559_v4 = vmax.f32 %v1457_v2, 0.0  ;;  %v1804_v2 = vld [vmem:[#allocation12 + $0x10] sm:$0xff] }
 0x4d9   : > { %v3649_v5 = vpack.c.bf16 %v1560_v3, %v1559_v4  ;;  %v3675_v3 = vpack.c.bf16 %v1803_v1, %v1802_v63  ;;  %v1805_v4 = vld [vmem:[#allocation12 + $0x18] sm:$0xff]  ;;  %v1816_v63 = vld [vmem:[#allocation12 + $0x70] sm:$0xff] }
 0x4da   : > { %v1817_v1 = vld [vmem:[#allocation12 + $0x78] sm:$0xff] }
 0x4db   : > { %v3263_v6 = vpop.f32.mrb[48].mxu1  ;;  %3650 = vmatpush1.bf16.msra.mxu1 %v3649_v5  ;;  %v3679_v5 = vpack.c.bf16 %v1805_v4, %v1804_v2  ;;  %3676 = vmatprep.subr.bf16.mxu0 %v3675_v3  ;;  %v3703_v2 = vpack.c.bf16 %v1817_v1, %v1816_v63  ;;  %v4027_v4 = vld [vmem:[%s5092_s7 + $0x168] sm:$0xff] }
 0x4dc   : > { %v1472_v7 = vadd.f32 %v3263_v6, %v5285_v13  ;;  %v1466_v8 = vpop.f32.mrb[49].mxu1  ;;  %3651 = vmatprep.subr.bf16.mxu1 %v4554_v0  ;;  %v1806_v6 = vld [vmem:[#allocation12 + $0x20] sm:$0xff]  ;;  %3678 = vmatpush3.bf16.msra.mxu0 %v3675_v3  ;;  %v4026_v3 = vld [vmem:[%s5092_s7 + $0x150] sm:$0xff] }
 0x4dd   : > { %v1467_v9 = vadd.f32 %v5285_v13, %v1466_v8  ;;  %v3984_v8 = vld [vmem:[%s5092_s7] sm:$0xff]  ;;  %3680 = vmatprep.subr.bf16.mxu0 %v3679_v5 }
 0x4de   : > { %v1562_v10 = vmax.f32 %v1472_v7, 0.0  ;;  %v1807_v7 = vld [vmem:[#allocation12 + $0x28] sm:$0xff] }
 0x4df   : > { %v1561_v11 = vmax.f32 %v1467_v9, 0.0  ;;  %v3683_v9 = vpack.c.bf16 %v1807_v7, %v1806_v6  ;;  %v4029_v6 = vld [vmem:[%s5092_s7 + $0x178] sm:$0xff]  ;;  %v4030_v7 = vld [vmem:[%s5092_s7 + $0x170] sm:$0xff] }
 0x4e0   : > { %3682 = vmatpush3.bf16.msra.mxu0 %v3679_v5  ;;  %v4028_v5 = vld [vmem:[%s5092_s7 + $0x160] sm:$0xff] }
 0x4e1   : > { %v3652_v14 = vpack.c.bf16 %v1562_v10, %v1561_v11  ;;  %v1808_v10 = vld [vmem:[#allocation12 + $0x30] sm:$0xff]  ;;  %v1809_v11 = vld [vmem:[#allocation12 + $0x38] sm:$0xff]  ;;  %3684 = vmatprep.subr.bf16.mxu0 %v3683_v9 }
 0x4e3   : > { %v3266_v15 = vpop.f32.mrb[50].mxu1  ;;  %3653 = vmatpush1.bf16.msra.mxu1 %v3652_v14  ;;  %v3986_v14 = vld [vmem:[%s5092_s7 + $0x10] sm:$0xff] }
 0x4e4   : > { %v1482_v16 = vadd.f32 %v3266_v15, %v5285_v13  ;;  %v1476_v17 = vpop.f32.mrb[51].mxu1  ;;  %3654 = vmatprep.subr.bf16.mxu1 %v4554_v0  ;;  %v3987_v15 = vld [vmem:[%s5092_s7 + $0x28] sm:$0xff]  ;;  %3686 = vmatpush3.bf16.msra.mxu0 %v3683_v9  ;;  %v4033_v9 = vld [vmem:[%s5092_s7 + $0x198] sm:$0xff] }
 0x4e5   : > { %v1477_v18 = vadd.f32 %v5285_v13, %v1476_v17  ;;  %v1810_v17 = vld [vmem:[#allocation12 + $0x40] sm:$0xff] }
 0x4e6   : > { %v1564_v19 = vmax.f32 %v1482_v16, 0.0  ;;  %v3687_v16 = vpack.c.bf16 %v1809_v11, %v1808_v10  ;;  %v4034_v10 = vld [vmem:[%s5092_s7 + $0x190] sm:$0xff]  ;;  %v4035_v11 = vld [vmem:[%s5092_s7 + $0x1a8] sm:$0xff] }
 0x4e7   : > { %v1563_v20 = vmax.f32 %v1477_v18, 0.0  ;;  %v1811_v18 = vld [vmem:[#allocation12 + $0x48] sm:$0xff] }
 0x4e8   : > { %3688 = vmatprep.subr.bf16.mxu0 %v3687_v16 }
 0x4e9   : > { %v3655_v21 = vpack.c.bf16 %v1564_v19, %v1563_v20  ;;  %v3988_v19 = vld [vmem:[%s5092_s7 + $0x20] sm:$0xff]  ;;  %v3989_v20 = vld [vmem:[%s5092_s7 + $0x38] sm:$0xff]  ;;  %3690 = vmatpush3.bf16.msra.mxu0 %v3687_v16  ;;  %v4038_v16 = vld [vmem:[%s5092_s7 + $0x1b0] sm:$0xff] }
 0x4eb   : > { %v3269_v39 = vpop.f32.mrb[52].mxu1  ;;  %3656 = vmatpush1.bf16.msra.mxu1 %v3655_v21  ;;  %v3691_v21 = vpack.c.bf16 %v1811_v18, %v1810_v17  ;;  %v4039_v17 = vld [vmem:[%s5092_s7 + $0x1c8] sm:$0xff]  ;;  %v4040_v18 = vld [vmem:[%s5092_s7 + $0x1c0] sm:$0xff] }
 0x4ec   : > { %v1492_v22 = vadd.f32 %v3269_v39, %v5285_v13  ;;  %v1486_v12 = vpop.f32.mrb[53].mxu1  ;;  %3657 = vmatprep.subr.bf16.mxu1 %v4554_v0  ;;  %v1812_v39 = vld [vmem:[#allocation12 + $0x50] sm:$0xff] }
 0x4ed   : > { %v1487_v23 = vadd.f32 %v5285_v13, %v1486_v12  ;;  %v3990_v12 = vld [vmem:[%s5092_s7 + $0x30] sm:$0xff]  ;;  %3692 = vmatprep.subr.bf16.mxu0 %v3691_v21 }
 0x4ee   : > { %v1566_v24 = vmax.f32 %v1492_v22, 0.0  ;;  %v1813_v22 = vld [vmem:[#allocation12 + $0x58] sm:$0xff]  ;;  %3694 = vmatpush3.bf16.msra.mxu0 %v3691_v21  ;;  %v4043_v21 = vld [vmem:[%s5092_s7 + $0x1e8] sm:$0xff] }
 0x4ef   : > { %v1565_v25 = vmax.f32 %v1487_v23, 0.0  ;;  %v3991_v23 = vld [vmem:[%s5092_s7 + $0x48] sm:$0xff] }
 0x4f1   : > { %v3658_v26 = vpack.c.bf16 %v1566_v24, %v1565_v25  ;;  %v3695_v24 = vpack.c.bf16 %v1813_v22, %v1812_v39  ;;  %v1814_v25 = vld [vmem:[#allocation12 + $0x60] sm:$0xff]  ;;  %v4045_v22 = vld [vmem:[%s5092_s7 + $0x1f8] sm:$0xff] }
 0x4f2   : > { %v4044_v39 = vld [vmem:[%s5092_s7 + $0x1e0] sm:$0xff] }
 0x4f3   : > { %v3272_v27 = vpop.f32.mrb[54].mxu1  ;;  %3659 = vmatpush1.bf16.msra.mxu1 %v3658_v26  ;;  %v1815_v26 = vld [vmem:[#allocation12 + $0x68] sm:$0xff]  ;;  %3696 = vmatprep.subr.bf16.mxu0 %v3695_v24 }
 0x4f4   : > { %v1502_v28 = vadd.f32 %v3272_v27, %v5285_v13  ;;  %v1496_v29 = vpop.f32.mrb[55].mxu1  ;;  %3660 = vmatprep.subr.bf16.mxu1 %v4554_v0  ;;  %v3992_v27 = vld [vmem:[%s5092_s7 + $0x40] sm:$0xff]  ;;  %3698 = vmatpush3.bf16.msra.mxu0 %v3695_v24  ;;  %v2083_v24 = vld [vmem:[#allocation15 + $0x8] sm:$0xff] }
 0x4f5   : > { %v1497_v30 = vadd.f32 %v5285_v13, %v1496_v29  ;;  %v3699_v29 = vpack.c.bf16 %v1815_v26, %v1814_v25 }
 0x4f6   : > { %v1568_v31 = vmax.f32 %v1502_v28, 0.0  ;;  %v3993_v28 = vld [vmem:[%s5092_s7 + $0x58] sm:$0xff] }
 0x4f7   : > { %v1567_v32 = vmax.f32 %v1497_v30, 0.0  ;;  %v3994_v30 = vld [vmem:[%s5092_s7 + $0x50] sm:$0xff]  ;;  %3700 = vmatprep.subr.bf16.mxu0 %v3699_v29 }
 0x4f8   : > { %3702 = vmatpush3.bf16.msra.mxu0 %v3699_v29 }
 0x4f9   : > { %v3661_v33 = vpack.c.bf16 %v1568_v31, %v1567_v32  ;;  %v3995_v31 = vld [vmem:[%s5092_s7 + $0x68] sm:$0xff]  ;;  %v3996_v32 = vld [vmem:[%s5092_s7 + $0x60] sm:$0xff]  ;;  %3704 = vmatprep.subr.bf16.mxu0 %v3703_v2 }
 0x4fb   : > { %v3275_v34 = vpop.f32.mrb[56].mxu1  ;;  %3662 = vmatpush1.bf16.msra.mxu1 %v3661_v33  ;;  %v3997_v33 = vld [vmem:[%s5092_s7 + $0x78] sm:$0xff] }
 0x4fc   : > { %v1512_v35 = vadd.f32 %v3275_v34, %v5285_v13  ;;  %v1506_v36 = vpop.f32.mrb[57].mxu1  ;;  %3663 = vmatprep.subr.bf16.mxu1 %v4554_v0  ;;  %v3998_v34 = vld [vmem:[%s5092_s7 + $0x70] sm:$0xff]  ;;  %3706 = vmatpush3.bf16.msra.mxu0 %v3703_v2 }
 0x4fd   : > { %v1507_v37 = vadd.f32 %v5285_v13, %v1506_v36  ;;  %v4000_v36 = vld [vmem:[%s5092_s7 + $0x80] sm:$0xff] }
 0x4fe   : > { %v1570_v38 = vmax.f32 %v1512_v35, 0.0  ;;  %v3999_v35 = vld [vmem:[%s5092_s7 + $0x88] sm:$0xff] }
 0x4ff   : > { %v1569_v40 = vmax.f32 %v1507_v37, 0.0  ;;  %v4001_v37 = vld [vmem:[%s5092_s7 + $0x98] sm:$0xff] }
 0x501   : > { %v3664_v41 = vpack.c.bf16 %v1570_v38, %v1569_v40  ;;  %v4002_v38 = vld [vmem:[%s5092_s7 + $0x90] sm:$0xff]  ;;  %v4003_v40 = vld [vmem:[%s5092_s7 + $0xa8] sm:$0xff] }
 0x503   : > { %v3278_v42 = vpop.f32.mrb[58].mxu1  ;;  %3665 = vmatpush1.bf16.msra.mxu1 %v3664_v41  ;;  %v4004_v41 = vld [vmem:[%s5092_s7 + $0xa0] sm:$0xff] }
 0x504   : > { %v1522_v43 = vadd.f32 %v3278_v42, %v5285_v13  ;;  %v1516_v44 = vpop.f32.mrb[59].mxu1  ;;  %3666 = vmatprep.subr.bf16.mxu1 %v4554_v0  ;;  %v4005_v42 = vld [vmem:[%s5092_s7 + $0xb8] sm:$0xff] }
 0x505   : > { %v1517_v45 = vadd.f32 %v5285_v13, %v1516_v44  ;;  %v4007_v44 = vld [vmem:[%s5092_s7 + $0xc8] sm:$0xff] }
 0x506   : > { %v1572_v46 = vmax.f32 %v1522_v43, 0.0  ;;  %v4006_v43 = vld [vmem:[%s5092_s7 + $0xb0] sm:$0xff] }
 0x507   : > { %v1571_v47 = vmax.f32 %v1517_v45, 0.0  ;;  %v4008_v45 = vld [vmem:[%s5092_s7 + $0xc0] sm:$0xff] }
 0x509   : > { %v3667_v48 = vpack.c.bf16 %v1572_v46, %v1571_v47  ;;  %v4009_v46 = vld [vmem:[%s5092_s7 + $0xd8] sm:$0xff]  ;;  %v4010_v47 = vld [vmem:[%s5092_s7 + $0xd0] sm:$0xff] }
 0x50b   : > { %v3281_v49 = vpop.f32.mrb[60].mxu1  ;;  %3668 = vmatpush1.bf16.msra.mxu1 %v3667_v48  ;;  %v4011_v48 = vld [vmem:[%s5092_s7 + $0xe8] sm:$0xff] }
 0x50c   : > { %v1532_v50 = vadd.f32 %v3281_v49, %v5285_v13  ;;  %v1526_v51 = vpop.f32.mrb[61].mxu1  ;;  %3669 = vmatprep.subr.bf16.mxu1 %v4554_v0  ;;  %v4012_v49 = vld [vmem:[%s5092_s7 + $0xe0] sm:$0xff] }
 0x50d   : > { %v1527_v52 = vadd.f32 %v5285_v13, %v1526_v51  ;;  %v4014_v51 = vld [vmem:[%s5092_s7 + $0xf0] sm:$0xff] }
 0x50e   : > { %v1574_v53 = vmax.f32 %v1532_v50, 0.0  ;;  %v4013_v50 = vld [vmem:[%s5092_s7 + $0xf8] sm:$0xff] }
 0x50f   : > { %v1573_v54 = vmax.f32 %v1527_v52, 0.0  ;;  %v4015_v52 = vld [vmem:[%s5092_s7 + $0x108] sm:$0xff] }
 0x511   : > { %v3670_v55 = vpack.c.bf16 %v1574_v53, %v1573_v54  ;;  %v4016_v53 = vld [vmem:[%s5092_s7 + $0x100] sm:$0xff]  ;;  %v4017_v54 = vld [vmem:[%s5092_s7 + $0x118] sm:$0xff] }
 0x513   : > { %v3284_v56 = vpop.f32.mrb[62].mxu1  ;;  %3671 = vmatpush1.bf16.msra.mxu1 %v3670_v55  ;;  %v4018_v55 = vld [vmem:[%s5092_s7 + $0x110] sm:$0xff] }
 0x514   : > { %v1542_v57 = vadd.f32 %v3284_v56, %v5285_v13  ;;  %v1536_v58 = vpop.f32.mrb[63].mxu1  ;;  %3672 = vmatprep.subr.bf16.mxu1 %v4554_v0  ;;  %v4019_v56 = vld [vmem:[%s5092_s7 + $0x128] sm:$0xff] }
 0x515   : > { %v1537_v59 = vadd.f32 %v5285_v13, %v1536_v58  ;;  %v3985_v13 = vld [vmem:[%s5092_s7 + $0x18] sm:$0xff] }
 0x516   : > { %v1576_v60 = vmax.f32 %v1542_v57, 0.0  ;;  %v4020_v57 = vld [vmem:[%s5092_s7 + $0x120] sm:$0xff]  ;;  %v4021_v58 = vld [vmem:[%s5092_s7 + $0x138] sm:$0xff] }
 0x517   : > { %v1575_v61 = vmax.f32 %v1537_v59, 0.0  ;;  %v4022_v59 = vld [vmem:[%s5092_s7 + $0x130] sm:$0xff] }
 0x519   : > { %v3673_v62 = vpack.c.bf16 %v1576_v60, %v1575_v61  ;;  %v4023_v60 = vld [vmem:[%s5092_s7 + $0x148] sm:$0xff]  ;;  %v4024_v61 = vld [vmem:[%s5092_s7 + $0x140] sm:$0xff] }
 0x51b   : > { %3674 = vmatpush1.bf16.msra.mxu1 %v3673_v62  ;;  %v4025_v62 = vld [vmem:[%s5092_s7 + $0x158] sm:$0xff] }
 0x51c   : > { %3739 = vmatprep.subr.bf16.mxu1 %v4554_v0 }
 0x51e   : > { %1642 = vmatmul.mubr.f32.vlgmr.msra.gmra.mrb[64].mxu1 %v3984_v8  ;;  %v4031_v8 = vld [vmem:[%s5092_s7 + $0x188] sm:$0xff] }
 0x51f   : > { %1646 = vmatprep.mubr.f32.mxu1 %v3985_v13  ;;  %v4032_v13 = vld [vmem:[%s5092_s7 + $0x180] sm:$0xff] }
 0x522   : > { %1647 = vmatmul.mubr.f32.gmra.mrb[66].mxu1 %v3986_v14  ;;  %v4036_v14 = vld [vmem:[%s5092_s7 + $0x1a0] sm:$0xff] }
 0x523   : > { %1651 = vmatprep.mubr.f32.mxu1 %v3987_v15  ;;  %v4037_v15 = vld [vmem:[%s5092_s7 + $0x1b8] sm:$0xff] }
 0x526   : > { %1652 = vmatmul.mubr.f32.gmra.mrb[68].mxu1 %v3988_v19  ;;  %v4041_v19 = vld [vmem:[%s5092_s7 + $0x1d8] sm:$0xff] }
 0x527   : > { %1656 = vmatprep.mubr.f32.mxu1 %v3989_v20  ;;  %v4042_v20 = vld [vmem:[%s5092_s7 + $0x1d0] sm:$0xff] }
 0x52a   : > { %1657 = vmatmul.mubr.f32.gmra.mrb[70].mxu1 %v3990_v12  ;;  %v4046_v12 = vld [vmem:[%s5092_s7 + $0x1f0] sm:$0xff] }
 0x52b   : > { %1661 = vmatprep.mubr.f32.mxu1 %v3991_v23  ;;  %v2082_v23 = vld [vmem:[#allocation15] sm:$0xff] }
 0x52c   : > { %v3707_v25 = vpack.c.bf16 %v2083_v24, %v2082_v23 }
 0x52e   : > { %1662 = vmatmul.mubr.f32.gmra.mrb[72].mxu1 %v3992_v27  ;;  %3708 = vmatprep.subr.bf16.mxu0 %v3707_v25  ;;  %v2084_v27 = vld [vmem:[#allocation15 + $0x10] sm:$0xff] }
 0x52f   : > { %1666 = vmatprep.mubr.f32.mxu1 %v3993_v28  ;;  %v2085_v28 = vld [vmem:[#allocation15 + $0x18] sm:$0xff] }
 0x532   : > { %1667 = vmatmul.mubr.f32.gmra.mrb[74].mxu1 %v3994_v30  ;;  %v3711_v30 = vpack.c.bf16 %v2085_v28, %v2084_v27  ;;  %v2097_v27 = vld [vmem:[#allocation15 + $0x78] sm:$0xff] }
 0x533   : > { %1671 = vmatprep.mubr.f32.mxu1 %v3995_v31 }
 0x536   : > { %1672 = vmatmul.mubr.f32.gmra.mrb[76].mxu1 %v3996_v32  ;;  %v2086_v32 = vld [vmem:[#allocation15 + $0x20] sm:$0xff] }
 0x537   : > { %1676 = vmatprep.mubr.f32.mxu1 %v3997_v33  ;;  %v2087_v33 = vld [vmem:[#allocation15 + $0x28] sm:$0xff] }
 0x53a   : > { %1677 = vmatmul.mubr.f32.gmra.mrb[78].mxu1 %v3998_v34 }
 0x53b   : > { %1681 = vmatprep.mubr.f32.mxu1 %v3999_v35  ;;  %v3715_v35 = vpack.c.bf16 %v2087_v33, %v2086_v32 }
 0x53e   : > { %1682 = vmatmul.mubr.f32.gmra.mrb[80].mxu1 %v4000_v36 }
 0x53f   : > { %1686 = vmatprep.mubr.f32.mxu1 %v4001_v37  ;;  %v2088_v37 = vld [vmem:[#allocation15 + $0x30] sm:$0xff] }
 0x542   : > { %1687 = vmatmul.mubr.f32.gmra.mrb[82].mxu1 %v4002_v38  ;;  %v2089_v38 = vld [vmem:[#allocation15 + $0x38] sm:$0xff] }
 0x543   : > { %1691 = vmatprep.mubr.f32.mxu1 %v4003_v40 }
 0x546   : > { %1692 = vmatmul.mubr.f32.gmra.mrb[84].mxu1 %v4004_v41  ;;  %v3719_v41 = vpack.c.bf16 %v2089_v38, %v2088_v37 }
 0x547   : > { %1696 = vmatprep.mubr.f32.mxu1 %v4005_v42 }
 0x54a   : > { %1697 = vmatmul.mubr.f32.gmra.mrb[86].mxu1 %v4006_v43  ;;  %v2090_v43 = vld [vmem:[#allocation15 + $0x40] sm:$0xff] }
 0x54b   : > { %1701 = vmatprep.mubr.f32.mxu1 %v4007_v44  ;;  %v2091_v44 = vld [vmem:[#allocation15 + $0x48] sm:$0xff] }
 0x54e   : > { %1702 = vmatmul.mubr.f32.gmra.mrb[88].mxu1 %v4008_v45 }
 0x54f   : > { %1706 = vmatprep.mubr.f32.mxu1 %v4009_v46  ;;  %v3723_v46 = vpack.c.bf16 %v2091_v44, %v2090_v43 }
 0x552   : > { %1707 = vmatmul.mubr.f32.gmra.mrb[90].mxu1 %v4010_v47 }
 0x553   : > { %1711 = vmatprep.mubr.f32.mxu1 %v4011_v48  ;;  %v2092_v48 = vld [vmem:[#allocation15 + $0x50] sm:$0xff] }
 0x556   : > { %1712 = vmatmul.mubr.f32.gmra.mrb[92].mxu1 %v4012_v49  ;;  %v2093_v49 = vld [vmem:[#allocation15 + $0x58] sm:$0xff] }
 0x557   : > { %1716 = vmatprep.mubr.f32.mxu1 %v4013_v50 }
 0x55a   : > { %1717 = vmatmul.mubr.f32.gmra.mrb[94].mxu1 %v4014_v51  ;;  %v3727_v51 = vpack.c.bf16 %v2093_v49, %v2092_v48  ;;  %v5399_v49 = vld [vmem:[#allocation13] ss:$0 sm:$0xff] }
 0x55b   : > { %1721 = vmatprep.mubr.f32.mxu1 %v4015_v52 }
 0x55e   : > { %1722 = vmatmul.mubr.f32.gmra.mrb[96].mxu1 %v4016_v53  ;;  %v2094_v53 = vld [vmem:[#allocation15 + $0x60] sm:$0xff] }
 0x55f   : > { %1726 = vmatprep.mubr.f32.mxu1 %v4017_v54  ;;  %v2095_v54 = vld [vmem:[#allocation15 + $0x68] sm:$0xff] }
 0x562   : > { %1727 = vmatmul.mubr.f32.gmra.mrb[98].mxu1 %v4018_v55 }
 0x563   : > { %1731 = vmatprep.mubr.f32.mxu1 %v4019_v56  ;;  %v3731_v56 = vpack.c.bf16 %v2095_v54, %v2094_v53 }
 0x566   : > { %1732 = vmatmul.mubr.f32.gmra.mrb[100].mxu1 %v4020_v57 }
 0x567   : > { %1736 = vmatprep.mubr.f32.mxu1 %v4021_v58 }
 0x56a   : > { %1737 = vmatmul.mubr.f32.gmra.mrb[102].mxu1 %v4022_v59 }
 0x56b   : > { %1741 = vmatprep.mubr.f32.mxu1 %v4023_v60 }
 0x56e   : > { %1742 = vmatmul.mubr.f32.gmra.mrb[104].mxu1 %v4024_v61 }
 0x56f   : > { %1746 = vmatprep.mubr.f32.mxu1 %v4025_v62 }
 0x572   : > { %1747 = vmatmul.mubr.f32.gmra.mrb[106].mxu1 %v4026_v3 }
 0x573   : > { %1751 = vmatprep.mubr.f32.mxu1 %v4027_v4 }
 0x576   : > { %1752 = vmatmul.mubr.f32.gmra.mrb[108].mxu1 %v4028_v5 }
 0x577   : > { %1756 = vmatprep.mubr.f32.mxu1 %v4029_v6 }
 0x57a   : > { %1757 = vmatmul.mubr.f32.gmra.mrb[110].mxu1 %v4030_v7 }
 0x57b   : > { %1761 = vmatprep.mubr.f32.mxu1 %v4031_v8 }
 0x57e   : > { %1762 = vmatmul.mubr.f32.gmra.mrb[112].mxu1 %v4032_v13 }
 0x57f   : > { %1766 = vmatprep.mubr.f32.mxu1 %v4033_v9 }
 0x582   : > { %1767 = vmatmul.mubr.f32.gmra.mrb[114].mxu1 %v4034_v10 }
 0x583   : > { %1771 = vmatprep.mubr.f32.mxu1 %v4035_v11 }
 0x586   : > { %1772 = vmatmul.mubr.f32.gmra.mrb[116].mxu1 %v4036_v14 }
 0x587   : > { %1776 = vmatprep.mubr.f32.mxu1 %v4037_v15 }
 0x58a   : > { %1777 = vmatmul.mubr.f32.gmra.mrb[118].mxu1 %v4038_v16 }
 0x58b   : > { %1781 = vmatprep.mubr.f32.mxu1 %v4039_v17 }
 0x58e   : > { %1782 = vmatmul.mubr.f32.gmra.mrb[120].mxu1 %v4040_v18 }
 0x58f   : > { %1786 = vmatprep.mubr.f32.mxu1 %v4041_v19 }
 0x592   : > { %1787 = vmatmul.mubr.f32.gmra.mrb[122].mxu1 %v4042_v20 }
 0x593   : > { %1791 = vmatprep.mubr.f32.mxu1 %v4043_v21 }
 0x596   : > { %1792 = vmatmul.mubr.f32.gmra.mrb[124].mxu1 %v4044_v39 }
 0x597   : > { %1796 = vmatprep.mubr.f32.mxu1 %v4045_v22 }
 0x59a   : > { %1797 = vmatmul.mubr.f32.gmra.mrb[126].mxu1 %v4046_v12 }
 0x5f1   : > { %v1643_v26 = vpop.f32.mrb[64].mxu1 }
 0x5f2   : > { %v1645_v29 = vpop.f32.mrb[65].mxu1  ;;  %3317 = vmatprep.mubr.f32.mxu0 %v1643_v26  ;;  %v2096_v26 = vld [vmem:[#allocation15 + $0x70] sm:$0xff] }
 0x5f3   : > { %v3735_v29 = vpack.c.bf16 %v2097_v27, %v2096_v26 }
 0x5f5   : > { %v1648_v31 = vpop.f32.mrb[66].mxu1 }
 0x5f6   : > { %v1650_v34 = vpop.f32.mrb[67].mxu1  ;;  %3318 = vmatmul.mubr.f32.vlgmr.msra.gmra.mrb[64].mxu0 %v1648_v31 }
 0x5f7   : > { %3710 = vmatpush3.bf16.msra.mxu0 %v3707_v25 }
 0x5f8   : > { %3712 = vmatprep.subr.bf16.mxu0 %v3711_v30 }
 0x5f9   : > { %v1653_v36 = vpop.f32.mrb[68].mxu1 }
 0x5fa   : > { %v1655_v40 = vpop.f32.mrb[69].mxu1  ;;  %3320 = vmatprep.mubr.f32.mxu0 %v1653_v36 }
 0x5fb   : > { %3714 = vmatpush3.bf16.msra.mxu0 %v3711_v30 }
 0x5fc   : > { %3716 = vmatprep.subr.bf16.mxu0 %v3715_v35 }
 0x5fd   : > { %v1658_v42 = vpop.f32.mrb[70].mxu1 }
 0x5fe   : > { %v1660_v45 = vpop.f32.mrb[71].mxu1  ;;  %3321 = vmatmul.mubr.f32.gmra.mrb[66].mxu0 %v1658_v42 }
 0x5ff   : > { %3718 = vmatpush3.bf16.msra.mxu0 %v3715_v35 }
 0x600   : > { %3720 = vmatprep.subr.bf16.mxu0 %v3719_v41 }
 0x601   : > { %v1663_v47 = vpop.f32.mrb[72].mxu1 }
 0x602   : > { %v1665_v50 = vpop.f32.mrb[73].mxu1  ;;  %3323 = vmatprep.mubr.f32.mxu0 %v1663_v47 }
 0x603   : > { %3722 = vmatpush3.bf16.msra.mxu0 %v3719_v41 }
 0x604   : > { %3724 = vmatprep.subr.bf16.mxu0 %v3723_v46 }
 0x605   : > { %v1668_v52 = vpop.f32.mrb[74].mxu1 }
 0x606   : > { %v1670_v55 = vpop.f32.mrb[75].mxu1  ;;  %3324 = vmatmul.mubr.f32.gmra.mrb[68].mxu0 %v1668_v52 }
 0x607   : > { %3726 = vmatpush3.bf16.msra.mxu0 %v3723_v46 }
 0x608   : > { %3728 = vmatprep.subr.bf16.mxu0 %v3727_v51 }
 0x609   : > { %v1673_v57 = vpop.f32.mrb[76].mxu1 }
 0x60a   : > { %v1675_v58 = vpop.f32.mrb[77].mxu1  ;;  %3326 = vmatprep.mubr.f32.mxu0 %v1673_v57 }
 0x60b   : > { %3730 = vmatpush3.bf16.msra.mxu0 %v3727_v51 }
 0x60c   : > { %3732 = vmatprep.subr.bf16.mxu0 %v3731_v56 }
 0x60d   : > { %v1678_v59 = vpop.f32.mrb[78].mxu1 }
 0x60e   : > { %v1680_v60 = vpop.f32.mrb[79].mxu1  ;;  %3327 = vmatmul.mubr.f32.gmra.mrb[70].mxu0 %v1678_v59 }
 0x60f   : > { %3734 = vmatpush3.bf16.msra.mxu0 %v3731_v56 }
 0x610   : > { %3736 = vmatprep.subr.bf16.mxu0 %v3735_v29 }
 0x611   : > { %v1683_v61 = vpop.f32.mrb[80].mxu1 }
 0x612   : > { %v1685_v62 = vpop.f32.mrb[81].mxu1  ;;  %3329 = vmatprep.mubr.f32.mxu0 %v1683_v61 }
 0x613   : > { %3738 = vmatpush3.bf16.msra.mxu0 %v3735_v29 }
 0x614   : > { %3763 = vmatprep.subr.bf16.mxu0 %v4554_v0 }
 0x615   : > { %v1688_v63 = vpop.f32.mrb[82].mxu1 }
 0x616   : > { %v1690_v1 = vpop.f32.mrb[83].mxu1  ;;  %3330 = vmatmul.mubr.f32.gmra.mrb[72].mxu0 %v1688_v63 }
 0x619   : > { %v1693_v2 = vpop.f32.mrb[84].mxu1 }
 0x61a   : > { %v1695_v3 = vpop.f32.mrb[85].mxu1  ;;  %3332 = vmatprep.mubr.f32.mxu0 %v1693_v2 }
 0x61d   : > { %v1698_v4 = vpop.f32.mrb[86].mxu1 }
 0x61e   : > { %v1700_v5 = vpop.f32.mrb[87].mxu1  ;;  %3333 = vmatmul.mubr.f32.gmra.mrb[74].mxu0 %v1698_v4 }
 0x621   : > { %v1703_v6 = vpop.f32.mrb[88].mxu1 }
 0x622   : > { %v1705_v7 = vpop.f32.mrb[89].mxu1  ;;  %3335 = vmatprep.mubr.f32.mxu0 %v1703_v6 }
 0x625   : > { %v1708_v8 = vpop.f32.mrb[90].mxu1 }
 0x626   : > { %v1710_v13 = vpop.f32.mrb[91].mxu1  ;;  %3336 = vmatmul.mubr.f32.gmra.mrb[76].mxu0 %v1708_v8 }
 0x629   : > { %v1713_v9 = vpop.f32.mrb[92].mxu1 }
 0x62a   : > { %v1715_v10 = vpop.f32.mrb[93].mxu1  ;;  %3338 = vmatprep.mubr.f32.mxu0 %v1713_v9 }
 0x62d   : > { %v1718_v11 = vpop.f32.mrb[94].mxu1 }
 0x62e   : > { %v1720_v14 = vpop.f32.mrb[95].mxu1  ;;  %3339 = vmatmul.mubr.f32.gmra.mrb[78].mxu0 %v1718_v11 }
 0x631   : > { %v1723_v15 = vpop.f32.mrb[96].mxu1 }
 0x632   : > { %v1725_v16 = vpop.f32.mrb[97].mxu1  ;;  %3341 = vmatprep.mubr.f32.mxu0 %v1723_v15 }
 0x635   : > { %v1728_v17 = vpop.f32.mrb[98].mxu1 }
 0x636   : > { %v1730_v18 = vpop.f32.mrb[99].mxu1  ;;  %3342 = vmatmul.mubr.f32.gmra.mrb[80].mxu0 %v1728_v17 }
 0x639   : > { %v1733_v19 = vpop.f32.mrb[100].mxu1 }
 0x63a   : > { %v1735_v20 = vpop.f32.mrb[101].mxu1  ;;  %3344 = vmatprep.mubr.f32.mxu0 %v1733_v19 }
 0x63d   : > { %v1738_v21 = vpop.f32.mrb[102].mxu1 }
 0x63e   : > { %v1740_v39 = vpop.f32.mrb[103].mxu1  ;;  %3345 = vmatmul.mubr.f32.gmra.mrb[82].mxu0 %v1738_v21 }
 0x641   : > { %v1743_v22 = vpop.f32.mrb[104].mxu1 }
 0x642   : > { %v1745_v12 = vpop.f32.mrb[105].mxu1  ;;  %3347 = vmatprep.mubr.f32.mxu0 %v1743_v22 }
 0x645   : > { %v1748_v23 = vpop.f32.mrb[106].mxu1 }
 0x646   : > { %v1750_v24 = vpop.f32.mrb[107].mxu1  ;;  %3348 = vmatmul.mubr.f32.gmra.mrb[84].mxu0 %v1748_v23 }
 0x649   : > { %v1753_v25 = vpop.f32.mrb[108].mxu1 }
 0x64a   : > { %v1755_v28 = vpop.f32.mrb[109].mxu1  ;;  %3350 = vmatprep.mubr.f32.mxu0 %v1753_v25 }
 0x64d   : > { %v1758_v30 = vpop.f32.mrb[110].mxu1 }
 0x64e   : > { %v1760_v31 = vpop.f32.mrb[111].mxu1  ;;  %3351 = vmatmul.mubr.f32.gmra.mrb[86].mxu0 %v1758_v30 }
 0x651   : > { %v1763_v32 = vpop.f32.mrb[112].mxu1 }
 0x652   : > { %v1765_v33 = vpop.f32.mrb[113].mxu1  ;;  %3353 = vmatprep.mubr.f32.mxu0 %v1763_v32 }
 0x655   : > { %v1768_v34 = vpop.f32.mrb[114].mxu1 }
 0x656   : > { %v1770_v35 = vpop.f32.mrb[115].mxu1  ;;  %3354 = vmatmul.mubr.f32.gmra.mrb[88].mxu0 %v1768_v34 }
 0x659   : > { %v1773_v36 = vpop.f32.mrb[116].mxu1 }
 0x65a   : > { %v1775_v37 = vpop.f32.mrb[117].mxu1  ;;  %3356 = vmatprep.mubr.f32.mxu0 %v1773_v36 }
 0x65d   : > { %v1778_v38 = vpop.f32.mrb[118].mxu1 }
 0x65e   : > { %v1780_v40 = vpop.f32.mrb[119].mxu1  ;;  %3357 = vmatmul.mubr.f32.gmra.mrb[90].mxu0 %v1778_v38 }
 0x661   : > { %v1783_v41 = vpop.f32.mrb[120].mxu1 }
 0x662   : > { %v1785_v42 = vpop.f32.mrb[121].mxu1  ;;  %3359 = vmatprep.mubr.f32.mxu0 %v1783_v41 }
 0x665   : > { %v1788_v43 = vpop.f32.mrb[122].mxu1 }
 0x666   : > { %v1790_v44 = vpop.f32.mrb[123].mxu1  ;;  %3360 = vmatmul.mubr.f32.gmra.mrb[92].mxu0 %v1788_v43 }
 0x669   : > { %v1793_v45 = vpop.f32.mrb[124].mxu1 }
 0x66a   : > { %v1795_v46 = vpop.f32.mrb[125].mxu1  ;;  %3362 = vmatprep.mubr.f32.mxu0 %v1793_v45 }
 0x66d   : > { %v1798_v47 = vpop.f32.mrb[126].mxu1 }
 0x66e   : > { %v1800_v48 = vpop.f32.mrb[127].mxu1  ;;  %3363 = vmatmul.mubr.f32.gmra.mrb[94].mxu0 %v1798_v47 }
 0x6c9   : > { %v3319_v50 = vpop.f32.mrb[64].mxu0 }
 0x6ca   : > { %v1897_v51 = vadd.f32 %v3319_v50, %v5399_v49  ;;  %v1891_v52 = vpop.f32.mrb[65].mxu0 }
 0x6cb   : > { %v1892_v53 = vadd.f32 %v5399_v49, %v1891_v52 }
 0x6cc   : > { %v2051_v55 = vmax.f32 %v1897_v51, 0.0 }
 0x6cd   : > { %v2050_v54 = vmax.f32 %v1892_v53, 0.0 }
 0x6cf   : > { %3397 = vmatprep.mubr.f32.mxu0 %v2050_v54 }
 0x6d0   : > { %3398 = vmatmul.mubr.f32.vlgmr.msra.gmra.mrb[96].mxu0 %v2051_v55 }
 0x6d1   : > { %v3322_v56 = vpop.f32.mrb[66].mxu0 }
 0x6d2   : > { %v1907_v57 = vadd.f32 %v3322_v56, %v5399_v49  ;;  %v1901_v58 = vpop.f32.mrb[67].mxu0 }
 0x6d3   : > { %v1902_v59 = vadd.f32 %v5399_v49, %v1901_v58 }
 0x6d4   : > { %v2053_v61 = vmax.f32 %v1907_v57, 0.0 }
 0x6d5   : > { %v2052_v60 = vmax.f32 %v1902_v59, 0.0 }
 0x6d7   : > { %3400 = vmatprep.mubr.f32.mxu0 %v2052_v60 }
 0x6d8   : > { %3401 = vmatmul.mubr.f32.gmra.mrb[98].mxu0 %v2053_v61 }
 0x6d9   : > { %v3325_v62 = vpop.f32.mrb[68].mxu0 }
 0x6da   : > { %v1917_v63 = vadd.f32 %v3325_v62, %v5399_v49  ;;  %v1911_v1 = vpop.f32.mrb[69].mxu0 }
 0x6db   : > { %v1912_v2 = vadd.f32 %v5399_v49, %v1911_v1 }
 0x6dc   : > { %v2055_v4 = vmax.f32 %v1917_v63, 0.0 }
 0x6dd   : > { %v2054_v3 = vmax.f32 %v1912_v2, 0.0 }
 0x6df   : > { %3403 = vmatprep.mubr.f32.mxu0 %v2054_v3 }
 0x6e0   : > { %3404 = vmatmul.mubr.f32.gmra.mrb[100].mxu0 %v2055_v4 }
 0x6e1   : > { %v3328_v5 = vpop.f32.mrb[70].mxu0 }
 0x6e2   : > { %v1927_v6 = vadd.f32 %v3328_v5, %v5399_v49  ;;  %v1921_v7 = vpop.f32.mrb[71].mxu0 }
 0x6e3   : > { %v1922_v8 = vadd.f32 %v5399_v49, %v1921_v7 }
 0x6e4   : > { %v2057_v9 = vmax.f32 %v1927_v6, 0.0 }
 0x6e5   : > { %v2056_v13 = vmax.f32 %v1922_v8, 0.0 }
 0x6e7   : > { %3406 = vmatprep.mubr.f32.mxu0 %v2056_v13 }
 0x6e8   : > { %3407 = vmatmul.mubr.f32.gmra.mrb[102].mxu0 %v2057_v9 }
 0x6e9   : > { %v3331_v10 = vpop.f32.mrb[72].mxu0 }
 0x6ea   : > { %v1937_v11 = vadd.f32 %v3331_v10, %v5399_v49  ;;  %v1931_v14 = vpop.f32.mrb[73].mxu0 }
 0x6eb   : > { %v1932_v15 = vadd.f32 %v5399_v49, %v1931_v14 }
 0x6ec   : > { %v2059_v17 = vmax.f32 %v1937_v11, 0.0 }
 0x6ed   : > { %v2058_v16 = vmax.f32 %v1932_v15, 0.0 }
 0x6ef   : > { %3409 = vmatprep.mubr.f32.mxu0 %v2058_v16  ;;  %v2434_v16 = vld [vmem:[#allocation18] sm:$0xff] }
 0x6f0   : > { %3410 = vmatmul.mubr.f32.gmra.mrb[104].mxu0 %v2059_v17  ;;  %v2435_v17 = vld [vmem:[#allocation18 + $0x8] sm:$0xff] }
 0x6f1   : > { %v3334_v18 = vpop.f32.mrb[74].mxu0 }
 0x6f2   : > { %v1947_v19 = vadd.f32 %v3334_v18, %v5399_v49  ;;  %v1941_v20 = vpop.f32.mrb[75].mxu0  ;;  %v3740_v18 = vpack.c.bf16 %v2435_v17, %v2434_v16  ;;  %v2557_v16 = vld [vmem:[#allocation21 + $0x30] sm:$0xff]  ;;  %v2558_v17 = vld [vmem:[#allocation21 + $0x38] sm:$0xff] }
 0x6f3   : > { %v1942_v21 = vadd.f32 %v5399_v49, %v1941_v20 }
 0x6f4   : > { %v2061_v22 = vmax.f32 %v1947_v19, 0.0  ;;  %3741 = vmatpush3.bf16.msra.mxu1 %v3740_v18 }
 0x6f5   : > { %v2060_v39 = vmax.f32 %v1942_v21, 0.0  ;;  %3742 = vmatprep.subr.bf16.mxu1 %v4554_v0 }
 0x6f7   : > { %3412 = vmatprep.mubr.f32.mxu0 %v2060_v39 }
 0x6f8   : > { %3413 = vmatmul.mubr.f32.gmra.mrb[106].mxu0 %v2061_v22 }
 0x6f9   : > { %v3337_v12 = vpop.f32.mrb[76].mxu0 }
 0x6fa   : > { %v1957_v23 = vadd.f32 %v3337_v12, %v5399_v49  ;;  %v1951_v24 = vpop.f32.mrb[77].mxu0 }
 0x6fb   : > { %v1952_v25 = vadd.f32 %v5399_v49, %v1951_v24  ;;  %v2437_v24 = vld [vmem:[#allocation18 + $0x18] sm:$0xff] }
 0x6fc   : > { %v2063_v27 = vmax.f32 %v1957_v23, 0.0  ;;  %v2436_v23 = vld [vmem:[#allocation18 + $0x10] sm:$0xff] }
 0x6fd   : > { %v2062_v26 = vmax.f32 %v1952_v25, 0.0  ;;  %v3743_v25 = vpack.c.bf16 %v2437_v24, %v2436_v23  ;;  %v2560_v23 = vld [vmem:[#allocation21 + $0x48] sm:$0xff] }
 0x6ff   : > { %3415 = vmatprep.mubr.f32.mxu0 %v2062_v26  ;;  %3744 = vmatpush3.bf16.msra.mxu1 %v3743_v25  ;;  %v2438_v26 = vld [vmem:[#allocation18 + $0x20] sm:$0xff] }
 0x700   : > { %3416 = vmatmul.mubr.f32.gmra.mrb[108].mxu0 %v2063_v27  ;;  %3745 = vmatprep.subr.bf16.mxu1 %v4554_v0  ;;  %v2439_v27 = vld [vmem:[#allocation18 + $0x28] sm:$0xff] }
 0x701   : > { %v3340_v28 = vpop.f32.mrb[78].mxu0 }
 0x702   : > { %v1967_v29 = vadd.f32 %v3340_v28, %v5399_v49  ;;  %v1961_v30 = vpop.f32.mrb[79].mxu0  ;;  %v3746_v28 = vpack.c.bf16 %v2439_v27, %v2438_v26 }
 0x703   : > { %v1962_v31 = vadd.f32 %v5399_v49, %v1961_v30 }
 0x704   : > { %v2065_v33 = vmax.f32 %v1967_v29, 0.0  ;;  %3747 = vmatpush3.bf16.msra.mxu1 %v3746_v28  ;;  %v2440_v29 = vld [vmem:[#allocation18 + $0x30] sm:$0xff] }
 0x705   : > { %v2064_v32 = vmax.f32 %v1962_v31, 0.0  ;;  %3748 = vmatprep.subr.bf16.mxu1 %v4554_v0  ;;  %v2442_v31 = vld [vmem:[#allocation18 + $0x40] sm:$0xff] }
 0x707   : > { %3418 = vmatprep.mubr.f32.mxu0 %v2064_v32  ;;  %v2443_v32 = vld [vmem:[#allocation18 + $0x48] sm:$0xff] }
 0x708   : > { %3419 = vmatmul.mubr.f32.gmra.mrb[110].mxu0 %v2065_v33  ;;  %v3752_v33 = vpack.c.bf16 %v2443_v32, %v2442_v31 }
 0x709   : > { %v3343_v34 = vpop.f32.mrb[80].mxu0 }
 0x70a   : > { %v1977_v35 = vadd.f32 %v3343_v34, %v5399_v49  ;;  %v1971_v36 = vpop.f32.mrb[81].mxu0  ;;  %v2444_v34 = vld [vmem:[#allocation18 + $0x50] sm:$0xff] }
 0x70b   : > { %v1972_v37 = vadd.f32 %v5399_v49, %v1971_v36 }
 0x70c   : > { %v2067_v40 = vmax.f32 %v1977_v35, 0.0  ;;  %v2445_v35 = vld [vmem:[#allocation18 + $0x58] sm:$0xff] }
 0x70d   : > { %v2066_v38 = vmax.f32 %v1972_v37, 0.0  ;;  %v3755_v36 = vpack.c.bf16 %v2445_v35, %v2444_v34  ;;  %v2446_v37 = vld [vmem:[#allocation18 + $0x60] sm:$0xff] }
 0x70f   : > { %3421 = vmatprep.mubr.f32.mxu0 %v2066_v38  ;;  %v2447_v38 = vld [vmem:[#allocation18 + $0x68] sm:$0xff] }
 0x710   : > { %3422 = vmatmul.mubr.f32.gmra.mrb[112].mxu0 %v2067_v40  ;;  %v3758_v40 = vpack.c.bf16 %v2447_v38, %v2446_v37 }
 0x711   : > { %v3346_v41 = vpop.f32.mrb[82].mxu0 }
 0x712   : > { %v1987_v42 = vadd.f32 %v3346_v41, %v5399_v49  ;;  %v1981_v43 = vpop.f32.mrb[83].mxu0  ;;  %v5439_v41 = vld [vmem:[#allocation16] ss:$0 sm:$0xff] }
 0x713   : > { %v1982_v44 = vadd.f32 %v5399_v49, %v1981_v43 }
 0x714   : > { %v2069_v46 = vmax.f32 %v1987_v42, 0.0 }
 0x715   : > { %v2068_v45 = vmax.f32 %v1982_v44, 0.0 }
 0x717   : > { %3424 = vmatprep.mubr.f32.mxu0 %v2068_v45 }
 0x718   : > { %3425 = vmatmul.mubr.f32.gmra.mrb[114].mxu0 %v2069_v46 }
 0x719   : > { %v3349_v47 = vpop.f32.mrb[84].mxu0 }
 0x71a   : > { %v1997_v48 = vadd.f32 %v3349_v47, %v5399_v49  ;;  %v1991_v50 = vpop.f32.mrb[85].mxu0 }
 0x71b   : > { %v1992_v51 = vadd.f32 %v5399_v49, %v1991_v50 }
 0x71c   : > { %v2071_v53 = vmax.f32 %v1997_v48, 0.0 }
 0x71d   : > { %v2070_v52 = vmax.f32 %v1992_v51, 0.0 }
 0x71f   : > { %3427 = vmatprep.mubr.f32.mxu0 %v2070_v52 }
 0x720   : > { %3428 = vmatmul.mubr.f32.gmra.mrb[116].mxu0 %v2071_v53  ;;  %v2448_v53 = vld [vmem:[#allocation18 + $0x70] sm:$0xff] }
 0x721   : > { %v3352_v54 = vpop.f32.mrb[86].mxu0 }
 0x722   : > { %v2007_v55 = vadd.f32 %v3352_v54, %v5399_v49  ;;  %v2001_v56 = vpop.f32.mrb[87].mxu0  ;;  %v2449_v54 = vld [vmem:[#allocation18 + $0x78] sm:$0xff] }
 0x723   : > { %v2002_v57 = vadd.f32 %v5399_v49, %v2001_v56  ;;  %v3761_v56 = vpack.c.bf16 %v2449_v54, %v2448_v53 }
 0x724   : > { %v2073_v59 = vmax.f32 %v2007_v55, 0.0 }
 0x725   : > { %v2072_v58 = vmax.f32 %v2002_v57, 0.0  ;;  %v4556_v57 = vmov 0.0  }
 0x726   : > { %3477 = vmatprep.mubr.msk.f32.mxu1 %vm4555_vm0, %v4556_v57 }
 0x727   : > { %3430 = vmatprep.mubr.f32.mxu0 %v2072_v58 }
 0x728   : > { %3431 = vmatmul.mubr.f32.gmra.mrb[118].mxu0 %v2073_v59 }
 0x729   : > { %v3355_v60 = vpop.f32.mrb[88].mxu0 }
 0x72a   : > { %v2017_v61 = vadd.f32 %v3355_v60, %v5399_v49  ;;  %v2011_v62 = vpop.f32.mrb[89].mxu0 }
 0x72b   : > { %v2012_v63 = vadd.f32 %v5399_v49, %v2011_v62  ;;  %v2552_v62 = vld [vmem:[#allocation21 + $0x8] sm:$0xff] }
 0x72c   : > { %v2075_v2 = vmax.f32 %v2017_v61, 0.0  ;;  %v2551_v61 = vld [vmem:[#allocation21] sm:$0xff] }
 0x72d   : > { %v2074_v1 = vmax.f32 %v2012_v63, 0.0  ;;  %v2553_v63 = vld [vmem:[#allocation21 + $0x10] sm:$0xff] }
 0x72f   : > { %3433 = vmatprep.mubr.f32.mxu0 %v2074_v1 }
 0x730   : > { %3434 = vmatmul.mubr.f32.gmra.mrb[120].mxu0 %v2075_v2 }
 0x731   : > { %v3358_v3 = vpop.f32.mrb[90].mxu0 }
 0x732   : > { %v2027_v4 = vadd.f32 %v3358_v3, %v5399_v49  ;;  %v2021_v5 = vpop.f32.mrb[91].mxu0  ;;  %v3764_v3 = vpack.c.bf16 %v2552_v62, %v2551_v61 }
 0x733   : > { %v2022_v6 = vadd.f32 %v5399_v49, %v2021_v5 }
 0x734   : > { %v2077_v8 = vmax.f32 %v2027_v4, 0.0  ;;  %v2554_v4 = vld [vmem:[#allocation21 + $0x18] sm:$0xff]  ;;  %3765 = vmatpush3.bf16.msra.mxu0 %v3764_v3 }
 0x735   : > { %v2076_v7 = vmax.f32 %v2022_v6, 0.0  ;;  %3766 = vmatprep.subr.bf16.mxu0 %v4554_v0 }
 0x737   : > { %3436 = vmatprep.mubr.f32.mxu0 %v2076_v7 }
 0x738   : > { %3437 = vmatmul.mubr.f32.gmra.mrb[122].mxu0 %v2077_v8  ;;  %v3767_v8 = vpack.c.bf16 %v2554_v4, %v2553_v63 }
 0x739   : > { %v3361_v13 = vpop.f32.mrb[92].mxu0 }
 0x73a   : > { %v2037_v9 = vadd.f32 %v3361_v13, %v5399_v49  ;;  %v2031_v10 = vpop.f32.mrb[93].mxu0  ;;  %3768 = vmatpush3.bf16.msra.mxu0 %v3767_v8 }
 0x73b   : > { %v2032_v11 = vadd.f32 %v5399_v49, %v2031_v10  ;;  %v2556_v10 = vld [vmem:[#allocation21 + $0x28] sm:$0xff]  ;;  %3769 = vmatprep.subr.bf16.mxu0 %v4554_v0 }
 0x73c   : > { %v2079_v15 = vmax.f32 %v2037_v9, 0.0  ;;  %v2555_v9 = vld [vmem:[#allocation21 + $0x20] sm:$0xff] }
 0x73d   : > { %v2078_v14 = vmax.f32 %v2032_v11, 0.0 }
 0x73f   : > { %3439 = vmatprep.mubr.f32.mxu0 %v2078_v14 }
 0x740   : > { %3440 = vmatmul.mubr.f32.gmra.mrb[124].mxu0 %v2079_v15  ;;  %v3770_v15 = vpack.c.bf16 %v2556_v10, %v2555_v9 }
 0x741   : > { %v3364_v19 = vpop.f32.mrb[94].mxu0 }
 0x742   : > { %v2047_v20 = vadd.f32 %v3364_v19, %v5399_v49  ;;  %v2041_v21 = vpop.f32.mrb[95].mxu0  ;;  %3771 = vmatpush3.bf16.msra.mxu0 %v3770_v15 }
 0x743   : > { %v2042_v39 = vadd.f32 %v5399_v49, %v2041_v21  ;;  %v2441_v49 = vld [vmem:[#allocation18 + $0x38] sm:$0xff]  ;;  %3772 = vmatprep.subr.bf16.mxu0 %v4554_v0 }
 0x744   : > { %v2081_v12 = vmax.f32 %v2047_v20, 0.0  ;;  %v3749_v30 = vpack.c.bf16 %v2441_v49, %v2440_v29  ;;  %v2561_v29 = vld [vmem:[#allocation21 + $0x50] sm:$0xff]  ;;  %v2562_v49 = vld [vmem:[#allocation21 + $0x58] sm:$0xff] }
 0x745   : > { %v2080_v22 = vmax.f32 %v2042_v39, 0.0  ;;  %v3779_v37 = vpack.c.bf16 %v2562_v49, %v2561_v29 }
 0x746   : > { %3750 = vmatpush3.bf16.msra.mxu1 %v3749_v30 }
 0x747   : > { %3442 = vmatprep.mubr.f32.mxu0 %v2080_v22  ;;  %3751 = vmatprep.subr.bf16.mxu1 %v4554_v0  ;;  %v3773_v22 = vpack.c.bf16 %v2558_v17, %v2557_v16 }
 0x748   : > { %3443 = vmatmul.mubr.f32.gmra.mrb[126].mxu0 %v2081_v12  ;;  %v2559_v12 = vld [vmem:[#allocation21 + $0x40] sm:$0xff] }
 0x749   : > { %3512 = vmatprep.mubr.msk.f32.mxu0 %vm4555_vm0, %v4556_v57  ;;  %3774 = vmatpush3.bf16.msra.mxu0 %v3773_v22  ;;  %v3776_v28 = vpack.c.bf16 %v2560_v23, %v2559_v12 }
 0x74a   : > { %3753 = vmatpush3.bf16.msra.mxu1 %v3752_v33  ;;  %3775 = vmatprep.subr.bf16.mxu0 %v4554_v0 }
 0x74b   : > { %3754 = vmatprep.subr.bf16.mxu1 %v4554_v0 }
 0x74d   : > { %3777 = vmatpush3.bf16.msra.mxu0 %v3776_v28 }
 0x74e   : > { %3756 = vmatpush3.bf16.msra.mxu1 %v3755_v36  ;;  %3778 = vmatprep.subr.bf16.mxu0 %v4554_v0 }
 0x74f   : > { %3757 = vmatprep.subr.bf16.mxu1 %v4554_v0 }
 0x751   : > { %3780 = vmatpush3.bf16.msra.mxu0 %v3779_v37 }
 0x752   : > { %3759 = vmatpush3.bf16.msra.mxu1 %v3758_v40  ;;  %v2563_v40 = vld [vmem:[#allocation21 + $0x60] sm:$0xff]  ;;  %3781 = vmatprep.subr.bf16.mxu0 %v4554_v0 }
 0x753   : > { %3760 = vmatprep.subr.bf16.mxu1 %v4554_v0 }
 0x756   : > { %3762 = vmatpush3.bf16.msra.mxu1 %v3761_v56 }
 0x7a3   : > { %v3399_v42 = vpop.f32.mrb[96].mxu0 }
 0x7a4   : > { %v2177_v43 = vadd.f32 %v3399_v42, %v5439_v41  ;;  %v2171_v44 = vpop.f32.mrb[97].mxu0  ;;  %v2564_v42 = vld [vmem:[#allocation21 + $0x68] sm:$0xff] }
 0x7a5   : > { %v2172_v45 = vadd.f32 %v5439_v41, %v2171_v44 }
 0x7a6   : > { %v2331_v46 = vmax.f32 %v2177_v43, 0.0 }
 0x7a7   : > { %v2330_v47 = vmax.f32 %v2172_v45, 0.0 }
 0x7a9   : > { %v2362_v48 = vadd.f32 %v2331_v46, %v2330_v47 }
 0x7ab   : > { %v3402_v50 = vpop.f32.mrb[98].mxu0 }
 0x7ac   : > { %v2187_v51 = vadd.f32 %v3402_v50, %v5439_v41  ;;  %v2181_v52 = vpop.f32.mrb[99].mxu0  ;;  %v2565_v50 = vld [vmem:[#allocation21 + $0x70] sm:$0xff] }
 0x7ad   : > { %v2182_v55 = vadd.f32 %v5439_v41, %v2181_v52 }
 0x7ae   : > { %v2333_v59 = vmax.f32 %v2187_v51, 0.0  ;;  %v2566_v51 = vld [vmem:[#allocation21 + $0x78] sm:$0xff] }
 0x7af   : > { %v2332_v58 = vmax.f32 %v2182_v55, 0.0 }
 0x7b1   : > { %v2363_v60 = vadd.f32 %v2362_v48, %v2332_v58  ;;  %v3782_v48 = vpack.c.bf16 %v2564_v42, %v2563_v40 }
 0x7b3   : > { %v2364_v1 = vadd.f32 %v2363_v60, %v2333_v59  ;;  %v3405_v2 = vpop.f32.mrb[100].mxu0  ;;  %3783 = vmatpush3.bf16.msra.mxu0 %v3782_v48  ;;  %v3785_v59 = vpack.c.bf16 %v2566_v51, %v2565_v50 }
 0x7b4   : > { %v2197_v5 = vadd.f32 %v3405_v2, %v5439_v41  ;;  %v2191_v6 = vpop.f32.mrb[101].mxu0  ;;  %3784 = vmatprep.subr.bf16.mxu0 %v4554_v0 }
 0x7b5   : > { %v2192_v7 = vadd.f32 %v5439_v41, %v2191_v6  ;;  %v2365_v18 = vrot.slane %v2364_v1, 4 }
 0x7b6   : > { %v2335_v13 = vmax.f32 %v2197_v5, 0.0 }
 0x7b7   : > { %v2334_v11 = vmax.f32 %v2192_v7, 0.0  ;;  %v2366_v24 = vadd.f32 %v2365_v18, %v2364_v1  ;;  %3786 = vmatpush3.bf16.msra.mxu0 %v3785_v59 }
 0x7b9   : > { %v2371_v14 = vadd.f32 %v2335_v13, %v2334_v11  ;;  %v2367_v30 = vrot.slane %v2366_v24, 2 }
 0x7bb   : > { %v3408_v19 = vpop.f32.mrb[102].mxu0  ;;  %v2368_v43 = vadd.f32 %v2367_v30, %v2366_v24 }
 0x7bc   : > { %v2201_v20 = vpop.f32.mrb[103].mxu0  ;;  %v2207_v21 = vadd.f32 %v3408_v19, %v5439_v41 }
 0x7bd   : > { %v2202_v39 = vadd.f32 %v5439_v41, %v2201_v20  ;;  %v2369_v52 = vrot.slane %v2368_v43, 1 }
 0x7be   : > { %v2337_v26 = vmax.f32 %v2207_v21, 0.0 }
 0x7bf   : > { %v2336_v25 = vmax.f32 %v2202_v39, 0.0  ;;  %v2370_v60 = vadd.f32 %v2369_v52, %v2368_v43 }
 0x7c1   : > { %v2372_v27 = vadd.f32 %v2371_v14, %v2336_v25 }
 0x7c3   : > { %v2373_v31 = vadd.f32 %v2372_v27, %v2337_v26  ;;  %v3411_v32 = vpop.f32.mrb[104].mxu0 }
 0x7c4   : > { %v2217_v33 = vadd.f32 %v3411_v32, %v5439_v41  ;;  %v2211_v34 = vpop.f32.mrb[105].mxu0 }
 0x7c5   : > { %v2374_v35 = vrot.slane %v2373_v31, 4  ;;  %v2212_v36 = vadd.f32 %v5439_v41, %v2211_v34 }
 0x7c6   : > { %v2339_v38 = vmax.f32 %v2217_v33, 0.0 }
 0x7c7   : > { %v2375_v44 = vadd.f32 %v2374_v35, %v2373_v31  ;;  %v2338_v45 = vmax.f32 %v2212_v36, 0.0 }
 0x7c9   : > { %v2376_v46 = vrot.slane %v2375_v44, 2  ;;  %v2380_v47 = vadd.f32 %v2339_v38, %v2338_v45 }
 0x7cb   : > { %v2377_v53 = vadd.f32 %v2376_v46, %v2375_v44  ;;  %v3414_v54 = vpop.f32.mrb[106].mxu0 }
 0x7cc   : > { %v2221_v55 = vpop.f32.mrb[107].mxu0  ;;  %v2227_v57 = vadd.f32 %v3414_v54, %v5439_v41 }
 0x7cd   : > { %v2378_v56 = vrot.slane %v2377_v53, 1  ;;  %v2222_v58 = vadd.f32 %v5439_v41, %v2221_v55 }
 0x7ce   : > { %v2341_v1 = vmax.f32 %v2227_v57, 0.0 }
 0x7cf   : > { %v2379_v61 = vadd.f32 %v2378_v56, %v2377_v53  ;;  %v2340_v62 = vmax.f32 %v2222_v58, 0.0 }
 0x7d1   : > { %v2466_v63 = vsel %vm2465_vm1, %v2379_v61, %v2370_v60  ;;  %v2381_v2 = vadd.f32 %v2380_v47, %v2340_v62 }
 0x7d3   : > { %v2382_v3 = vadd.f32 %v2381_v2, %v2341_v1  ;;  %v3417_v4 = vpop.f32.mrb[108].mxu0 }
 0x7d4   : > { %v2237_v5 = vadd.f32 %v3417_v4, %v5439_v41  ;;  %v2231_v6 = vpop.f32.mrb[109].mxu0 }
 0x7d5   : > { %v2383_v7 = vrot.slane %v2382_v3, 4  ;;  %v2232_v8 = vadd.f32 %v5439_v41, %v2231_v6 }
 0x7d6   : > { %v2343_v13 = vmax.f32 %v2237_v5, 0.0 }
 0x7d7   : > { %v2384_v9 = vadd.f32 %v2383_v7, %v2382_v3  ;;  %v2342_v10 = vmax.f32 %v2232_v8, 0.0 }
 0x7d9   : > { %v2385_v11 = vrot.slane %v2384_v9, 2  ;;  %v2389_v0 = vadd.f32 %v2343_v13, %v2342_v10 }
 0x7db   : > { %v2386_v14 = vadd.f32 %v2385_v11, %v2384_v9  ;;  %v3420_v15 = vpop.f32.mrb[110].mxu0 }
 0x7dc   : > { %v2241_v16 = vpop.f32.mrb[111].mxu0  ;;  %v2247_v18 = vadd.f32 %v3420_v15, %v5439_v41 }
 0x7dd   : > { %v2387_v17 = vrot.slane %v2386_v14, 1  ;;  %v2242_v19 = vadd.f32 %v5439_v41, %v2241_v16 }
 0x7de   : > { %v2345_v22 = vmax.f32 %v2247_v18, 0.0 }
 0x7df   : > { %v2388_v20 = vadd.f32 %v2387_v17, %v2386_v14  ;;  %v2344_v21 = vmax.f32 %v2242_v19, 0.0 }
 0x7e1   : > { %v2468_v39 = vsel %vm2467_vm2, %v2388_v20, %v2466_v63  ;;  %v2390_v12 = vadd.f32 %v2389_v0, %v2344_v21 }
 0x7e3   : > { %v2391_v23 = vadd.f32 %v2390_v12, %v2345_v22  ;;  %v3423_v24 = vpop.f32.mrb[112].mxu0 }
 0x7e4   : > { %v2257_v25 = vadd.f32 %v3423_v24, %v5439_v41  ;;  %v2251_v26 = vpop.f32.mrb[113].mxu0 }
 0x7e5   : > { %v2392_v27 = vrot.slane %v2391_v23, 4  ;;  %v2252_v28 = vadd.f32 %v5439_v41, %v2251_v26 }
 0x7e6   : > { %v2347_v29 = vmax.f32 %v2257_v25, 0.0 }
 0x7e7   : > { %v2393_v49 = vadd.f32 %v2392_v27, %v2391_v23  ;;  %v2346_v30 = vmax.f32 %v2252_v28, 0.0 }
 0x7e9   : > { %v2394_v31 = vrot.slane %v2393_v49, 2  ;;  %v2398_v32 = vadd.f32 %v2347_v29, %v2346_v30 }
 0x7eb   : > { %v2395_v33 = vadd.f32 %v2394_v31, %v2393_v49  ;;  %v3426_v34 = vpop.f32.mrb[114].mxu0 }
 0x7ec   : > { %v2261_v35 = vpop.f32.mrb[115].mxu0  ;;  %v2267_v37 = vadd.f32 %v3426_v34, %v5439_v41 }
 0x7ed   : > { %v2396_v36 = vrot.slane %v2395_v33, 1  ;;  %v2262_v38 = vadd.f32 %v5439_v41, %v2261_v35 }
 0x7ee   : > { %v2349_v43 = vmax.f32 %v2267_v37, 0.0 }
 0x7ef   : > { %v2397_v40 = vadd.f32 %v2396_v36, %v2395_v33  ;;  %v2348_v42 = vmax.f32 %v2262_v38, 0.0 }
 0x7f1   : > { %v2399_v44 = vadd.f32 %v2398_v32, %v2348_v42  ;;  %v2470_v45 = vsel %vm2469_vm3, %v2397_v40, %v2468_v39 }
 0x7f3   : > { %v2400_v46 = vadd.f32 %v2399_v44, %v2349_v43  ;;  %v3429_v47 = vpop.f32.mrb[116].mxu0 }
 0x7f4   : > { %v2277_v48 = vadd.f32 %v3429_v47, %v5439_v41  ;;  %v2271_v50 = vpop.f32.mrb[117].mxu0 }
 0x7f5   : > { %v2401_v51 = vrot.slane %v2400_v46, 4  ;;  %v2272_v52 = vadd.f32 %v5439_v41, %v2271_v50 }
 0x7f6   : > { %v2351_v53 = vmax.f32 %v2277_v48, 0.0 }
 0x7f7   : > { %v2402_v54 = vadd.f32 %v2401_v51, %v2400_v46  ;;  %v2350_v55 = vmax.f32 %v2272_v52, 0.0 }
 0x7f9   : > { %v2403_v56 = vrot.slane %v2402_v54, 2  ;;  %v2407_v57 = vadd.f32 %v2351_v53, %v2350_v55 }
 0x7fb   : > { %v2404_v58 = vadd.f32 %v2403_v56, %v2402_v54  ;;  %v3432_v59 = vpop.f32.mrb[118].mxu0 }
 0x7fc   : > { %v2281_v60 = vpop.f32.mrb[119].mxu0  ;;  %v2287_v62 = vadd.f32 %v3432_v59, %v5439_v41 }
 0x7fd   : > { %v2405_v61 = vrot.slane %v2404_v58, 1  ;;  %v2282_v63 = vadd.f32 %v5439_v41, %v2281_v60 }
 0x7fe   : > { %v2353_v3 = vmax.f32 %v2287_v62, 0.0  ;;  %v2894_v62 = vld [vmem:[#allocation22] ss:$0 sm:$0xff] }
 0x7ff   : > { %v2406_v1 = vadd.f32 %v2405_v61, %v2404_v58  ;;  %v2352_v2 = vmax.f32 %v2282_v63, 0.0  ;;  %v2893_v58 = vld [vmem:[#allocation19] ss:$0 sm:$0xff] }
 0x801   : > { %v2408_v4 = vadd.f32 %v2407_v57, %v2352_v2  ;;  %v2472_v5 = vsel %vm2471_vm4, %v2406_v1, %v2470_v45 }
 0x803   : > { %v2409_v6 = vadd.f32 %v2408_v4, %v2353_v3  ;;  %v3435_v7 = vpop.f32.mrb[120].mxu0 }
 0x804   : > { %v2297_v8 = vadd.f32 %v3435_v7, %v5439_v41  ;;  %v2291_v13 = vpop.f32.mrb[121].mxu0 }
 0x805   : > { %v2410_v9 = vrot.slane %v2409_v6, 4  ;;  %v2292_v10 = vadd.f32 %v5439_v41, %v2291_v13 }
 0x806   : > { %v2355_v11 = vmax.f32 %v2297_v8, 0.0 }
 0x807   : > { %v2411_v0 = vadd.f32 %v2410_v9, %v2409_v6  ;;  %v2354_v14 = vmax.f32 %v2292_v10, 0.0 }
 0x809   : > { %v2412_v15 = vrot.slane %v2411_v0, 2  ;;  %v2416_v16 = vadd.f32 %v2355_v11, %v2354_v14 }
 0x80b   : > { %v2413_v17 = vadd.f32 %v2412_v15, %v2411_v0  ;;  %v3438_v18 = vpop.f32.mrb[122].mxu0 }
 0x80c   : > { %v2301_v19 = vpop.f32.mrb[123].mxu0  ;;  %v2307_v21 = vadd.f32 %v3438_v18, %v5439_v41 }
 0x80d   : > { %v2414_v20 = vrot.slane %v2413_v17, 1  ;;  %v2302_v39 = vadd.f32 %v5439_v41, %v2301_v19 }
 0x80e   : > { %v2357_v23 = vmax.f32 %v2307_v21, 0.0 }
 0x80f   : > { %v2415_v22 = vadd.f32 %v2414_v20, %v2413_v17  ;;  %v2356_v12 = vmax.f32 %v2302_v39, 0.0 }
 0x811   : > { %v2417_v24 = vadd.f32 %v2416_v16, %v2356_v12  ;;  %v2474_v25 = vsel %vm2473_vm5, %v2415_v22, %v2472_v5 }
 0x813   : > { %v2418_v26 = vadd.f32 %v2417_v24, %v2357_v23  ;;  %v3441_v27 = vpop.f32.mrb[124].mxu0 }
 0x814   : > { %v2317_v28 = vadd.f32 %v3441_v27, %v5439_v41  ;;  %v2311_v29 = vpop.f32.mrb[125].mxu0 }
 0x815   : > { %v2419_v49 = vrot.slane %v2418_v26, 4  ;;  %v2312_v30 = vadd.f32 %v5439_v41, %v2311_v29 }
 0x816   : > { %v2359_v31 = vmax.f32 %v2317_v28, 0.0 }
 0x817   : > { %v2420_v32 = vadd.f32 %v2419_v49, %v2418_v26  ;;  %v2358_v33 = vmax.f32 %v2312_v30, 0.0 }
 0x819   : > { %v2421_v34 = vrot.slane %v2420_v32, 2  ;;  %v2425_v35 = vadd.f32 %v2359_v31, %v2358_v33 }
 0x81b   : > { %v2422_v36 = vadd.f32 %v2421_v34, %v2420_v32  ;;  %v3444_v37 = vpop.f32.mrb[126].mxu0 }
 0x81c   : > { %v2321_v38 = vpop.f32.mrb[127].mxu0  ;;  %v2327_v42 = vadd.f32 %v3444_v37, %v5439_v41 }
 0x81d   : > { %v2423_v40 = vrot.slane %v2422_v36, 1  ;;  %v2322_v43 = vadd.f32 %v5439_v41, %v2321_v38 }
 0x81e   : > { %v2361_v46 = vmax.f32 %v2327_v42, 0.0 }
 0x81f   : > { %v2424_v44 = vadd.f32 %v2423_v40, %v2422_v36  ;;  %v2360_v45 = vmax.f32 %v2322_v43, 0.0 }
 0x821   : > { %v2426_v47 = vadd.f32 %v2425_v35, %v2360_v45  ;;  %v2476_v48 = vsel %vm2475_vm6, %v2424_v44, %v2474_v25 }
 0x823   : > { %v2427_v50 = vadd.f32 %v2426_v47, %v2361_v46 }
 0x825   : > { %v2428_v51 = vrot.slane %v2427_v50, 4 }
 0x827   : > { %v2429_v52 = vadd.f32 %v2428_v51, %v2427_v50 }
 0x829   : > { %v2430_v53 = vrot.slane %v2429_v52, 2 }
 0x82b   : > { %v2431_v54 = vadd.f32 %v2430_v53, %v2429_v52 }
 0x82d   : > { %v2432_v55 = vrot.slane %v2431_v54, 1 }
 0x82f   : > { %v2433_v56 = vadd.f32 %v2432_v55, %v2431_v54 }
 0x831   : > { %v2478_v57 = vsel %vm2477_vm7, %v2433_v56, %v2476_v48 }
 0x832   : > { %3478 = vmatmul.mubr.f32.vlgmr.msra.gmra.mrb[128].mxu1 %v2478_v57 }
 0x905   : > { %v2546_v41 = vpop.f32.mrb[128].mxu1 }
 0x906   : > { %v2547_v59 = vadd.f32 %v2893_v58, %v2546_v41  ;;  %v3479_v60 = vpop.f32.mrb[129].mxu1 }
 0x908   : > { %v2550_v61 = vmax.f32 %v2547_v59, 0.0 }
 0x90a   : > { %3513 = vmatmul.mubr.f32.vlgmr.msra.gmra.mrb[128].mxu0 %v2550_v61 }
 0x9dd   : > { %v2640_v63 = vpop.f32.mrb[128].mxu0 }
 0x9de   : > { %v2641_v1 = vadd.f32 %v2894_v62, %v2640_v63  ;;  %v3514_v2 = vpop.f32.mrb[129].mxu0 }
 0x9e0   : > { %2644 = vst [vmem:[%s695_s1] sm:$0xff] %v2641_v1 }
 0x9e1 PF: > { %s5606_s29 = sld [smem:[#allocation34_spill]]  ;;  %s5607_s30 = sld [smem:[#allocation35_spill]] }
 0x9e2   : > { %p33_p0 = scmp.ge.s32.totalorder %s4949_s26, 6   ;;  %s5608_s15 = smov %s5030_s28 }
 0x9e3   : > { %s5609_s16 = smov %s4525_s17  ;;  %s5610_s17 = smov %s4529_s18 }
 0x9e4   : > { %s5611_s18 = smov %s4971_s2  ;;  %s5612_s19 = smov %s4949_s26 }
 0x9e5   :  { %35 = sbr.rel (!%p33_p0) target bundleno = 25 (0x19), region = 177 }
 0x9ec   :  { %2664 = vsyncpa [#allocation3], 1 }
 0x9ed   :  { %2666 = vsyncpa [#allocation3 + $0x1], 1 }
 0x9ee   :  { %2667 = vsyncpa [#allocation5], 1 }
 0x9ef   :  { %2669 = vsyncpa [#allocation5 + $0x1], 1 }
 0x9f0   :  { %2670 = vsyncpa [#allocation8], 1 }
 0x9f1   :  { %2671 = vsyncpa [#allocation11], 1 }
 0x9f2   :  { %2672 = vsyncpa [#allocation14], 1 }
 0x9f3   :  { %2673 = vsyncpa [#allocation17], 1 }
 0x9f4   :  { %2674 = vsyncpa [#allocation20], 1 }
 0x9f5   :  { %2675 = vsyncpa [#allocation23], 1 }

</bundles_post_ra>
